<compile_context>
chip_gen: v7x
topology: tpu7x:2x2x1
jax: 0.10.0
libtpu: 0.0.40
codegen_flags: <defaults>
</compile_context>

<pallas_src>
import functools
import math

import jax
import jax.numpy as jnp
import numpy as np
from jax.experimental import pallas as pl
from jax.experimental.pallas import tpu as pltpu


def _layer_norm(x, gamma, beta, eps=1e-6):
    mean = jnp.mean(x, axis=-1, keepdims=True)
    var = jnp.mean((x - mean) ** 2, axis=-1, keepdims=True)
    return (x - mean) * jax.lax.rsqrt(var + eps) * gamma + beta


def encoder_layer_kernel(
    x_ref,
    wqkv_ref, bqkv_ref, wo_ref, bo_ref,
    g1_ref, b1_ref, g2_ref, b2_ref,
    wf1_ref, bf1_ref, wf2_ref, bf2_ref,
    out_ref,
    q_scr, k_scr, v_scr, ctx_scr, ctx_sd_scr,
    *, num_heads, depth,
):
    f32 = jnp.float32
    bf16 = jnp.bfloat16

    bt, s, d = x_ref.shape
    m = bt * s

    x = x_ref[...].reshape(m, d)                       # (M, D) f32 residual

    # ----- causal additive mask, generated in-kernel (CTRL: triu(ones,1)*-1e4)
    row = jax.lax.broadcasted_iota(jnp.int32, (s, s), 0)
    col = jax.lax.broadcasted_iota(jnp.int32, (s, s), 1)
    neg_mask = jnp.where(col > row, jnp.float32(-10000.0), jnp.float32(0.0))

    # ----- LayerNorm 1 (f32 elementwise) -----
    normed = _layer_norm(x, g1_ref[...], b1_ref[...])
    normed_bf = normed.astype(bf16)

    # ----- fused Q/K/V projection: one full-lane-width, depth-D matmul -----
    # (1/sqrt(dh) is already folded into the Q columns of wqkv/bqkv)
    qkv = jnp.dot(normed_bf, wqkv_ref[...], preferred_element_type=f32)
    qkv = qkv + bqkv_ref[...]                          # (M, 3D) f32
    q_all = qkv[:, 0:d]                                # static lane-aligned
    k_all = qkv[:, d:2 * d]                            # slices (D % 128 == 0)
    v_all = qkv[:, 2 * d:3 * d]

    # Scatter heads into (H, Bt, S, dh) scratches.  Static loop, but each
    # iteration is just slice+cast+store -> no live-range growth at large H.
    for h in range(num_heads):
        sl = slice(h * depth, (h + 1) * depth)
        q_scr[h] = q_all[:, sl].astype(bf16).reshape(bt, s, depth)
        k_scr[h] = k_all[:, sl].astype(bf16).reshape(bt, s, depth)
        v_scr[h] = v_all[:, sl].astype(bf16).reshape(bt, s, depth)

    # ----- per-head attention: dynamic loop bounds per-head live ranges -----
    @pl.loop(0, num_heads)
    def _per_head(h):
        qh = q_scr[h]                                  # (Bt, S, dh) bf16
        kh = k_scr[h]
        vh = v_scr[h]
        scores = jnp.einsum("bqd,bkd->bqk", qh, kh,
                            preferred_element_type=f32)      # (Bt, S, S) f32
        scores = scores + neg_mask[None, :, :]
        scores = scores - jnp.max(scores, axis=-1, keepdims=True)
        p = jnp.exp(scores)                            # unnormalized, f32
        inv_denom = pl.reciprocal(
            jnp.sum(p, axis=-1, keepdims=True), approx=True)  # (Bt, S, 1)
        ctx = jnp.einsum("bqk,bkd->bqd", p.astype(bf16), vh,
                         preferred_element_type=f32)          # (Bt, S, dh)
        ctx_scr[h] = (ctx * inv_denom).astype(bf16)    # deferred softmax denom

    # ----- reassemble lane-dense (M, D) context; single depth-D Wo matmul ---
    for h in range(num_heads):
        ctx_sd_scr[:, h * depth:(h + 1) * depth] = ctx_scr[h].reshape(m, depth)

    attn = jnp.dot(ctx_sd_scr[...], wo_ref[...],
                   preferred_element_type=f32) + bo_ref[...]
    out1 = x + attn                                    # dropout1: identity

    # ----- LayerNorm 2 + FFN -----
    out2 = _layer_norm(out1, g2_ref[...], b2_ref[...])
    ff_hidden = jnp.dot(out2.astype(bf16), wf1_ref[...],
                        preferred_element_type=f32) + bf1_ref[...]
    ff_hidden = jnp.maximum(ff_hidden, 0.0)
    ffn = jnp.dot(ff_hidden.astype(bf16), wf2_ref[...],
                  preferred_element_type=f32) + bf2_ref[...]

    out_ref[...] = (out1 + ffn).reshape(bt, s, d)      # dropout2: identity


def prepare_encoder_params(params, *, num_heads):
    """One-time weight layout plumbing (hoisted out of the per-call path):
    fuse Wq/Wk/Wv into one (D, 3D) bf16 slab with 1/sqrt(dh) folded into the
    Q columns, and cast every weight to its kernel dtype."""
    bf16, f32 = jnp.bfloat16, jnp.float32
    D = params["wq"].shape[0]
    depth = D // num_heads
    scale = 1.0 / math.sqrt(depth)
    wqkv = jnp.concatenate(
        [params["wq"] * scale, params["wk"], params["wv"]], axis=1).astype(bf16)
    bqkv = jnp.concatenate(
        [params["bq"] * scale, params["bk"], params["bv"]], axis=1).astype(f32)
    return {
        "wqkv": wqkv, "bqkv": bqkv,
        "wo": params["wo"].astype(bf16), "bo": params["bo"].astype(f32),
        "ln1_g": params["ln1_g"].astype(f32), "ln1_b": params["ln1_b"].astype(f32),
        "ln2_g": params["ln2_g"].astype(f32), "ln2_b": params["ln2_b"].astype(f32),
        "wf1": params["wf1"].astype(bf16), "bf1": params["bf1"].astype(f32),
        "wf2": params["wf2"].astype(bf16), "bf2": params["bf2"].astype(f32),
    }


def _pick_block_batch(batch, seq, target_m=128):
    """Smallest divisor of `batch` whose block gives M = bt*seq >= target_m."""
    want = max(1, -(-target_m // seq))
    for bt in range(min(want, batch), batch + 1):
        if batch % bt == 0:
            return bt
    return batch


def encoder_layer_fwd(x, prep, *, num_heads):
    """Fused CTRL EncoderLayer forward.  `prep` comes from
    prepare_encoder_params (weights already fused / cast, done once)."""
    B, S, D = x.shape
    dff = prep["wf1"].shape[1]
    depth = D // num_heads
    assert depth * num_heads == D

    bt = _pick_block_batch(B, S)          # block batch rows so M = bt*S >= 128
    m = bt * S
    grid = (B // bt,)

    # ----- VMEM budget: account for lane padding of the dh-minor scratches ---
    def nbytes(a):
        return int(np.prod(a.shape)) * a.dtype.itemsize
    weight_bytes = sum(nbytes(a) for a in prep.values())
    io_bytes = 2 * 2 * m * D * 4                        # x + out, double-buffered
    pad_dh = max(depth, 128)                            # minor dim lane-pads to 128
    scratch_bytes = 4 * num_heads * bt * S * pad_dh * 2 + m * D * 2
    act_bytes = 4 * (m * 3 * D + 6 * m * D + m * dff + 3 * bt * S * S)
    need = 2 * weight_bytes + io_bytes + scratch_bytes + act_bytes
    try:
        physical = int(pltpu.get_tpu_info().vmem_capacity_bytes)
    except Exception:
        physical = 64 * 2**20                           # conservative (v7x per-TC)
    vmem_limit = int(min(0.75 * physical, max(32 * 2**20, 1.25 * need)))

    def cspec(shape):
        zeros = (0,) * len(shape)
        return pl.BlockSpec(shape, lambda i, _z=zeros: _z)

    in_specs = [
        pl.BlockSpec((bt, S, D), lambda i: (i, 0, 0)),          # x
        cspec((D, 3 * D)), cspec((1, 3 * D)),                   # fused Wqkv, bqkv
        cspec((D, D)), cspec((1, D)),                           # Wo, bo
        cspec((1, D)), cspec((1, D)),                           # ln1 gamma, beta
        cspec((1, D)), cspec((1, D)),                           # ln2 gamma, beta
        cspec((D, dff)), cspec((1, dff)),                       # ffn W1, b1
        cspec((dff, D)), cspec((1, D)),                         # ffn W2, b2
    ]

    kernel = functools.partial(encoder_layer_kernel,
                               num_heads=num_heads, depth=depth)

    return pl.pallas_call(
        kernel,
        out_shape=jax.ShapeDtypeStruct((B, S, D), jnp.float32),
        grid_spec=pltpu.PrefetchScalarGridSpec(
            num_scalar_prefetch=0,
            grid=grid,
            in_specs=in_specs,
            out_specs=pl.BlockSpec((bt, S, D), lambda i: (i, 0, 0)),
            scratch_shapes=[
                pltpu.VMEM((num_heads, bt, S, depth), jnp.bfloat16),   # q heads
                pltpu.VMEM((num_heads, bt, S, depth), jnp.bfloat16),   # k heads
                pltpu.VMEM((num_heads, bt, S, depth), jnp.bfloat16),   # v heads
                pltpu.VMEM((num_heads, bt, S, depth), jnp.bfloat16),   # ctx/head
                pltpu.VMEM((m, D), jnp.bfloat16),                      # ctx (M,D)
            ],
        ),
        compiler_params=pltpu.CompilerParams(
            dimension_semantics=("parallel",),
            vmem_limit_bytes=vmem_limit,
        ),
    )(x.astype(jnp.float32),
      prep["wqkv"], prep["bqkv"], prep["wo"], prep["bo"],
      prep["ln1_g"], prep["ln1_b"], prep["ln2_g"], prep["ln2_b"],
      prep["wf1"], prep["bf1"], prep["wf2"], prep["bf2"])


def reference_encoder_layer(x, mask, params, *, num_heads):
    """Pure-JAX f32 reference mirroring the PyTorch forward (eval mode)."""
    B, S, D = x.shape
    depth = D // num_heads

    def ln(v, g, b, eps=1e-6):
        mmean = jnp.mean(v, -1, keepdims=True)
        var = jnp.mean((v - mmean) ** 2, -1, keepdims=True)
        return (v - mmean) / jnp.sqrt(var + eps) * g + b

    normed = ln(x, params["ln1_g"], params["ln1_b"])
    q = normed @ params["wq"] + params["bq"]
    k = normed @ params["wk"] + params["bk"]
    v = normed @ params["wv"] + params["bv"]

    def split(t):
        return jnp.transpose(t.reshape(B, S, num_heads, depth), (0, 2, 1, 3))

    q, k, v = split(q), split(k), split(v)
    logits = jnp.einsum("bhqd,bhkd->bhqk", q, k) / np.sqrt(depth)
    logits = logits + mask * (-10000.0)
    w = jax.nn.softmax(logits, axis=-1)
    o = jnp.einsum("bhqk,bhkd->bhqd", w, v)
    o = jnp.transpose(o, (0, 2, 1, 3)).reshape(B, S, D)
    attn = o @ params["wo"] + params["bo"]
    out1 = x + attn
    out2 = ln(out1, params["ln2_g"], params["ln2_b"])
    h = jnp.maximum(out2 @ params["wf1"] + params["bf1"], 0.0)
    ffn = h @ params["wf2"] + params["bf2"]
    return out1 + ffn


def make_params(key, d_model, num_heads, dff):
    ks = jax.random.split(key, 16)
    s = 0.02
    w = lambda k, shape: jax.random.normal(k, shape, jnp.float32) * s
    return {
        "wq": w(ks[0], (d_model, d_model)), "bq": w(ks[1], (1, d_model)),
        "wk": w(ks[2], (d_model, d_model)), "bk": w(ks[3], (1, d_model)),
        "wv": w(ks[4], (d_model, d_model)), "bv": w(ks[5], (1, d_model)),
        "wo": w(ks[6], (d_model, d_model)), "bo": w(ks[7], (1, d_model)),
        "ln1_g": 1.0 + w(ks[8], (1, d_model)), "ln1_b": w(ks[9], (1, d_model)),
        "ln2_g": 1.0 + w(ks[10], (1, d_model)), "ln2_b": w(ks[11], (1, d_model)),
        "wf1": w(ks[12], (d_model, dff)), "bf1": w(ks[13], (1, dff)),
        "wf2": w(ks[14], (dff, d_model)), "bf2": w(ks[15], (1, d_model)),
    }


if __name__ == "__main__":
    # Small but lane-dense shapes: D, 3D, dff multiples of 128; bt*S = 128
    # rows per grid step and >1 grid step (megacore / pipelining).
    B, S, D, H, DFF = 4, 64, 128, 4, 256

    key = jax.random.PRNGKey(0)
    kx, kp = jax.random.split(key)
    x = jax.random.normal(kx, (B, S, D), jnp.float32)
    params = make_params(kp, D, H, DFF)

    prep = prepare_encoder_params(params, num_heads=H)   # one-time, hoisted
    fwd = jax.jit(functools.partial(encoder_layer_fwd, num_heads=H))
    out = jax.block_until_ready(fwd(x, prep))

    # CTRL causal mask (triu of ones above the diagonal) for the reference.
    mask = jnp.triu(jnp.ones((S, S), jnp.float32), k=1)
    ref = reference_encoder_layer(x, mask, params, num_heads=H)

    # Kernel matmuls run in bf16 with f32 accumulation -> bf16-level tolerance.
    np.testing.assert_allclose(np.asarray(out), np.asarray(ref),
                               rtol=2e-2, atol=2e-2)

    print("KERNEL_OK")
</pallas_src>

<mosaic_0001>
module attributes {stable_mosaic.version = 11 : i64} {
  func.func @encoder_layer_kernel(%arg0: i32, %arg1: memref<2x64x128xf32, #tpu.memory_space<vmem>>, %arg2: memref<128x384xbf16, #tpu.memory_space<vmem>>, %arg3: memref<1x384xf32, #tpu.memory_space<vmem>>, %arg4: memref<128x128xbf16, #tpu.memory_space<vmem>>, %arg5: memref<1x128xf32, #tpu.memory_space<vmem>>, %arg6: memref<1x128xf32, #tpu.memory_space<vmem>>, %arg7: memref<1x128xf32, #tpu.memory_space<vmem>>, %arg8: memref<1x128xf32, #tpu.memory_space<vmem>>, %arg9: memref<1x128xf32, #tpu.memory_space<vmem>>, %arg10: memref<128x256xbf16, #tpu.memory_space<vmem>>, %arg11: memref<1x256xf32, #tpu.memory_space<vmem>>, %arg12: memref<256x128xbf16, #tpu.memory_space<vmem>>, %arg13: memref<1x128xf32, #tpu.memory_space<vmem>>, %arg14: memref<2x64x128xf32, #tpu.memory_space<vmem>>, %arg15: memref<4x2x64x32xbf16, #tpu.memory_space<vmem>>, %arg16: memref<4x2x64x32xbf16, #tpu.memory_space<vmem>>, %arg17: memref<4x2x64x32xbf16, #tpu.memory_space<vmem>>, %arg18: memref<4x2x64x32xbf16, #tpu.memory_space<vmem>>, %arg19: memref<128x128xbf16, #tpu.memory_space<vmem>>) attributes {dimension_semantics = [#tpu.dimension_semantics<parallel>], iteration_bounds = array<i64: 2>, scalar_prefetch = 0 : i64, scratch_operands = 5 : i64, tpu.core_type = #tpu.core_type<tc>, window_params = [{transform_indices = @transform_0, window_bounds = array<i64: 2, 64, 128>}, {pipeline_mode = #tpu.pipeline_mode<synchronous>, transform_indices = @transform_1, window_bounds = array<i64: 128, 384>}, {pipeline_mode = #tpu.pipeline_mode<synchronous>, transform_indices = @transform_2, window_bounds = array<i64: 1, 384>}, {pipeline_mode = #tpu.pipeline_mode<synchronous>, transform_indices = @transform_3, window_bounds = array<i64: 128, 128>}, {pipeline_mode = #tpu.pipeline_mode<synchronous>, transform_indices = @transform_4, window_bounds = array<i64: 1, 128>}, {pipeline_mode = #tpu.pipeline_mode<synchronous>, transform_indices = @transform_5, window_bounds = array<i64: 1, 128>}, {pipeline_mode = #tpu.pipeline_mode<synchronous>, transform_indices = @transform_6, window_bounds = array<i64: 1, 128>}, {pipeline_mode = #tpu.pipeline_mode<synchronous>, transform_indices = @transform_7, window_bounds = array<i64: 1, 128>}, {pipeline_mode = #tpu.pipeline_mode<synchronous>, transform_indices = @transform_8, window_bounds = array<i64: 1, 128>}, {pipeline_mode = #tpu.pipeline_mode<synchronous>, transform_indices = @transform_9, window_bounds = array<i64: 128, 256>}, {pipeline_mode = #tpu.pipeline_mode<synchronous>, transform_indices = @transform_10, window_bounds = array<i64: 1, 256>}, {pipeline_mode = #tpu.pipeline_mode<synchronous>, transform_indices = @transform_11, window_bounds = array<i64: 256, 128>}, {pipeline_mode = #tpu.pipeline_mode<synchronous>, transform_indices = @transform_12, window_bounds = array<i64: 1, 128>}, {transform_indices = @transform_13, window_bounds = array<i64: 2, 64, 128>}]} {
    %c0 = arith.constant 0 : index
    %c0_0 = arith.constant 0 : index
    %c0_1 = arith.constant 0 : index
    %0 = vector.load %arg1[%c0, %c0_0, %c0_1] : memref<2x64x128xf32, #tpu.memory_space<vmem>>, vector<2x64x128xf32>
    %1 = vector.shape_cast %0 : vector<2x64x128xf32> to vector<128x128xf32>
    %2 = tpu.iota {dimensions = array<i32: 0>} : vector<64x64xi32>
    %3 = tpu.iota {dimensions = array<i32: 1>} : vector<64x64xi32>
    %4 = arith.cmpi sgt, %3, %2 : vector<64x64xi32>
    %cst = arith.constant -1.000000e+04 : f32
    %cst_2 = arith.constant 0.000000e+00 : f32
    %5 = vector.broadcast %cst : f32 to vector<64x64xf32>
    %6 = vector.broadcast %cst_2 : f32 to vector<64x64xf32>
    %7 = arith.select %4, %5, %6 : vector<64x64xi1>, vector<64x64xf32>
    %c0_3 = arith.constant 0 : index
    %c0_4 = arith.constant 0 : index
    %8 = vector.load %arg6[%c0_3, %c0_4] : memref<1x128xf32, #tpu.memory_space<vmem>>, vector<1x128xf32>
    %c0_5 = arith.constant 0 : index
    %c0_6 = arith.constant 0 : index
    %9 = vector.load %arg7[%c0_5, %c0_6] : memref<1x128xf32, #tpu.memory_space<vmem>>, vector<1x128xf32>
    %cst_7 = arith.constant dense<0.000000e+00> : vector<128xf32>
    %10 = vector.multi_reduction <add>, %1, %cst_7 [1] : vector<128x128xf32> to vector<128xf32>
    %11 = vector.shape_cast %10 : vector<128xf32> to vector<128x1xf32>
    %cst_8 = arith.constant 1.280000e+02 : f32
    %12 = vector.broadcast %cst_8 : f32 to vector<128x1xf32>
    %13 = arith.divf %11, %12 : vector<128x1xf32>
    %14 = vector.broadcast %13 : vector<128x1xf32> to vector<128x128xf32>
    %15 = arith.subf %1, %14 : vector<128x128xf32>
    %16 = arith.mulf %15, %15 : vector<128x128xf32>
    %cst_9 = arith.constant dense<0.000000e+00> : vector<128xf32>
    %17 = vector.multi_reduction <add>, %16, %cst_9 [1] : vector<128x128xf32> to vector<128xf32>
    %18 = vector.shape_cast %17 : vector<128xf32> to vector<128x1xf32>
    %cst_10 = arith.constant 1.280000e+02 : f32
    %19 = vector.broadcast %cst_10 : f32 to vector<128x1xf32>
    %20 = arith.divf %18, %19 : vector<128x1xf32>
    %21 = vector.broadcast %13 : vector<128x1xf32> to vector<128x128xf32>
    %22 = arith.subf %1, %21 : vector<128x128xf32>
    %cst_11 = arith.constant 9.99999997E-7 : f32
    %23 = vector.broadcast %cst_11 : f32 to vector<128x1xf32>
    %24 = arith.addf %20, %23 : vector<128x1xf32>
    %25 = math.rsqrt %24 : vector<128x1xf32>
    %26 = vector.broadcast %25 : vector<128x1xf32> to vector<128x128xf32>
    %27 = arith.mulf %22, %26 : vector<128x128xf32>
    %28 = vector.broadcast %8 : vector<1x128xf32> to vector<128x128xf32>
    %29 = arith.mulf %27, %28 : vector<128x128xf32>
    %30 = vector.broadcast %9 : vector<1x128xf32> to vector<128x128xf32>
    %31 = arith.addf %29, %30 : vector<128x128xf32>
    %32 = arith.truncf %31 : vector<128x128xf32> to vector<128x128xbf16>
    %c0_12 = arith.constant 0 : index
    %c0_13 = arith.constant 0 : index
    %33 = vector.load %arg2[%c0_12, %c0_13] : memref<128x384xbf16, #tpu.memory_space<vmem>>, vector<128x384xbf16>
    %cst_14 = arith.constant dense<0.000000e+00> : vector<128x384xf32>
    %34 = tpu.matmul %32, %33, %cst_14 {dimension_numbers = #tpu.dot_dimension_numbers<[1], [0], [0], [1], [0, 0, 1, 1], [], []>} : vector<128x128xbf16>, vector<128x384xbf16>, vector<128x384xf32> -> vector<128x384xf32>
    %c0_15 = arith.constant 0 : index
    %c0_16 = arith.constant 0 : index
    %35 = vector.load %arg3[%c0_15, %c0_16] : memref<1x384xf32, #tpu.memory_space<vmem>>, vector<1x384xf32>
    %36 = vector.broadcast %35 : vector<1x384xf32> to vector<128x384xf32>
    %37 = arith.addf %34, %36 : vector<128x384xf32>
    %38 = vector.extract_strided_slice %37 {offsets = [0, 0], sizes = [128, 128], strides = [1, 1]} : vector<128x384xf32> to vector<128x128xf32>
    %39 = vector.extract_strided_slice %37 {offsets = [0, 128], sizes = [128, 128], strides = [1, 1]} : vector<128x384xf32> to vector<128x128xf32>
    %40 = vector.extract_strided_slice %37 {offsets = [0, 256], sizes = [128, 128], strides = [1, 1]} : vector<128x384xf32> to vector<128x128xf32>
    %41 = vector.extract_strided_slice %38 {offsets = [0, 0], sizes = [128, 32], strides = [1, 1]} : vector<128x128xf32> to vector<128x32xf32>
    %42 = arith.truncf %41 : vector<128x32xf32> to vector<128x32xbf16>
    %43 = vector.shape_cast %42 : vector<128x32xbf16> to vector<2x64x32xbf16>
    %c0_17 = arith.constant 0 : index
    %c0_18 = arith.constant 0 : index
    %c0_19 = arith.constant 0 : index
    %c0_20 = arith.constant 0 : index
    %44 = vector.load %arg15[%c0_17, %c0_18, %c0_19, %c0_20] : memref<4x2x64x32xbf16, #tpu.memory_space<vmem>>, vector<1x2x64x32xbf16>
    %45 = vector.shape_cast %44 : vector<1x2x64x32xbf16> to vector<2x64x32xbf16>
    %46 = vector.shape_cast %43 : vector<2x64x32xbf16> to vector<1x2x64x32xbf16>
    tpu.vector_store %arg15[%c0_17, %c0_18, %c0_19, %c0_20], %46 {strides = array<i32>} : memref<4x2x64x32xbf16, #tpu.memory_space<vmem>>, vector<1x2x64x32xbf16>,
    %47 = vector.extract_strided_slice %39 {offsets = [0, 0], sizes = [128, 32], strides = [1, 1]} : vector<128x128xf32> to vector<128x32xf32>
    %48 = arith.truncf %47 : vector<128x32xf32> to vector<128x32xbf16>
    %49 = vector.shape_cast %48 : vector<128x32xbf16> to vector<2x64x32xbf16>
    %c0_21 = arith.constant 0 : index
    %c0_22 = arith.constant 0 : index
    %c0_23 = arith.constant 0 : index
    %c0_24 = arith.constant 0 : index
    %50 = vector.load %arg16[%c0_21, %c0_22, %c0_23, %c0_24] : memref<4x2x64x32xbf16, #tpu.memory_space<vmem>>, vector<1x2x64x32xbf16>
    %51 = vector.shape_cast %50 : vector<1x2x64x32xbf16> to vector<2x64x32xbf16>
    %52 = vector.shape_cast %49 : vector<2x64x32xbf16> to vector<1x2x64x32xbf16>
    tpu.vector_store %arg16[%c0_21, %c0_22, %c0_23, %c0_24], %52 {strides = array<i32>} : memref<4x2x64x32xbf16, #tpu.memory_space<vmem>>, vector<1x2x64x32xbf16>,
    %53 = vector.extract_strided_slice %40 {offsets = [0, 0], sizes = [128, 32], strides = [1, 1]} : vector<128x128xf32> to vector<128x32xf32>
    %54 = arith.truncf %53 : vector<128x32xf32> to vector<128x32xbf16>
    %55 = vector.shape_cast %54 : vector<128x32xbf16> to vector<2x64x32xbf16>
    %c0_25 = arith.constant 0 : index
    %c0_26 = arith.constant 0 : index
    %c0_27 = arith.constant 0 : index
    %c0_28 = arith.constant 0 : index
    %56 = vector.load %arg17[%c0_25, %c0_26, %c0_27, %c0_28] : memref<4x2x64x32xbf16, #tpu.memory_space<vmem>>, vector<1x2x64x32xbf16>
    %57 = vector.shape_cast %56 : vector<1x2x64x32xbf16> to vector<2x64x32xbf16>
    %58 = vector.shape_cast %55 : vector<2x64x32xbf16> to vector<1x2x64x32xbf16>
    tpu.vector_store %arg17[%c0_25, %c0_26, %c0_27, %c0_28], %58 {strides = array<i32>} : memref<4x2x64x32xbf16, #tpu.memory_space<vmem>>, vector<1x2x64x32xbf16>,
    %59 = vector.extract_strided_slice %38 {offsets = [0, 32], sizes = [128, 32], strides = [1, 1]} : vector<128x128xf32> to vector<128x32xf32>
    %60 = arith.truncf %59 : vector<128x32xf32> to vector<128x32xbf16>
    %61 = vector.shape_cast %60 : vector<128x32xbf16> to vector<2x64x32xbf16>
    %c1 = arith.constant 1 : index
    %c0_29 = arith.constant 0 : index
    %c0_30 = arith.constant 0 : index
    %c0_31 = arith.constant 0 : index
    %62 = vector.load %arg15[%c1, %c0_29, %c0_30, %c0_31] : memref<4x2x64x32xbf16, #tpu.memory_space<vmem>>, vector<1x2x64x32xbf16>
    %63 = vector.shape_cast %62 : vector<1x2x64x32xbf16> to vector<2x64x32xbf16>
    %64 = vector.shape_cast %61 : vector<2x64x32xbf16> to vector<1x2x64x32xbf16>
    tpu.vector_store %arg15[%c1, %c0_29, %c0_30, %c0_31], %64 {strides = array<i32>} : memref<4x2x64x32xbf16, #tpu.memory_space<vmem>>, vector<1x2x64x32xbf16>,
    %65 = vector.extract_strided_slice %39 {offsets = [0, 32], sizes = [128, 32], strides = [1, 1]} : vector<128x128xf32> to vector<128x32xf32>
    %66 = arith.truncf %65 : vector<128x32xf32> to vector<128x32xbf16>
    %67 = vector.shape_cast %66 : vector<128x32xbf16> to vector<2x64x32xbf16>
    %c1_32 = arith.constant 1 : index
    %c0_33 = arith.constant 0 : index
    %c0_34 = arith.constant 0 : index
    %c0_35 = arith.constant 0 : index
    %68 = vector.load %arg16[%c1_32, %c0_33, %c0_34, %c0_35] : memref<4x2x64x32xbf16, #tpu.memory_space<vmem>>, vector<1x2x64x32xbf16>
    %69 = vector.shape_cast %68 : vector<1x2x64x32xbf16> to vector<2x64x32xbf16>
    %70 = vector.shape_cast %67 : vector<2x64x32xbf16> to vector<1x2x64x32xbf16>
    tpu.vector_store %arg16[%c1_32, %c0_33, %c0_34, %c0_35], %70 {strides = array<i32>} : memref<4x2x64x32xbf16, #tpu.memory_space<vmem>>, vector<1x2x64x32xbf16>,
    %71 = vector.extract_strided_slice %40 {offsets = [0, 32], sizes = [128, 32], strides = [1, 1]} : vector<128x128xf32> to vector<128x32xf32>
    %72 = arith.truncf %71 : vector<128x32xf32> to vector<128x32xbf16>
    %73 = vector.shape_cast %72 : vector<128x32xbf16> to vector<2x64x32xbf16>
    %c1_36 = arith.constant 1 : index
    %c0_37 = arith.constant 0 : index
    %c0_38 = arith.constant 0 : index
    %c0_39 = arith.constant 0 : index
    %74 = vector.load %arg17[%c1_36, %c0_37, %c0_38, %c0_39] : memref<4x2x64x32xbf16, #tpu.memory_space<vmem>>, vector<1x2x64x32xbf16>
    %75 = vector.shape_cast %74 : vector<1x2x64x32xbf16> to vector<2x64x32xbf16>
    %76 = vector.shape_cast %73 : vector<2x64x32xbf16> to vector<1x2x64x32xbf16>
    tpu.vector_store %arg17[%c1_36, %c0_37, %c0_38, %c0_39], %76 {strides = array<i32>} : memref<4x2x64x32xbf16, #tpu.memory_space<vmem>>, vector<1x2x64x32xbf16>,
    %77 = vector.extract_strided_slice %38 {offsets = [0, 64], sizes = [128, 32], strides = [1, 1]} : vector<128x128xf32> to vector<128x32xf32>
    %78 = arith.truncf %77 : vector<128x32xf32> to vector<128x32xbf16>
    %79 = vector.shape_cast %78 : vector<128x32xbf16> to vector<2x64x32xbf16>
    %c2 = arith.constant 2 : index
    %c0_40 = arith.constant 0 : index
    %c0_41 = arith.constant 0 : index
    %c0_42 = arith.constant 0 : index
    %80 = vector.load %arg15[%c2, %c0_40, %c0_41, %c0_42] : memref<4x2x64x32xbf16, #tpu.memory_space<vmem>>, vector<1x2x64x32xbf16>
    %81 = vector.shape_cast %80 : vector<1x2x64x32xbf16> to vector<2x64x32xbf16>
    %82 = vector.shape_cast %79 : vector<2x64x32xbf16> to vector<1x2x64x32xbf16>
    tpu.vector_store %arg15[%c2, %c0_40, %c0_41, %c0_42], %82 {strides = array<i32>} : memref<4x2x64x32xbf16, #tpu.memory_space<vmem>>, vector<1x2x64x32xbf16>,
    %83 = vector.extract_strided_slice %39 {offsets = [0, 64], sizes = [128, 32], strides = [1, 1]} : vector<128x128xf32> to vector<128x32xf32>
    %84 = arith.truncf %83 : vector<128x32xf32> to vector<128x32xbf16>
    %85 = vector.shape_cast %84 : vector<128x32xbf16> to vector<2x64x32xbf16>
    %c2_43 = arith.constant 2 : index
    %c0_44 = arith.constant 0 : index
    %c0_45 = arith.constant 0 : index
    %c0_46 = arith.constant 0 : index
    %86 = vector.load %arg16[%c2_43, %c0_44, %c0_45, %c0_46] : memref<4x2x64x32xbf16, #tpu.memory_space<vmem>>, vector<1x2x64x32xbf16>
    %87 = vector.shape_cast %86 : vector<1x2x64x32xbf16> to vector<2x64x32xbf16>
    %88 = vector.shape_cast %85 : vector<2x64x32xbf16> to vector<1x2x64x32xbf16>
    tpu.vector_store %arg16[%c2_43, %c0_44, %c0_45, %c0_46], %88 {strides = array<i32>} : memref<4x2x64x32xbf16, #tpu.memory_space<vmem>>, vector<1x2x64x32xbf16>,
    %89 = vector.extract_strided_slice %40 {offsets = [0, 64], sizes = [128, 32], strides = [1, 1]} : vector<128x128xf32> to vector<128x32xf32>
    %90 = arith.truncf %89 : vector<128x32xf32> to vector<128x32xbf16>
    %91 = vector.shape_cast %90 : vector<128x32xbf16> to vector<2x64x32xbf16>
    %c2_47 = arith.constant 2 : index
    %c0_48 = arith.constant 0 : index
    %c0_49 = arith.constant 0 : index
    %c0_50 = arith.constant 0 : index
    %92 = vector.load %arg17[%c2_47, %c0_48, %c0_49, %c0_50] : memref<4x2x64x32xbf16, #tpu.memory_space<vmem>>, vector<1x2x64x32xbf16>
    %93 = vector.shape_cast %92 : vector<1x2x64x32xbf16> to vector<2x64x32xbf16>
    %94 = vector.shape_cast %91 : vector<2x64x32xbf16> to vector<1x2x64x32xbf16>
    tpu.vector_store %arg17[%c2_47, %c0_48, %c0_49, %c0_50], %94 {strides = array<i32>} : memref<4x2x64x32xbf16, #tpu.memory_space<vmem>>, vector<1x2x64x32xbf16>,
    %95 = vector.extract_strided_slice %38 {offsets = [0, 96], sizes = [128, 32], strides = [1, 1]} : vector<128x128xf32> to vector<128x32xf32>
    %96 = arith.truncf %95 : vector<128x32xf32> to vector<128x32xbf16>
    %97 = vector.shape_cast %96 : vector<128x32xbf16> to vector<2x64x32xbf16>
    %c3 = arith.constant 3 : index
    %c0_51 = arith.constant 0 : index
    %c0_52 = arith.constant 0 : index
    %c0_53 = arith.constant 0 : index
    %98 = vector.load %arg15[%c3, %c0_51, %c0_52, %c0_53] : memref<4x2x64x32xbf16, #tpu.memory_space<vmem>>, vector<1x2x64x32xbf16>
    %99 = vector.shape_cast %98 : vector<1x2x64x32xbf16> to vector<2x64x32xbf16>
    %100 = vector.shape_cast %97 : vector<2x64x32xbf16> to vector<1x2x64x32xbf16>
    tpu.vector_store %arg15[%c3, %c0_51, %c0_52, %c0_53], %100 {strides = array<i32>} : memref<4x2x64x32xbf16, #tpu.memory_space<vmem>>, vector<1x2x64x32xbf16>,
    %101 = vector.extract_strided_slice %39 {offsets = [0, 96], sizes = [128, 32], strides = [1, 1]} : vector<128x128xf32> to vector<128x32xf32>
    %102 = arith.truncf %101 : vector<128x32xf32> to vector<128x32xbf16>
    %103 = vector.shape_cast %102 : vector<128x32xbf16> to vector<2x64x32xbf16>
    %c3_54 = arith.constant 3 : index
    %c0_55 = arith.constant 0 : index
    %c0_56 = arith.constant 0 : index
    %c0_57 = arith.constant 0 : index
    %104 = vector.load %arg16[%c3_54, %c0_55, %c0_56, %c0_57] : memref<4x2x64x32xbf16, #tpu.memory_space<vmem>>, vector<1x2x64x32xbf16>
    %105 = vector.shape_cast %104 : vector<1x2x64x32xbf16> to vector<2x64x32xbf16>
    %106 = vector.shape_cast %103 : vector<2x64x32xbf16> to vector<1x2x64x32xbf16>
    tpu.vector_store %arg16[%c3_54, %c0_55, %c0_56, %c0_57], %106 {strides = array<i32>} : memref<4x2x64x32xbf16, #tpu.memory_space<vmem>>, vector<1x2x64x32xbf16>,
    %107 = vector.extract_strided_slice %40 {offsets = [0, 96], sizes = [128, 32], strides = [1, 1]} : vector<128x128xf32> to vector<128x32xf32>
    %108 = arith.truncf %107 : vector<128x32xf32> to vector<128x32xbf16>
    %109 = vector.shape_cast %108 : vector<128x32xbf16> to vector<2x64x32xbf16>
    %c3_58 = arith.constant 3 : index
    %c0_59 = arith.constant 0 : index
    %c0_60 = arith.constant 0 : index
    %c0_61 = arith.constant 0 : index
    %110 = vector.load %arg17[%c3_58, %c0_59, %c0_60, %c0_61] : memref<4x2x64x32xbf16, #tpu.memory_space<vmem>>, vector<1x2x64x32xbf16>
    %111 = vector.shape_cast %110 : vector<1x2x64x32xbf16> to vector<2x64x32xbf16>
    %112 = vector.shape_cast %109 : vector<2x64x32xbf16> to vector<1x2x64x32xbf16>
    tpu.vector_store %arg17[%c3_58, %c0_59, %c0_60, %c0_61], %112 {strides = array<i32>} : memref<4x2x64x32xbf16, #tpu.memory_space<vmem>>, vector<1x2x64x32xbf16>,
    %c0_i32 = arith.constant 0 : i32
    %c4_i32 = arith.constant 4 : i32
    %113 = arith.addi %c0_i32, %c4_i32 : i32
    %c1_i32 = arith.constant 1 : i32
    scf.for %arg20 = %c0_i32 to %113 step %c1_i32  : i32 {
      %c1_i32_114 = arith.constant 1 : i32
      %178 = arith.muli %arg20, %c1_i32_114 : i32
      %c0_i32_115 = arith.constant 0 : i32
      %179 = arith.addi %c0_i32_115, %178 : i32
      %180 = arith.index_cast %179 : i32 to index
      %c0_116 = arith.constant 0 : index
      %c0_117 = arith.constant 0 : index
      %c0_118 = arith.constant 0 : index
      %181 = vector.load %arg15[%180, %c0_116, %c0_117, %c0_118] : memref<4x2x64x32xbf16, #tpu.memory_space<vmem>>, vector<1x2x64x32xbf16>
      %182 = vector.shape_cast %181 : vector<1x2x64x32xbf16> to vector<2x64x32xbf16>
      %183 = arith.index_cast %179 : i32 to index
      %c0_119 = arith.constant 0 : index
      %c0_120 = arith.constant 0 : index
      %c0_121 = arith.constant 0 : index
      %184 = vector.load %arg16[%183, %c0_119, %c0_120, %c0_121] : memref<4x2x64x32xbf16, #tpu.memory_space<vmem>>, vector<1x2x64x32xbf16>
      %185 = vector.shape_cast %184 : vector<1x2x64x32xbf16> to vector<2x64x32xbf16>
      %186 = arith.index_cast %179 : i32 to index
      %c0_122 = arith.constant 0 : index
      %c0_123 = arith.constant 0 : index
      %c0_124 = arith.constant 0 : index
      %187 = vector.load %arg17[%186, %c0_122, %c0_123, %c0_124] : memref<4x2x64x32xbf16, #tpu.memory_space<vmem>>, vector<1x2x64x32xbf16>
      %188 = vector.shape_cast %187 : vector<1x2x64x32xbf16> to vector<2x64x32xbf16>
      "tpu.trace_start"() <{level = 10 : i32, message = "bqd,bkd->bqk"}> : () -> ()
      %cst_125 = arith.constant dense<0.000000e+00> : vector<2x64x64xf32>
      %189 = tpu.matmul %182, %185, %cst_125 {dimension_numbers = #tpu.dot_dimension_numbers<[2], [2], [1], [1], [0, 0, 0, 1, 1, 1], [0], [0]>} : vector<2x64x32xbf16>, vector<2x64x32xbf16>, vector<2x64x64xf32> -> vector<2x64x64xf32>
      "tpu.trace_stop"() : () -> ()
      %190 = vector.shape_cast %7 : vector<64x64xf32> to vector<1x64x64xf32>
      %191 = vector.broadcast %190 : vector<1x64x64xf32> to vector<2x64x64xf32>
      %192 = arith.addf %189, %191 : vector<2x64x64xf32>
      %cst_126 = arith.constant dense<0xFF800000> : vector<2x64xf32>
      %193 = vector.multi_reduction <maximumf>, %192, %cst_126 [2] : vector<2x64x64xf32> to vector<2x64xf32>
      %194 = vector.shape_cast %193 : vector<2x64xf32> to vector<2x64x1xf32>
      %195 = vector.broadcast %194 : vector<2x64x1xf32> to vector<2x64x64xf32>
      %196 = arith.subf %192, %195 : vector<2x64x64xf32>
      %197 = math.exp %196 : vector<2x64x64xf32>
      %cst_127 = arith.constant dense<0.000000e+00> : vector<2x64xf32>
      %198 = vector.multi_reduction <add>, %197, %cst_127 [2] : vector<2x64x64xf32> to vector<2x64xf32>
      %199 = vector.shape_cast %198 : vector<2x64xf32> to vector<2x64x1xf32>
      %200 = tpu.reciprocal %199 {approx = true} : vector<2x64x1xf32> -> vector<2x64x1xf32>
      %201 = arith.truncf %197 : vector<2x64x64xf32> to vector<2x64x64xbf16>
      "tpu.trace_start"() <{level = 10 : i32, message = "bqk,bkd->bqd"}> : () -> ()
      %cst_128 = arith.constant dense<0.000000e+00> : vector<2x64x32xf32>
      %202 = tpu.matmul %201, %188, %cst_128 {dimension_numbers = #tpu.dot_dimension_numbers<[2], [1], [1], [2], [0, 0, 0, 1, 1, 2], [0], [0]>} : vector<2x64x64xbf16>, vector<2x64x32xbf16>, vector<2x64x32xf32> -> vector<2x64x32xf32>
      "tpu.trace_stop"() : () -> ()
      %203 = vector.broadcast %200 : vector<2x64x1xf32> to vector<2x64x32xf32>
      %204 = arith.mulf %202, %203 : vector<2x64x32xf32>
      %205 = arith.truncf %204 : vector<2x64x32xf32> to vector<2x64x32xbf16>
      %206 = arith.index_cast %179 : i32 to index
      %c0_129 = arith.constant 0 : index
      %c0_130 = arith.constant 0 : index
      %c0_131 = arith.constant 0 : index
      %207 = vector.load %arg18[%206, %c0_129, %c0_130, %c0_131] : memref<4x2x64x32xbf16, #tpu.memory_space<vmem>>, vector<1x2x64x32xbf16>
      %208 = vector.shape_cast %207 : vector<1x2x64x32xbf16> to vector<2x64x32xbf16>
      %209 = vector.shape_cast %205 : vector<2x64x32xbf16> to vector<1x2x64x32xbf16>
      tpu.vector_store %arg18[%206, %c0_129, %c0_130, %c0_131], %209 {strides = array<i32>} : memref<4x2x64x32xbf16, #tpu.memory_space<vmem>>, vector<1x2x64x32xbf16>,
    }
    %c4_i32_62 = arith.constant 4 : i32
    %c0_63 = arith.constant 0 : index
    %c0_64 = arith.constant 0 : index
    %c0_65 = arith.constant 0 : index
    %c0_66 = arith.constant 0 : index
    %114 = vector.load %arg18[%c0_63, %c0_64, %c0_65, %c0_66] : memref<4x2x64x32xbf16, #tpu.memory_space<vmem>>, vector<1x2x64x32xbf16>
    %115 = vector.shape_cast %114 : vector<1x2x64x32xbf16> to vector<2x64x32xbf16>
    %116 = vector.shape_cast %115 : vector<2x64x32xbf16> to vector<128x32xbf16>
    %c0_67 = arith.constant 0 : index
    %c0_68 = arith.constant 0 : index
    %117 = vector.load %arg19[%c0_67, %c0_68] : memref<128x128xbf16, #tpu.memory_space<vmem>>, vector<128x32xbf16>
    tpu.vector_store %arg19[%c0_67, %c0_68], %116 {strides = array<i32>} : memref<128x128xbf16, #tpu.memory_space<vmem>>, vector<128x32xbf16>,
    %c1_69 = arith.constant 1 : index
    %c0_70 = arith.constant 0 : index
    %c0_71 = arith.constant 0 : index
    %c0_72 = arith.constant 0 : index
    %118 = vector.load %arg18[%c1_69, %c0_70, %c0_71, %c0_72] : memref<4x2x64x32xbf16, #tpu.memory_space<vmem>>, vector<1x2x64x32xbf16>
    %119 = vector.shape_cast %118 : vector<1x2x64x32xbf16> to vector<2x64x32xbf16>
    %120 = vector.shape_cast %119 : vector<2x64x32xbf16> to vector<128x32xbf16>
    %c0_73 = arith.constant 0 : index
    %c32 = arith.constant 32 : index
    %121 = vector.load %arg19[%c0_73, %c32] : memref<128x128xbf16, #tpu.memory_space<vmem>>, vector<128x32xbf16>
    tpu.vector_store %arg19[%c0_73, %c32], %120 {strides = array<i32>} : memref<128x128xbf16, #tpu.memory_space<vmem>>, vector<128x32xbf16>,
    %c2_74 = arith.constant 2 : index
    %c0_75 = arith.constant 0 : index
    %c0_76 = arith.constant 0 : index
    %c0_77 = arith.constant 0 : index
    %122 = vector.load %arg18[%c2_74, %c0_75, %c0_76, %c0_77] : memref<4x2x64x32xbf16, #tpu.memory_space<vmem>>, vector<1x2x64x32xbf16>
    %123 = vector.shape_cast %122 : vector<1x2x64x32xbf16> to vector<2x64x32xbf16>
    %124 = vector.shape_cast %123 : vector<2x64x32xbf16> to vector<128x32xbf16>
    %c0_78 = arith.constant 0 : index
    %c64 = arith.constant 64 : index
    %125 = vector.load %arg19[%c0_78, %c64] : memref<128x128xbf16, #tpu.memory_space<vmem>>, vector<128x32xbf16>
    tpu.vector_store %arg19[%c0_78, %c64], %124 {strides = array<i32>} : memref<128x128xbf16, #tpu.memory_space<vmem>>, vector<128x32xbf16>,
    %c3_79 = arith.constant 3 : index
    %c0_80 = arith.constant 0 : index
    %c0_81 = arith.constant 0 : index
    %c0_82 = arith.constant 0 : index
    %126 = vector.load %arg18[%c3_79, %c0_80, %c0_81, %c0_82] : memref<4x2x64x32xbf16, #tpu.memory_space<vmem>>, vector<1x2x64x32xbf16>
    %127 = vector.shape_cast %126 : vector<1x2x64x32xbf16> to vector<2x64x32xbf16>
    %128 = vector.shape_cast %127 : vector<2x64x32xbf16> to vector<128x32xbf16>
    %c0_83 = arith.constant 0 : index
    %c96 = arith.constant 96 : index
    %129 = vector.load %arg19[%c0_83, %c96] : memref<128x128xbf16, #tpu.memory_space<vmem>>, vector<128x32xbf16>
    tpu.vector_store %arg19[%c0_83, %c96], %128 {strides = array<i32>} : memref<128x128xbf16, #tpu.memory_space<vmem>>, vector<128x32xbf16>,
    %c0_84 = arith.constant 0 : index
    %c0_85 = arith.constant 0 : index
    %130 = vector.load %arg19[%c0_84, %c0_85] : memref<128x128xbf16, #tpu.memory_space<vmem>>, vector<128x128xbf16>
    %c0_86 = arith.constant 0 : index
    %c0_87 = arith.constant 0 : index
    %131 = vector.load %arg4[%c0_86, %c0_87] : memref<128x128xbf16, #tpu.memory_space<vmem>>, vector<128x128xbf16>
    %cst_88 = arith.constant dense<0.000000e+00> : vector<128x128xf32>
    %132 = tpu.matmul %130, %131, %cst_88 {dimension_numbers = #tpu.dot_dimension_numbers<[1], [0], [0], [1], [0, 0, 1, 1], [], []>} : vector<128x128xbf16>, vector<128x128xbf16>, vector<128x128xf32> -> vector<128x128xf32>
    %c0_89 = arith.constant 0 : index
    %c0_90 = arith.constant 0 : index
    %133 = vector.load %arg5[%c0_89, %c0_90] : memref<1x128xf32, #tpu.memory_space<vmem>>, vector<1x128xf32>
    %134 = vector.broadcast %133 : vector<1x128xf32> to vector<128x128xf32>
    %135 = arith.addf %132, %134 : vector<128x128xf32>
    %136 = arith.addf %1, %135 : vector<128x128xf32>
    %c0_91 = arith.constant 0 : index
    %c0_92 = arith.constant 0 : index
    %137 = vector.load %arg8[%c0_91, %c0_92] : memref<1x128xf32, #tpu.memory_space<vmem>>, vector<1x128xf32>
    %c0_93 = arith.constant 0 : index
    %c0_94 = arith.constant 0 : index
    %138 = vector.load %arg9[%c0_93, %c0_94] : memref<1x128xf32, #tpu.memory_space<vmem>>, vector<1x128xf32>
    %cst_95 = arith.constant dense<0.000000e+00> : vector<128xf32>
    %139 = vector.multi_reduction <add>, %136, %cst_95 [1] : vector<128x128xf32> to vector<128xf32>
    %140 = vector.shape_cast %139 : vector<128xf32> to vector<128x1xf32>
    %cst_96 = arith.constant 1.280000e+02 : f32
    %141 = vector.broadcast %cst_96 : f32 to vector<128x1xf32>
    %142 = arith.divf %140, %141 : vector<128x1xf32>
    %143 = vector.broadcast %142 : vector<128x1xf32> to vector<128x128xf32>
    %144 = arith.subf %136, %143 : vector<128x128xf32>
    %145 = arith.mulf %144, %144 : vector<128x128xf32>
    %cst_97 = arith.constant dense<0.000000e+00> : vector<128xf32>
    %146 = vector.multi_reduction <add>, %145, %cst_97 [1] : vector<128x128xf32> to vector<128xf32>
    %147 = vector.shape_cast %146 : vector<128xf32> to vector<128x1xf32>
    %cst_98 = arith.constant 1.280000e+02 : f32
    %148 = vector.broadcast %cst_98 : f32 to vector<128x1xf32>
    %149 = arith.divf %147, %148 : vector<128x1xf32>
    %150 = vector.broadcast %142 : vector<128x1xf32> to vector<128x128xf32>
    %151 = arith.subf %136, %150 : vector<128x128xf32>
    %cst_99 = arith.constant 9.99999997E-7 : f32
    %152 = vector.broadcast %cst_99 : f32 to vector<128x1xf32>
    %153 = arith.addf %149, %152 : vector<128x1xf32>
    %154 = math.rsqrt %153 : vector<128x1xf32>
    %155 = vector.broadcast %154 : vector<128x1xf32> to vector<128x128xf32>
    %156 = arith.mulf %151, %155 : vector<128x128xf32>
    %157 = vector.broadcast %137 : vector<1x128xf32> to vector<128x128xf32>
    %158 = arith.mulf %156, %157 : vector<128x128xf32>
    %159 = vector.broadcast %138 : vector<1x128xf32> to vector<128x128xf32>
    %160 = arith.addf %158, %159 : vector<128x128xf32>
    %161 = arith.truncf %160 : vector<128x128xf32> to vector<128x128xbf16>
    %c0_100 = arith.constant 0 : index
    %c0_101 = arith.constant 0 : index
    %162 = vector.load %arg10[%c0_100, %c0_101] : memref<128x256xbf16, #tpu.memory_space<vmem>>, vector<128x256xbf16>
    %cst_102 = arith.constant dense<0.000000e+00> : vector<128x256xf32>
    %163 = tpu.matmul %161, %162, %cst_102 {dimension_numbers = #tpu.dot_dimension_numbers<[1], [0], [0], [1], [0, 0, 1, 1], [], []>} : vector<128x128xbf16>, vector<128x256xbf16>, vector<128x256xf32> -> vector<128x256xf32>
    %c0_103 = arith.constant 0 : index
    %c0_104 = arith.constant 0 : index
    %164 = vector.load %arg11[%c0_103, %c0_104] : memref<1x256xf32, #tpu.memory_space<vmem>>, vector<1x256xf32>
    %165 = vector.broadcast %164 : vector<1x256xf32> to vector<128x256xf32>
    %166 = arith.addf %163, %165 : vector<128x256xf32>
    %cst_105 = arith.constant 0.000000e+00 : f32
    %167 = vector.broadcast %cst_105 : f32 to vector<128x256xf32>
    %168 = arith.maximumf %166, %167 : vector<128x256xf32>
    %169 = arith.truncf %168 : vector<128x256xf32> to vector<128x256xbf16>
    %c0_106 = arith.constant 0 : index
    %c0_107 = arith.constant 0 : index
    %170 = vector.load %arg12[%c0_106, %c0_107] : memref<256x128xbf16, #tpu.memory_space<vmem>>, vector<256x128xbf16>
    %cst_108 = arith.constant dense<0.000000e+00> : vector<128x128xf32>
    %171 = tpu.matmul %169, %170, %cst_108 {dimension_numbers = #tpu.dot_dimension_numbers<[1], [0], [0], [1], [0, 0, 1, 1], [], []>} : vector<128x256xbf16>, vector<256x128xbf16>, vector<128x128xf32> -> vector<128x128xf32>
    %c0_109 = arith.constant 0 : index
    %c0_110 = arith.constant 0 : index
    %172 = vector.load %arg13[%c0_109, %c0_110] : memref<1x128xf32, #tpu.memory_space<vmem>>, vector<1x128xf32>
    %173 = vector.broadcast %172 : vector<1x128xf32> to vector<128x128xf32>
    %174 = arith.addf %171, %173 : vector<128x128xf32>
    %175 = arith.addf %136, %174 : vector<128x128xf32>
    %176 = vector.shape_cast %175 : vector<128x128xf32> to vector<2x64x128xf32>
    %c0_111 = arith.constant 0 : index
    %c0_112 = arith.constant 0 : index
    %c0_113 = arith.constant 0 : index
    %177 = vector.load %arg14[%c0_111, %c0_112, %c0_113] : memref<2x64x128xf32, #tpu.memory_space<vmem>>, vector<2x64x128xf32>
    tpu.vector_store %arg14[%c0_111, %c0_112, %c0_113], %176 {strides = array<i32>} : memref<2x64x128xf32, #tpu.memory_space<vmem>>, vector<2x64x128xf32>,
    return
  }
  func.func @transform_0(%arg0: i32) -> (i32, i32, i32) {
    %c0_i32 = arith.constant 0 : i32
    %c0_i32_0 = arith.constant 0 : i32
    %c0_i32_1 = arith.constant 0 : i32
    return %arg0, %c0_i32, %c0_i32_0 : i32, i32, i32
  }
  func.func @transform_1(%arg0: i32) -> (i32, i32) {
    %c0_i32 = arith.constant 0 : i32
    %c0_i32_0 = arith.constant 0 : i32
    %c0_i32_1 = arith.constant 0 : i32
    return %c0_i32, %c0_i32_0 : i32, i32
  }
  func.func @transform_2(%arg0: i32) -> (i32, i32) {
    %c0_i32 = arith.constant 0 : i32
    %c0_i32_0 = arith.constant 0 : i32
    %c0_i32_1 = arith.constant 0 : i32
    return %c0_i32, %c0_i32_0 : i32, i32
  }
  func.func @transform_3(%arg0: i32) -> (i32, i32) {
    %c0_i32 = arith.constant 0 : i32
    %c0_i32_0 = arith.constant 0 : i32
    %c0_i32_1 = arith.constant 0 : i32
    return %c0_i32, %c0_i32_0 : i32, i32
  }
  func.func @transform_4(%arg0: i32) -> (i32, i32) {
    %c0_i32 = arith.constant 0 : i32
    %c0_i32_0 = arith.constant 0 : i32
    %c0_i32_1 = arith.constant 0 : i32
    return %c0_i32, %c0_i32_0 : i32, i32
  }
  func.func @transform_5(%arg0: i32) -> (i32, i32) {
    %c0_i32 = arith.constant 0 : i32
    %c0_i32_0 = arith.constant 0 : i32
    %c0_i32_1 = arith.constant 0 : i32
    return %c0_i32, %c0_i32_0 : i32, i32
  }
  func.func @transform_6(%arg0: i32) -> (i32, i32) {
    %c0_i32 = arith.constant 0 : i32
    %c0_i32_0 = arith.constant 0 : i32
    %c0_i32_1 = arith.constant 0 : i32
    return %c0_i32, %c0_i32_0 : i32, i32
  }
  func.func @transform_7(%arg0: i32) -> (i32, i32) {
    %c0_i32 = arith.constant 0 : i32
    %c0_i32_0 = arith.constant 0 : i32
    %c0_i32_1 = arith.constant 0 : i32
    return %c0_i32, %c0_i32_0 : i32, i32
  }
  func.func @transform_8(%arg0: i32) -> (i32, i32) {
    %c0_i32 = arith.constant 0 : i32
    %c0_i32_0 = arith.constant 0 : i32
    %c0_i32_1 = arith.constant 0 : i32
    return %c0_i32, %c0_i32_0 : i32, i32
  }
  func.func @transform_9(%arg0: i32) -> (i32, i32) {
    %c0_i32 = arith.constant 0 : i32
    %c0_i32_0 = arith.constant 0 : i32
    %c0_i32_1 = arith.constant 0 : i32
    return %c0_i32, %c0_i32_0 : i32, i32
  }
  func.func @transform_10(%arg0: i32) -> (i32, i32) {
    %c0_i32 = arith.constant 0 : i32
    %c0_i32_0 = arith.constant 0 : i32
    %c0_i32_1 = arith.constant 0 : i32
    return %c0_i32, %c0_i32_0 : i32, i32
  }
  func.func @transform_11(%arg0: i32) -> (i32, i32) {
    %c0_i32 = arith.constant 0 : i32
    %c0_i32_0 = arith.constant 0 : i32
    %c0_i32_1 = arith.constant 0 : i32
    return %c0_i32, %c0_i32_0 : i32, i32
  }
  func.func @transform_12(%arg0: i32) -> (i32, i32) {
    %c0_i32 = arith.constant 0 : i32
    %c0_i32_0 = arith.constant 0 : i32
    %c0_i32_1 = arith.constant 0 : i32
    return %c0_i32, %c0_i32_0 : i32, i32
  }
  func.func @transform_13(%arg0: i32) -> (i32, i32, i32) {
    %c0_i32 = arith.constant 0 : i32
    %c0_i32_0 = arith.constant 0 : i32
    %c0_i32_1 = arith.constant 0 : i32
    return %arg0, %c0_i32, %c0_i32_0 : i32, i32, i32
  }
}

</mosaic_0001>

<bundles_post_ra>
// kernel: encoder_layer_fwd.1
= control target key start
LH: loop header
LB: loop body
LE: loop exit
PB: predicated region body
PF: predicated region fallthrough
CT: control target
= control target key end

     0   :  { %s5973_s0 = inlined_call_operand.hbm [shape: f32[4,64,128], index: 0, kind: input, shape index: {}]   ;;  %s5974_s1 = inlined_call_operand.hbm [shape: bf16[128,384], index: 1, kind: input, shape index: {}]   ;;  %s5975_s2 = inlined_call_operand.vmem [shape: f32[1,384], index: 2, kind: input, shape index: {}]   ;;  %s5976_s3 = inlined_call_operand.hbm [shape: bf16[128,128], index: 3, kind: input, shape index: {}]   ;;  %s5977_s4 = inlined_call_operand.vmem [shape: f32[1,128], index: 4, kind: input, shape index: {}]   ;;  %s5978_s5 = inlined_call_operand.vmem [shape: f32[1,128], index: 5, kind: input, shape index: {}]   ;;  %s5979_s6 = inlined_call_operand.vmem [shape: f32[1,128], index: 6, kind: input, shape index: {}]   ;;  %s5980_s7 = inlined_call_operand.vmem [shape: f32[1,128], index: 7, kind: input, shape index: {}]   ;;  %s5981_s8 = inlined_call_operand.vmem [shape: f32[1,128], index: 8, kind: input, shape index: {}]   ;;  %s5982_s9 = inlined_call_operand.hbm [shape: bf16[128,256], index: 9, kind: input, shape index: {}]   ;;  %s5983_s10 = inlined_call_operand.vmem [shape: f32[1,256], index: 10, kind: input, shape index: {}]   ;;  %s5984_s11 = inlined_call_operand.hbm [shape: bf16[256,128], index: 11, kind: input, shape index: {}]   ;;  %s5985_s12 = inlined_call_operand.hbm [shape: f32[1,128], index: 12, kind: input, shape index: {}]   ;;  %s5986_s13 = inlined_call_operand.hbm [shape: f32[4,64,128], index: 13, kind: output, shape index: {}]  }
   0x1   :  { %5993 = sst [smem:[#allocation24_spill]] %s5974_s1 }
   0x2   :  { %5994 = sst [smem:[#allocation25_spill]] %s5977_s4 }
   0x3   :  { %5995 = sst [smem:[#allocation26_spill]] %s5980_s7 }
   0x4   :  { %5996 = sst [smem:[#allocation27_spill]] %s5981_s8 }
   0x5   :  { %5997 = sst [smem:[#allocation28_spill]] %s5982_s9 }
   0x6   :  { %5998 = sst [smem:[#allocation29_spill]] %s5983_s10 }
   0x7   :  { %5999 = sst [smem:[#allocation30_spill]] %s5986_s13 }
   0x8   :  { %18 = vsyncpa [#allocation8], 0 }
   0x9   :  { %20 = vsyncpa [#allocation8 + $0x1], 0 }
   0xa   :  { %21 = vsyncpa [#allocation11], 0 }
   0xb   :  { %22 = vsyncpa [#allocation14], 0 }
   0xc   :  { %23 = vsyncpa [#allocation17], 0 }
   0xd   :  { %24 = vsyncpa [#allocation9], 0 }
   0xe   :  { %26 = vsyncpa [#allocation9 + $0x1], 0  ;;  %s4486_s25 = smov 0   ;;  %s4488_s26 = smov 0  }
   0xf   :  { %s4490_s27 = smov 0   ;;  %s4492_s28 = smov 0  }
  0x10 LB: > { %s4396_s29 = smov [#allocation10]   ;;  %s4507_s14 = sadd.s32 4294967295, %s4390_s28   ;;  %s4390_s28 = sphi %s4492_s28, %s6030_s28   ;;  %s4386_s27 = sphi %s4490_s27, %s6029_s27   ;;  %s4382_s26 = sphi %s4488_s26, %s6028_s26   ;;  %s4378_s25 = sphi %s4486_s25, %s6027_s25  }
  0x11   : > { %s353_s30 = sshll.u32 %s4396_s29, 4  ;;  %p3408_p0 = scmp.ge.s32.totalorder %s4390_s28, 1  ;;  %s4512_s30 = int_to_ptr.vmem [resolvable:$true] %s353_s30 }
  0x12   : > { %p5988_p1 = scmp.eq.s32.totalorder %s4507_s14, 0  ;;  %p341_p2 = scmp.lt.s32.totalorder %s4390_s28, 3 }
  0x13   : > { %s4397_s16 = smov [#allocation13]   ;;  %s4398_s19 = smov [#allocation12]  }
  0x14   : > { %p4514_p3 = pnand %p3408_p0, %p341_p2  ;;  %s397_s17 = sshll.u32 %s4397_s16, 4  ;;  %s4527_s17 = int_to_ptr.vmem [resolvable:$true] %s397_s17 }
  0x15   : > { %s4529_s20 = sshll.u32 %s4398_s19, 4  ;;  %s6002_s1 = sld [smem:[#allocation24_spill]]  ;;  %s370_s20 = int_to_ptr.vmem [resolvable:$true] %s4529_s20 }
  0x16   : > { %s6000_s15 = scalar_select %p4514_p3, 1, 0 }
  0x17   : > { %p3836_p5 = pneg %p4514_p3 }
  0x19   : > { %p4523_p6 = pnand %p3836_p5, %p5988_p1 }
  0x1b   : > { %s4138_s23 = scalar_lea.hbm %s6002_s1, 3072  ;;  %p4539_p8 = pneg %p4523_p6 }
  0x1c   : > { %p4139_p7 = scmp.ne.s32.totalorder %s6002_s1, %s4138_s23  ;;  %p4145_p11 = scmp.lt.u32.totalorder %s4138_s23, %s6002_s1 }
  0x1e   : > { %p4141_p9 = pnand %p4539_p8, %p4139_p7 }
  0x20   : > { %p4142_p10 = pneg %p4141_p9 }
  0x22   : > { %p4147_p12 = pnand %p4145_p11, %p4142_p10 }
  0x24   : > { %4150 = shalt.err (!%p4147_p12)
}
  0x25   : > { %s4151_s21 = scalar_lea.vmem %s4512_s30, 3072  ;;  %p4159_p5 = scmp.lt.s32.totalorder %s4512_s30, %s4512_s30 }
  0x26   : > { %p4152_p13 = scmp.ne.s32.totalorder %s4512_s30, %s4151_s21  ;;  %p4160_p4 = scmp.lt.s32.totalorder %s4151_s21, %s4151_s21 }
  0x28   : > { %p4154_p0 = pnand %p4152_p13, %p4539_p8  ;;  %p4161_p7 = por %p4160_p4, %p4159_p5 }
  0x2a   : > { %p4155_p2 = pneg %p4154_p0 }
  0x2c   : > { %p4162_p9 = pnand %p4161_p7, %p4155_p2 }
  0x2e   : > { %4165 = shalt.err (!%p4162_p9)
}
  0x2f   : > { %s4399_s22 = smov 192   ;;  %s4400_s13 = smov 12  }
  0x30   : > { %3839 = dma.hbm_to_vmem [thread:$0]  (!%p4523_p6), %s6002_s1, 3072, %s4512_s30, [#allocation11], %s4399_s22, %s4399_s22, %s4400_s13  }
  0x31   : > { %s6004_s9 = sld [smem:[#allocation28_spill]] }
  0x37   : > { %s4166_s10 = scalar_lea.hbm %s6004_s9, 2048 }
  0x38   : > { %p4167_p4 = scmp.ne.s32.totalorder %s6004_s9, %s4166_s10  ;;  %p4173_p12 = scmp.lt.u32.totalorder %s4166_s10, %s6004_s9 }
  0x3a   : > { %p4169_p10 = pnand %p4167_p4, %p4539_p8 }
  0x3c   : > { %p4170_p11 = pneg %p4169_p10 }
  0x3e   : > { %p4175_p13 = pnand %p4173_p12, %p4170_p11 }
  0x40   : > { %4178 = shalt.err (!%p4175_p13)
}
  0x41   : > { %s4179_s30 = scalar_lea.vmem %s4527_s17, 2048  ;;  %p4187_p7 = scmp.lt.s32.totalorder %s4527_s17, %s4527_s17 }
  0x42   : > { %p4180_p0 = scmp.ne.s32.totalorder %s4527_s17, %s4179_s30  ;;  %p4188_p9 = scmp.lt.s32.totalorder %s4179_s30, %s4179_s30 }
  0x44   : > { %p4182_p2 = pnand %p4180_p0, %p4539_p8  ;;  %p4189_p4 = por %p4188_p9, %p4187_p7 }
  0x46   : > { %p4183_p5 = pneg %p4182_p2 }
  0x48   : > { %p4190_p10 = pnand %p4189_p4, %p4183_p5 }
  0x4a   : > { %4193 = shalt.err (!%p4190_p10)
}
  0x4b   : > { %s5990_s7 = smov 128   ;;  %s5991_s4 = smov 8  }
  0x4c   : > { %3845 = dma.hbm_to_vmem [thread:$0]  (!%p4523_p6), %s6004_s9, 2048, %s4527_s17, [#allocation14], %s5990_s7, %s5990_s7, %s5991_s4  }
  0x4d   : > { %s4194_s23 = scalar_lea.hbm %s5976_s3, 1024 }
  0x4e   : > { %p4195_p11 = scmp.ne.s32.totalorder %s5976_s3, %s4194_s23  ;;  %p4201_p0 = scmp.lt.u32.totalorder %s4194_s23, %s5976_s3 }
  0x50   : > { %p4197_p12 = pnand %p4195_p11, %p4539_p8 }
  0x52   : > { %p4198_p13 = pneg %p4197_p12 }
  0x54   : > { %p4203_p2 = pnand %p4201_p0, %p4198_p13 }
  0x56   : > { %4206 = shalt.err (!%p4203_p2)
}
  0x57   : > { %s4207_s30 = scalar_lea.vmem %s370_s20, 1024  ;;  %p4215_p4 = scmp.lt.s32.totalorder %s370_s20, %s370_s20 }
  0x58   : > { %p4208_p5 = scmp.ne.s32.totalorder %s370_s20, %s4207_s30  ;;  %p4216_p10 = scmp.lt.s32.totalorder %s4207_s30, %s4207_s30 }
  0x5a   : > { %p4210_p7 = pnand %p4208_p5, %p4539_p8  ;;  %p4217_p1 = por %p4216_p10, %p4215_p4 }
  0x5c   : > { %p4211_p9 = pneg %p4210_p7 }
  0x5e   : > { %p4218_p3 = pnand %p4217_p1, %p4211_p9 }
  0x60   : > { %4221 = shalt.err (!%p4218_p3)
}
  0x61   : > { %s4403_s17 = smov 64   ;;  %s4404_s8 = smov 4  }
  0x62   : > { %3842 = dma.hbm_to_vmem [thread:$0]  (!%p4523_p6), %s5976_s3, 1024, %s370_s20, [#allocation11], %s4403_s17, %s4403_s17, %s4404_s8  }
  0x63   : > { %s4405_s13 = smov [#allocation15]   ;;  %s4406_s24 = smov [#allocation16]  }
  0x64   : > { %s413_s23 = sshll.u32 %s4405_s13, 4  ;;  %s427_s29 = sshll.u32 %s4406_s24, 4  ;;  %s414_s23 = int_to_ptr.vmem [resolvable:$true] %s413_s23  ;;  %s428_s29 = int_to_ptr.vmem [resolvable:$true] %s427_s29 }
  0x65   : > { %s4222_s30 = scalar_lea.hbm %s5984_s11, 2048 }
  0x66   : > { %p4223_p1 = scmp.ne.s32.totalorder %s5984_s11, %s4222_s30  ;;  %p4229_p12 = scmp.lt.u32.totalorder %s4222_s30, %s5984_s11 }
  0x68   : > { %p4225_p3 = pnand %p4223_p1, %p4539_p8 }
  0x6a   : > { %p4226_p11 = pneg %p4225_p3 }
  0x6c   : > { %p4231_p13 = pnand %p4229_p12, %p4226_p11 }
  0x6e   : > { %4234 = shalt.err (!%p4231_p13)
}
  0x6f   : > { %s4235_s20 = scalar_lea.vmem %s414_s23, 2048  ;;  %p4243_p7 = scmp.lt.s32.totalorder %s414_s23, %s414_s23 }
  0x70   : > { %p4236_p0 = scmp.ne.s32.totalorder %s414_s23, %s4235_s20  ;;  %p4244_p9 = scmp.lt.s32.totalorder %s4235_s20, %s4235_s20 }
  0x72   : > { %p4238_p2 = pnand %p4236_p0, %p4539_p8  ;;  %p4245_p4 = por %p4244_p9, %p4243_p7 }
  0x74   : > { %p4239_p5 = pneg %p4238_p2 }
  0x76   : > { %p4246_p10 = pnand %p4245_p4, %p4239_p5 }
  0x78   : > { %4249 = shalt.err (!%p4246_p10)
}
  0x79   : > { %3848 = dma.hbm_to_vmem [thread:$0]  (!%p4523_p6), %s5984_s11, 2048, %s414_s23, [#allocation14], %s4403_s17, %s4403_s17, %s4404_s8  }
  0x7a   : > { %s4250_s10 = scalar_lea.hbm %s5985_s12, 16 }
  0x7b   : > { %p4251_p1 = scmp.ne.s32.totalorder %s5985_s12, %s4250_s10  ;;  %p4257_p12 = scmp.lt.u32.totalorder %s4250_s10, %s5985_s12 }
  0x7d   : > { %p4253_p3 = pnand %p4251_p1, %p4539_p8 }
  0x7f   : > { %p4254_p11 = pneg %p4253_p3 }
  0x81   : > { %p4259_p13 = pnand %p4257_p12, %p4254_p11 }
  0x83   : > { %4262 = shalt.err (!%p4259_p13)
}
  0x84   : > { %s4263_s21 = scalar_lea.vmem %s428_s29, 16  ;;  %s4270_s17 = scalar_lea.vmem %s428_s29, 32 }
  0x85   : > { %p4264_p0 = scmp.ne.s32.totalorder %s428_s29, %s4263_s21  ;;  %p4271_p7 = scmp.lt.s32.totalorder %s428_s29, %s428_s29 }
  0x86   : > { %p4272_p9 = scmp.lt.s32.totalorder %s4270_s17, %s4263_s21 }
  0x87   : > { %p4266_p2 = pnand %p4264_p0, %p4539_p8 }
  0x88   : > { %p4273_p4 = por %p4272_p9, %p4271_p7 }
  0x89   : > { %p4267_p5 = pneg %p4266_p2 }
  0x8b   : > { %p4274_p10 = pnand %p4273_p4, %p4267_p5 }
  0x8d   : > { %4277 = shalt.err (!%p4274_p10)
}
  0x8e   : > { %3851 = dma.hbm_to_vmem [thread:$0]  (!%p4523_p6), %s5985_s12, 16, %s428_s29, [#allocation17]  }
  0x8f   : > { %s3407_s16 = sadd.s32 4294967294, %s4390_s28   ;;  %s4643_s18 = sadd.s32 1, %s4390_s28  }
  0x90   : > { %s39_s30 = sadd.s32 1, %s4386_s27  ;;  %s36_s20 = ssub.s32 %s4390_s28, %s4643_s18 }
  0x91   : > { %p46_p8 = scmp.ne.s32.totalorder %s4386_s27, %s4382_s26  ;;  %p37_p1 = scmp.eq.s32.totalorder %s36_s20, 0 }
  0x92   : > { %p47_p3 = scmp.eq.s32.totalorder %s4390_s28, 0  ;;  %p52_p11 = scmp.ne.s32.totalorder %s4382_s26, %s4378_s25 }
  0x93   : > { %p328_p12 = scmp.eq.s32.totalorder %s4507_s14, 1  ;;  %p6005_p0 = scmp.eq.s32.totalorder %s4507_s14, 0 }
  0x94   : > { %s4655_s7 = scalar_select %p37_p1, %s4386_s27, %s39_s30  }
  0x95   : > { %p48_p13 = por %p47_p3, %p46_p8  ;;  %p4659_p2 = por %p6005_p0, %p52_p11 }
  0x96   : > { %p4663_p6 = por %p328_p12, %p46_p8  ;;  %p334_p5 = scmp.eq.s32.totalorder %s3407_s16, 1 }
  0x97   : > { %p3865_p7 = scmp.lt.s32.totalorder %s4390_s28, 2  ;;  %s438_s1 = sand.u32 1, %s4386_s27  }
  0x98   : > { %s6007_s29 = scalar_select %p4663_p6, 1, 0 }
  0x99   : > { %p4669_p9 = por %p334_p5, %p52_p11  ;;  %s3415_s10 = sshll.u32 %s438_s1, 7 }
  0x9a   : > { %s3525_s22 = sshll.u32 %s4390_s28, 11  ;;  %s442_s21 = scalar_lea.vmem [#allocation7], %s3415_s10 }
  0x9b   : > { %s6008_s9 = scalar_select %p4669_p9, 1, 0 }
  0x9c   : > { %s4677_s19 = scalar_lea.hbm %s5973_s0, %s3525_s22  ;;  %s450_s17 = sshll.u32 %s442_s21, 4  ;;  %s4683_s17 = int_to_ptr.vmem [resolvable:$true] %s450_s17 }
  0x9d   : > { %p4679_p4 = pnand %p3865_p7, %p48_p13  ;;  %s4685_s23 = scalar_lea.sflag [#allocation8], %s438_s1 }
  0x9e   : > { %s4278_s16 = scalar_lea.hbm %s4677_s19, 2048  ;;  %s4283_s10 = scalar_lea.hbm %s5973_s0, 4096 }
  0x9f   : > { %p4279_p10 = scmp.ne.s32.totalorder %s4677_s19, %s4278_s16  ;;  %p4280_p8 = pneg %p4679_p4 }
  0xa0   : > { %p4284_p11 = scmp.lt.u32.totalorder %s4677_s19, %s5973_s0  ;;  %p4285_p12 = scmp.lt.u32.totalorder %s4283_s10, %s4278_s16 }
  0xa1   : > { %p4281_p1 = pnand %p4280_p8, %p4279_p10  ;;  %p4287_p0 = scmp.lt.u32.totalorder %s4278_s16, %s4677_s19 }
  0xa2   : > { %p4286_p13 = por %p4285_p12, %p4284_p11 }
  0xa3   : > { %p4282_p3 = pneg %p4281_p1 }
  0xa4   : > { %p4288_p5 = por %p4287_p0, %p4286_p13 }
  0xa6   : > { %p4289_p7 = pnand %p4288_p5, %p4282_p3 }
  0xa8   : > { %4292 = shalt.err (!%p4289_p7)
}
  0xa9   : > { %s4293_s1 = scalar_lea.vmem %s4683_s17, 2048  ;;  %s4407_s24 = smov [#allocation7]  }
  0xaa   : > { %p4294_p10 = scmp.ne.s32.totalorder %s4683_s17, %s4293_s1  ;;  %s4298_s21 = sshll.u32 %s4407_s24, 4  ;;  %s4299_s21 = int_to_ptr.vmem [resolvable:$false] %s4298_s21 }
  0xab   : > { %s4300_s30 = scalar_lea.vmem %s4299_s21, 4096  ;;  %p4301_p6 = scmp.lt.s32.totalorder %s4683_s17, %s4299_s21 }
  0xac   : > { %p4296_p1 = pnand %p4294_p10, %p4280_p8  ;;  %p4302_p11 = scmp.lt.s32.totalorder %s4300_s30, %s4293_s1 }
  0xae   : > { %p4297_p9 = pneg %p4296_p1  ;;  %p4303_p12 = por %p4302_p11, %p4301_p6 }
  0xb0   : > { %p4304_p13 = pnand %p4303_p12, %p4297_p9 }
  0xb2   : > { %4307 = shalt.err (!%p4304_p13)
}
  0xb3   : > { %s6010_s16 = smov 8   ;;  %s6011_s20 = smov 128  }
  0xb4   : > { %3855 = dma.hbm_to_vmem [thread:$0]  (!%p4679_p4), %s4677_s19, 2048, %s4683_s17, %s4685_s23, %s6011_s20, %s6011_s20, %s6010_s16  }
  0xb5   : > { %p6012_p8 = scmp.ne.s32.totalorder %s6000_s15, 0 }
  0xb6   : > { %s4719_s10 = sand.u32 (!%p6012_p8), 1, %s4382_s26  }
  0xb7   : > { %462 = sbr.rel (%p6012_p8) target bundleno = 2845 (0xb1d), region = 72  ;;  %s3420_s22 = sshll.u32 (!%p6012_p8), %s4719_s10, 7 }
  0xb8   : > { %s465_s13 = scalar_lea.sflag (!%p6012_p8), [#allocation8], %s4719_s10  ;;  %s4725_s8 = scalar_lea.vmem (!%p6012_p8), [#allocation7], %s3420_s22 }
  0xbe   : > { %4357 = dma.done.wait (%p4659_p2), %s465_s13, 2048  }
  0xbf   : > { %4359 = vsyncadd (%p4659_p2), %s465_s13, 4294965248  ;;  %p6013_p6 = scmp.eq.s32.totalorder %s4507_s14, 0 }
  0xc1   : > { %4361 = dma.done.wait (%p6013_p6), [#allocation11], 4096   ;;  %p6014_p9 = pmov %p6013_p6 }
  0xc2   : > { %p6015_p4 = pmov %p6013_p6 }
  0xc3   : > { %4363 = vsyncadd (%p6014_p9), [#allocation11], 4294963200 }
  0xc4   : > { %4365 = dma.done.wait (%p6015_p4), [#allocation14], 4096   ;;  %p6016_p3 = pmov %p6015_p4 }
  0xc6   : > { %4367 = vsyncadd (%p6016_p3), [#allocation14], 4294963200  ;;  %p6017_p0 = pmov %p6016_p3 }
  0xc8   : > { %4369 = dma.done.wait (%p6017_p0), [#allocation17], 16   ;;  %p6018_p5 = pmov %p6017_p0 }
  0xc9   : > { %v4744_v0 = vld [vmem:[%s4725_s8] sm:$0xff]  ;;  %v4747_v1 = vld [vmem:[%s4725_s8 + $0x10] sm:$0xff]  ;;  %v4752_v2 = vld [vmem:[%s4725_s8 + $0x8] sm:$0xff]  ;;  %vm1203_vm8 = vcmask 261120   ;;  %s4410_s24 = smov 96   ;;  %s4411_s21 = smov 64  }
  0xca   : > { %4371 = vsyncadd (%p6018_p5), [#allocation17], 4294967280  ;;  %579 = vadd.xlane.f32.xlu0 %v4744_v0  ;;  %583 = vadd.xlane.f32.xlu1 %v4747_v1  ;;  %v4755_v3 = vld [vmem:[%s4725_s8 + $0x18] sm:$0xff]  ;;  %v4758_v4 = vld [vmem:[%s4725_s8 + $0x20] sm:$0xff]  ;;  %s4412_s30 = smov 32   ;;  %s5327_s16 = scalar_lea.vmem [#allocation18], %s3420_s22 }
  0xcb   : > { %v4763_v5 = vld [vmem:[%s4725_s8 + $0x28] sm:$0xff]  ;;  %v4766_v6 = vld [vmem:[%s4725_s8 + $0x30] sm:$0xff]  ;;  %v4769_v7 = vld [vmem:[%s4725_s8 + $0x38] sm:$0xff]  ;;  %s5329_s20 = smov 0  }
  0xcc   : > { %v4774_v8 = vld [vmem:[%s4725_s8 + $0x40] sm:$0xff]  ;;  %v4777_v9 = vld [vmem:[%s4725_s8 + $0x48] sm:$0xff]  ;;  %v4784_v10 = vld [vmem:[%s4725_s8 + $0x50] sm:$0xff] }
  0xcd   : > { %v4787_v11 = vld [vmem:[%s4725_s8 + $0x58] sm:$0xff]  ;;  %v4792_v12 = vld [vmem:[%s4725_s8 + $0x60] sm:$0xff]  ;;  %v4795_v13 = vld [vmem:[%s4725_s8 + $0x68] sm:$0xff] }
  0xce   : > { %581 = vadd.xlane.f32.xlu0 %v4752_v2  ;;  %585 = vadd.xlane.f32.xlu1 %v4755_v3  ;;  %v4800_v14 = vld [vmem:[%s4725_s8 + $0x70] sm:$0xff]  ;;  %v4803_v15 = vld [vmem:[%s4725_s8 + $0x78] sm:$0xff]  ;;  %v3932_v17 = vld [vmem:[#allocation10] ss:$12 sps:$4 sm:$0xff]  }
  0xcf   : > { %v3930_v16 = vld [vmem:[#allocation10 + $0x4] ss:$12 sps:$4 sm:$0xff]   ;;  %v3933_v18 = vld [vmem:[#allocation10 + $0x1c] ss:$12 sps:$4 sm:$0xff]  }
  0xd0   : > { %v3935_v19 = vld [vmem:[#allocation10 + $0x8] ss:$12 sps:$4 sm:$0xff]   ;;  %985 = vmatprep.subr.bf16.mxu0 %v3930_v16  ;;  %v3936_v58 = vld [vmem:[#allocation10 + $0x18] ss:$12 sps:$4 sm:$0xff]  }
  0xd1   : > { %986 = vmatpush1.bf16.msra.mxu0 %v3932_v17  ;;  %3660 = vmatprep.subr.bf16.mxu1 %v3935_v19  ;;  %v3937_v16 = vld [vmem:[#allocation10 + $0x34] ss:$12 sps:$4 sm:$0xff]  }
  0xd2   : > { %587 = vadd.xlane.f32.xlu0 %v4758_v4  ;;  %589 = vadd.xlane.f32.xlu1 %v4763_v5  ;;  %v3939_v17 = vld [vmem:[#allocation10 + $0x20] ss:$12 sps:$4 sm:$0xff]  }
  0xd3   : > { %987 = vmatprep.subr.bf16.mxu0 %v3933_v18  ;;  %3661 = vmatpush3.bf16.msra.mxu1 %v3935_v19 }
  0xd4   : > { %3662 = vmatprep.subr.bf16.mxu1 %v3939_v17 }
  0xd5   : > { %988 = vmatpush1.bf16.msra.mxu0 %v3936_v58  ;;  %v3952_v58 = vld [vmem:[#allocation10 + $0x78] ss:$12 sps:$4 sm:$0xff]  }
  0xd6   : > { %591 = vadd.xlane.f32.xlu0 %v4766_v6  ;;  %593 = vadd.xlane.f32.xlu1 %v4769_v7 }
  0xd7   : > { %989 = vmatprep.subr.bf16.mxu0 %v3937_v16  ;;  %3663 = vmatpush3.bf16.msra.mxu1 %v3939_v17  ;;  %v3960_v16 = vld [vmem:[#allocation10 + $0xa8] ss:$12 sps:$4 sm:$0xff]   ;;  %v3961_v17 = vld [vmem:[#allocation10 + $0xb0] ss:$12 sps:$4 sm:$0xff]  }
  0xda   : > { %595 = vadd.xlane.f32.xlu0 %v4774_v8  ;;  %597 = vadd.xlane.f32.xlu1 %v4777_v9 }
  0xde   : > { %599 = vadd.xlane.f32.xlu0 %v4784_v10  ;;  %601 = vadd.xlane.f32.xlu1 %v4787_v11 }
  0xe2   : > { %603 = vadd.xlane.f32.xlu0 %v4792_v12  ;;  %605 = vadd.xlane.f32.xlu1 %v4795_v13 }
  0xe6   : > { %607 = vadd.xlane.f32.xlu0 %v4800_v14  ;;  %609 = vadd.xlane.f32.xlu1 %v4803_v15 }
 0x157   : > { %v580_v20 = vpop.xlane.xlu0 %579  ;;  %v584_v21 = vpop.xlane.xlu1 %583 }
 0x158   : > { %v612_v22 = vmul.f32 0.0078125, %v580_v20  ;;  %v614_v23 = vmul.f32 0.0078125, %v584_v21 }
 0x15a   : > { %v4808_v24 = vsub.f32 %v4744_v0, %v612_v22  ;;  %v4811_v25 = vsub.f32 %v4747_v1, %v614_v23  ;;  %v3940_v23 = vld [vmem:[#allocation10 + $0x30] ss:$12 sps:$4 sm:$0xff]  }
 0x15b   : > { %v582_v26 = vpop.xlane.xlu0 %581  ;;  %v586_v27 = vpop.xlane.xlu1 %585  ;;  %990 = vmatpush1.bf16.msra.mxu0 %v3940_v23 }
 0x15c   : > { %v613_v28 = vmul.f32 0.0078125, %v582_v26  ;;  %v644_v29 = vmul.f32 %v4808_v24, %v4808_v24  ;;  %v615_v30 = vmul.f32 0.0078125, %v586_v27  ;;  %v646_v31 = vmul.f32 %v4811_v25, %v4811_v25 }
 0x15e   : > { %660 = vadd.xlane.f32.xlu0 %v644_v29  ;;  %v4818_v32 = vsub.f32 %v4752_v2, %v613_v28  ;;  %v4821_v33 = vsub.f32 %v4755_v3, %v615_v30 }
 0x15f   : > { %v588_v34 = vpop.xlane.xlu0 %587  ;;  %v590_v35 = vpop.xlane.xlu1 %589 }
 0x160   : > { %v616_v36 = vmul.f32 0.0078125, %v588_v34  ;;  %v645_v37 = vmul.f32 %v4818_v32, %v4818_v32  ;;  %v617_v38 = vmul.f32 0.0078125, %v590_v35  ;;  %v647_v40 = vmul.f32 %v4821_v33, %v4821_v33  ;;  %v3941_v34 = vld [vmem:[#allocation10 + $0x4c] ss:$12 sps:$4 sm:$0xff]  }
 0x161   : > { %v3943_v35 = vld [vmem:[#allocation10 + $0x38] ss:$12 sps:$4 sm:$0xff]   ;;  %991 = vmatprep.subr.bf16.mxu0 %v3941_v34 }
 0x162   : > { %v4826_v39 = vsub.f32 %v4758_v4, %v616_v36  ;;  %664 = vadd.xlane.f32.xlu0 %v646_v31  ;;  %662 = vadd.xlane.f32.xlu1 %v645_v37  ;;  %v4831_v41 = vsub.f32 %v4763_v5, %v617_v38  ;;  %v3944_v38 = vld [vmem:[#allocation10 + $0x48] ss:$12 sps:$4 sm:$0xff]  }
 0x163   : > { %v592_v42 = vpop.xlane.xlu0 %591  ;;  %v594_v43 = vpop.xlane.xlu1 %593  ;;  %3664 = vmatprep.subr.bf16.mxu1 %v3943_v35  ;;  %992 = vmatpush1.bf16.msra.mxu0 %v3944_v38 }
 0x164   : > { %v618_v44 = vmul.f32 0.0078125, %v592_v42  ;;  %v648_v45 = vmul.f32 %v4826_v39, %v4826_v39  ;;  %v619_v46 = vmul.f32 0.0078125, %v594_v43  ;;  %v649_v48 = vmul.f32 %v4831_v41, %v4831_v41  ;;  %3665 = vmatpush3.bf16.msra.mxu1 %v3943_v35 }
 0x166   : > { %v4836_v47 = vsub.f32 %v4766_v6, %v618_v44  ;;  %666 = vadd.xlane.f32.xlu1 %v647_v40  ;;  %668 = vadd.xlane.f32.xlu0 %v648_v45  ;;  %v4841_v49 = vsub.f32 %v4769_v7, %v619_v46 }
 0x167   : > { %v596_v50 = vpop.xlane.xlu0 %595  ;;  %v598_v51 = vpop.xlane.xlu1 %597 }
 0x168   : > { %v620_v52 = vmul.f32 0.0078125, %v596_v50  ;;  %v650_v53 = vmul.f32 %v4836_v47, %v4836_v47  ;;  %v621_v54 = vmul.f32 0.0078125, %v598_v51  ;;  %v651_v57 = vmul.f32 %v4841_v49, %v4841_v49  ;;  %v3947_v50 = vld [vmem:[#allocation10 + $0x50] ss:$12 sps:$4 sm:$0xff]   ;;  %v3948_v51 = vld [vmem:[#allocation10 + $0x60] ss:$12 sps:$4 sm:$0xff]  }
 0x169   : > { %3666 = vmatprep.subr.bf16.mxu1 %v3947_v50 }
 0x16a   : > { %v4846_v55 = vsub.f32 %v4774_v8, %v620_v52  ;;  %670 = vadd.xlane.f32.xlu1 %v649_v48  ;;  %672 = vadd.xlane.f32.xlu0 %v650_v53  ;;  %v4849_v56 = vsub.f32 %v4777_v9, %v621_v54  ;;  %v3945_v48 = vld [vmem:[#allocation10 + $0x64] ss:$12 sps:$4 sm:$0xff]   ;;  %v3949_v54 = vld [vmem:[#allocation10 + $0x7c] ss:$12 sps:$4 sm:$0xff]  }
 0x16b   : > { %v600_v59 = vpop.xlane.xlu0 %599  ;;  %v602_v60 = vpop.xlane.xlu1 %601  ;;  %993 = vmatprep.subr.bf16.mxu0 %v3945_v48  ;;  %3667 = vmatpush3.bf16.msra.mxu1 %v3947_v50 }
 0x16c   : > { %v622_v61 = vmul.f32 0.0078125, %v600_v59  ;;  %v652_v62 = vmul.f32 %v4846_v55, %v4846_v55  ;;  %v623_v63 = vmul.f32 0.0078125, %v602_v60  ;;  %v653_v20 = vmul.f32 %v4849_v56, %v4849_v56  ;;  %994 = vmatpush1.bf16.msra.mxu0 %v3948_v51  ;;  %v3953_v59 = vld [vmem:[#allocation10 + $0x94] ss:$12 sps:$4 sm:$0xff]  }
 0x16d   : > { %995 = vmatprep.subr.bf16.mxu0 %v3949_v54  ;;  %v3955_v60 = vld [vmem:[#allocation10 + $0x80] ss:$12 sps:$4 sm:$0xff]  }
 0x16e   : > { %v4856_v18 = vsub.f32 %v4784_v10, %v622_v61  ;;  %674 = vadd.xlane.f32.xlu1 %v651_v57  ;;  %676 = vadd.xlane.f32.xlu0 %v652_v62  ;;  %v4859_v19 = vsub.f32 %v4787_v11, %v623_v63  ;;  %v3951_v57 = vld [vmem:[#allocation10 + $0x68] ss:$12 sps:$4 sm:$0xff]   ;;  %v3956_v61 = vld [vmem:[#allocation10 + $0x90] ss:$12 sps:$4 sm:$0xff]   ;;  %v3957_v62 = vld [vmem:[#allocation10 + $0xac] ss:$12 sps:$4 sm:$0xff]  }
 0x16f   : > { %v604_v21 = vpop.xlane.xlu0 %603  ;;  %v606_v22 = vpop.xlane.xlu1 %605  ;;  %3668 = vmatprep.subr.bf16.mxu1 %v3951_v57  ;;  %v3959_v63 = vld [vmem:[#allocation10 + $0x98] ss:$12 sps:$4 sm:$0xff]  }
 0x170   : > { %v624_v26 = vmul.f32 0.0078125, %v604_v21  ;;  %v654_v27 = vmul.f32 %v4856_v18, %v4856_v18  ;;  %v625_v28 = vmul.f32 0.0078125, %v606_v22  ;;  %v655_v31 = vmul.f32 %v4859_v19, %v4859_v19  ;;  %996 = vmatpush1.bf16.msra.mxu0 %v3952_v58  ;;  %3669 = vmatpush3.bf16.msra.mxu1 %v3951_v57 }
 0x171   : > { %997 = vmatprep.subr.bf16.mxu0 %v3953_v59  ;;  %3670 = vmatprep.subr.bf16.mxu1 %v3955_v60 }
 0x172   : > { %v4866_v29 = vsub.f32 %v4792_v12, %v624_v26  ;;  %678 = vadd.xlane.f32.xlu1 %v653_v20  ;;  %680 = vadd.xlane.f32.xlu0 %v654_v27  ;;  %v4869_v30 = vsub.f32 %v4795_v13, %v625_v28  ;;  %v4408_v20 = vmov 0  }
 0x173   : > { %v608_v36 = vpop.xlane.xlu0 %607  ;;  %v610_v37 = vpop.xlane.xlu1 %609  ;;  %1017 = vmatprep.mubr.bf16.mxu0 %v4408_v20 }
 0x174   : > { %v626_v40 = vmul.f32 0.0078125, %v608_v36  ;;  %v656_v42 = vmul.f32 %v4866_v29, %v4866_v29  ;;  %v627_v43 = vmul.f32 0.0078125, %v610_v37  ;;  %v657_v46 = vmul.f32 %v4869_v30, %v4869_v30  ;;  %998 = vmatpush1.bf16.msra.mxu0 %v3956_v61  ;;  %3671 = vmatpush3.bf16.msra.mxu1 %v3955_v60 }
 0x175   : > { %999 = vmatprep.subr.bf16.mxu0 %v3957_v62  ;;  %3672 = vmatprep.subr.bf16.mxu1 %v3959_v63  ;;  %v4892_v62 = vld [vmem:[%s5978_s5] ss:$0 sm:$0xff] }
 0x176   : > { %v4876_v44 = vsub.f32 %v4800_v14, %v626_v40  ;;  %682 = vadd.xlane.f32.xlu1 %v655_v31  ;;  %684 = vadd.xlane.f32.xlu0 %v656_v42  ;;  %v4879_v45 = vsub.f32 %v4803_v15, %v627_v43 }
 0x178   : > { %v658_v52 = vmul.f32 %v4876_v44, %v4876_v44  ;;  %v659_v53 = vmul.f32 %v4879_v45, %v4879_v45  ;;  %1000 = vmatpush1.bf16.msra.mxu0 %v3960_v16  ;;  %3673 = vmatpush3.bf16.msra.mxu1 %v3959_v63 }
 0x179   : > { %3674 = vmatprep.subr.bf16.mxu1 %v3961_v17 }
 0x17a   : > { %686 = vadd.xlane.f32.xlu1 %v657_v46  ;;  %688 = vadd.xlane.f32.xlu0 %v658_v52 }
 0x17c   : > { %3675 = vmatpush3.bf16.msra.mxu1 %v3961_v17 }
 0x17e   : > { %690 = vadd.xlane.f32.xlu1 %v659_v53 }
 0x1eb   : > { %v661_v21 = vpop.xlane.xlu0 %660 }
 0x1ec   : > { %v692_v22 = vmul.f32 0.0078125, %v661_v21 }
 0x1ee   : > { %v708_v23 = vadd.f32 1e-06, %v692_v22 }
 0x1ef   : > { %v663_v26 = vpop.xlane.xlu1 %662  ;;  %v665_v27 = vpop.xlane.xlu0 %664 }
 0x1f0   : > { %3962 = vrsqrt.f32 %v708_v23  ;;  %v693_v28 = vmul.f32 0.0078125, %v663_v26  ;;  %v694_v31 = vmul.f32 0.0078125, %v665_v27 }
 0x1f2   : > { %v709_v34 = vadd.f32 1e-06, %v693_v28  ;;  %v710_v35 = vadd.f32 1e-06, %v694_v31  ;;  %v4899_v31 = vld [vmem:[%s5979_s6] ss:$0 sm:$0xff] }
 0x1f3   : > { %v667_v36 = vpop.xlane.xlu1 %666  ;;  %v669_v37 = vpop.xlane.xlu0 %668 }
 0x1f4   : > { %3964 = vrsqrt.f32 %v709_v34  ;;  %v695_v38 = vmul.f32 0.0078125, %v667_v36  ;;  %v696_v40 = vmul.f32 0.0078125, %v669_v37 }
 0x1f5   : > { %3966 = vrsqrt.f32 %v710_v35 }
 0x1f6   : > { %v711_v42 = vadd.f32 1e-06, %v695_v38  ;;  %v712_v43 = vadd.f32 1e-06, %v696_v40 }
 0x1f7   : > { %v671_v46 = vpop.xlane.xlu1 %670  ;;  %v673_v48 = vpop.xlane.xlu0 %672 }
 0x1f8   : > { %3968 = vrsqrt.f32 %v711_v42  ;;  %v697_v50 = vmul.f32 0.0078125, %v671_v46  ;;  %v698_v51 = vmul.f32 0.0078125, %v673_v48 }
 0x1f9   : > { %3970 = vrsqrt.f32 %v712_v43 }
 0x1fa   : > { %v3963_v52 = vpop.eup %3962  ;;  %v713_v53 = vadd.f32 1e-06, %v697_v50  ;;  %v714_v54 = vadd.f32 1e-06, %v698_v51 }
 0x1fb   : > { %v675_v57 = vpop.xlane.xlu1 %674  ;;  %v677_v58 = vpop.xlane.xlu0 %676  ;;  %v740_v59 = vmul.f32 %v3963_v52, %v4808_v24 }
 0x1fc   : > { %3972 = vrsqrt.f32 %v713_v53  ;;  %v699_v60 = vmul.f32 0.0078125, %v675_v57  ;;  %v700_v61 = vmul.f32 0.0078125, %v677_v58 }
 0x1fd   : > { %3974 = vrsqrt.f32 %v714_v54  ;;  %v762_v27 = vmul.f32 %v4892_v62, %v740_v59 }
 0x1fe   : > { %v3965_v63 = vpop.eup %3964  ;;  %v715_v16 = vadd.f32 1e-06, %v699_v60  ;;  %v716_v17 = vadd.f32 1e-06, %v700_v61 }
 0x1ff   : > { %v3967_v21 = vpop.eup %3966  ;;  %v679_v22 = vpop.xlane.xlu1 %678  ;;  %v741_v26 = vmul.f32 %v3965_v63, %v4818_v32  ;;  %v784_v46 = vadd.f32 %v4899_v31, %v762_v27 }
 0x200   : > { %v681_v23 = vpop.xlane.xlu0 %680  ;;  %3976 = vrsqrt.f32 %v715_v16  ;;  %v701_v24 = vmul.f32 0.0078125, %v679_v22  ;;  %v742_v34 = vmul.f32 %v3967_v21, %v4811_v25 }
 0x201   : > { %v702_v28 = vmul.f32 0.0078125, %v681_v23  ;;  %3978 = vrsqrt.f32 %v716_v17  ;;  %v763_v35 = vmul.f32 %v4892_v62, %v741_v26 }
 0x202   : > { %v3969_v36 = vpop.eup %3968  ;;  %v717_v37 = vadd.f32 1e-06, %v701_v24  ;;  %v764_v32 = vmul.f32 %v4892_v62, %v742_v34 }
 0x203   : > { %v718_v38 = vadd.f32 1e-06, %v702_v28  ;;  %v3971_v40 = vpop.eup %3970  ;;  %v683_v42 = vpop.xlane.xlu1 %682  ;;  %v785_v48 = vadd.f32 %v4899_v31, %v763_v35  ;;  %v743_v50 = vmul.f32 %v3969_v36, %v4821_v33 }
 0x204   : > { %v685_v43 = vpop.xlane.xlu0 %684  ;;  %3980 = vrsqrt.f32 %v717_v37  ;;  %v703_v51 = vmul.f32 0.0078125, %v683_v42  ;;  %v744_v54 = vmul.f32 %v3971_v40, %v4826_v39  ;;  %v786_v60 = vadd.f32 %v4899_v31, %v764_v32 }
 0x205   : > { %v704_v25 = vmul.f32 0.0078125, %v685_v43  ;;  %3982 = vrsqrt.f32 %v718_v38  ;;  %v800_v52 = vpack.c.bf16 %v785_v48, %v784_v46  ;;  %v765_v53 = vmul.f32 %v4892_v62, %v743_v50 }
 0x206   : > { %v3973_v57 = vpop.eup %3972  ;;  %v719_v58 = vadd.f32 1e-06, %v703_v51  ;;  %v766_v21 = vmul.f32 %v4892_v62, %v744_v54 }
 0x207   : > { %v720_v59 = vadd.f32 1e-06, %v704_v25  ;;  %v3975_v61 = vpop.eup %3974  ;;  %v687_v63 = vpop.xlane.xlu1 %686  ;;  %1018 = vmatmul.mubr.bf16.vlgmr.msra.gmra.mrb[0].mxu0 %v800_v52  ;;  %3676 = vmatprep.mubr.bf16.mxu1 %v800_v52  ;;  %v787_v33 = vadd.f32 %v4899_v31, %v765_v53  ;;  %v745_v17 = vmul.f32 %v3973_v57, %v4831_v41 }
 0x208   : > { %v689_v16 = vpop.xlane.xlu0 %688  ;;  %3984 = vrsqrt.f32 %v719_v58  ;;  %v705_v22 = vmul.f32 0.0078125, %v687_v63  ;;  %1027 = vmatprep.mubr.bf16.mxu0 %v4408_v20  ;;  %v746_v39 = vmul.f32 %v3975_v61, %v4836_v47  ;;  %v788_v37 = vadd.f32 %v4899_v31, %v766_v21 }
 0x209   : > { %v706_v23 = vmul.f32 0.0078125, %v689_v16  ;;  %3986 = vrsqrt.f32 %v720_v59  ;;  %v801_v26 = vpack.c.bf16 %v787_v33, %v786_v60  ;;  %v767_v27 = vmul.f32 %v4892_v62, %v745_v17 }
 0x20a   : > { %v3977_v24 = vpop.eup %3976  ;;  %v721_v28 = vadd.f32 1e-06, %v705_v22  ;;  %v768_v35 = vmul.f32 %v4892_v62, %v746_v39 }
 0x20b   : > { %v722_v34 = vadd.f32 1e-06, %v706_v23  ;;  %v3979_v36 = vpop.eup %3978  ;;  %v691_v41 = vpop.xlane.xlu1 %690  ;;  %3677 = vmatmul.mubr.bf16.vlgmr.msra.gmra.mrb[0].mxu1 %v801_v26  ;;  %v789_v38 = vadd.f32 %v4899_v31, %v767_v27  ;;  %v747_v32 = vmul.f32 %v3977_v24, %v4841_v49 }
 0x20c   : > { %3988 = vrsqrt.f32 %v721_v28  ;;  %v707_v47 = vmul.f32 0.0078125, %v691_v41  ;;  %v748_v40 = vmul.f32 %v3979_v36, %v4846_v55  ;;  %v790_v50 = vadd.f32 %v4899_v31, %v768_v35 }
 0x20d   : > { %3990 = vrsqrt.f32 %v722_v34  ;;  %v802_v42 = vpack.c.bf16 %v789_v38, %v788_v37  ;;  %v769_v43 = vmul.f32 %v4892_v62, %v747_v32 }
 0x20e   : > { %v3981_v46 = vpop.eup %3980  ;;  %v723_v48 = vadd.f32 1e-06, %v707_v47  ;;  %v770_v49 = vmul.f32 %v4892_v62, %v748_v40 }
 0x20f   : > { %v3983_v51 = vpop.eup %3982  ;;  %1028 = vmatmul.mubr.bf16.gmra.mrb[4].mxu0 %v801_v26  ;;  %3680 = vmatprep.mubr.bf16.mxu1 %v802_v42  ;;  %v791_v25 = vadd.f32 %v4899_v31, %v769_v43  ;;  %v749_v52 = vmul.f32 %v3981_v46, %v4849_v56 }
 0x210   : > { %3992 = vrsqrt.f32 %v723_v48  ;;  %1037 = vmatprep.mubr.bf16.mxu0 %v4408_v20  ;;  %v750_v55 = vmul.f32 %v3983_v51, %v4856_v18  ;;  %v792_v60 = vadd.f32 %v4899_v31, %v770_v49  ;;  %v4409_v48 = vmov 0.0  }
 0x211   : > { %v803_v53 = vpack.c.bf16 %v791_v25, %v790_v50  ;;  %v771_v54 = vmul.f32 %v4892_v62, %v749_v52 }
 0x212   : > { %v3985_v57 = vpop.eup %3984  ;;  %v772_v58 = vmul.f32 %v4892_v62, %v750_v55 }
 0x213   : > { %v3987_v59 = vpop.eup %3986  ;;  %3681 = vmatmul.mubr.bf16.gmra.mrb[4].mxu1 %v803_v53  ;;  %v793_v61 = vadd.f32 %v4899_v31, %v771_v54  ;;  %v751_v56 = vmul.f32 %v3985_v57, %v4859_v19 }
 0x214   : > { %v752_v63 = vmul.f32 %v3987_v59, %v4866_v29  ;;  %v794_v17 = vadd.f32 %v4899_v31, %v772_v58  ;;  %v840_v58 = vld [vmem:[%s5975_s2] sm:$0x7] }
 0x215   : > { %v804_v16 = vpack.c.bf16 %v793_v61, %v792_v60  ;;  %v773_v33 = vmul.f32 %v4892_v62, %v751_v56 }
 0x216   : > { %v3989_v18 = vpop.eup %3988  ;;  %v774_v39 = vmul.f32 %v4892_v62, %v752_v63 }
 0x217   : > { %v3991_v21 = vpop.eup %3990  ;;  %1038 = vmatmul.mubr.bf16.gmra.mrb[8].mxu0 %v802_v42  ;;  %3684 = vmatprep.mubr.bf16.mxu1 %v804_v16  ;;  %v795_v22 = vadd.f32 %v4899_v31, %v773_v33  ;;  %v753_v23 = vmul.f32 %v3989_v18, %v4869_v30 }
 0x218   : > { %1047 = vmatprep.mubr.bf16.mxu0 %v4408_v20  ;;  %v754_v19 = vmul.f32 %v3991_v21, %v4876_v44  ;;  %v796_v24 = vadd.f32 %v4899_v31, %v774_v39 }
 0x219   : > { %v805_v29 = vpack.c.bf16 %v795_v22, %v794_v17  ;;  %v775_v26 = vmul.f32 %v4892_v62, %v753_v23 }
 0x21a   : > { %v3993_v27 = vpop.eup %3992  ;;  %v776_v35 = vmul.f32 %v4892_v62, %v754_v19 }
 0x21b   : > { %3685 = vmatmul.mubr.bf16.gmra.mrb[8].mxu1 %v805_v29  ;;  %v797_v28 = vadd.f32 %v4899_v31, %v775_v26  ;;  %v755_v34 = vmul.f32 %v3993_v27, %v4879_v45  ;;  %v550_v45 = vlaneseq }
 0x21c   : > { %v798_v44 = vadd.f32 %v4899_v31, %v776_v35 }
 0x21d   : > { %v806_v30 = vpack.c.bf16 %v797_v28, %v796_v24  ;;  %v777_v36 = vmul.f32 %v4892_v62, %v755_v34  ;;  %v4953_v62 = vshrl.u32 %v550_v45, 7  ;;  %v560_v46 = vand.u32 127, %v550_v45 }
 0x21f   : > { %1048 = vmatmul.mubr.bf16.gmra.mrb[12].mxu0 %v803_v53  ;;  %3688 = vmatprep.mubr.bf16.mxu1 %v806_v30  ;;  %v799_v41 = vadd.f32 %v4899_v31, %v777_v36  ;;  %v552_v38 = vadd.s32 8, %v4953_v62  ;;  %v553_v31 = vadd.s32 16, %v4953_v62  ;;  %v554_v32 = vadd.s32 24, %v4953_v62 }
 0x220   : > { %1057 = vmatprep.mubr.bf16.mxu0 %v4408_v20  ;;  %v555_v47 = vadd.s32 32, %v4953_v62  ;;  %v556_v40 = vadd.s32 40, %v4953_v62  ;;  %v557_v42 = vadd.s32 48, %v4953_v62  ;;  %v558_v43 = vadd.s32 56, %v4953_v62 }
 0x221   : > { %v807_v37 = vpack.c.bf16 %v799_v41, %v798_v44  ;;  %vm561_vm0 = vcmp.gt.s32.totalorder %v560_v46, %v4953_v62  ;;  %vm562_vm1 = vcmp.gt.s32.totalorder %v560_v46, %v552_v38  ;;  %vm563_vm2 = vcmp.gt.s32.totalorder %v560_v46, %v553_v31 }
 0x222   : > { %vm564_vm3 = vcmp.gt.s32.totalorder %v560_v46, %v554_v32  ;;  %vm565_vm4 = vcmp.gt.s32.totalorder %v560_v46, %v555_v47  ;;  %vm566_vm5 = vcmp.gt.s32.totalorder %v560_v46, %v556_v40  ;;  %vm567_vm6 = vcmp.gt.s32.totalorder %v560_v46, %v557_v42 }
 0x223   : > { %3689 = vmatmul.mubr.bf16.gmra.mrb[12].mxu1 %v807_v37  ;;  %vm568_vm7 = vcmp.gt.s32.totalorder %v560_v46, %v558_v43  ;;  %v4963_v50 = vsel %vm561_vm0, -10000.0, %v4409_v48  ;;  %v4965_v51 = vsel %vm562_vm1, -10000.0, %v4409_v48  ;;  %v4967_v25 = vsel %vm563_vm2, -10000.0, %v4409_v48 }
 0x224   : > { %v4969_v52 = vsel %vm564_vm3, -10000.0, %v4409_v48  ;;  %v4971_v49 = vsel %vm565_vm4, -10000.0, %v4409_v48  ;;  %v4973_v55 = vsel %vm566_vm5, -10000.0, %v4409_v48  ;;  %v4975_v53 = vsel %vm567_vm6, -10000.0, %v4409_v48 }
 0x225   : > { %v4977_v54 = vsel %vm568_vm7, -10000.0, %v4409_v48  ;;  %v844_v57 = vsub.s32 0, %v4953_v62  ;;  %v848_v59 = vsub.s32 1, %v4953_v62  ;;  %v852_v61 = vsub.s32 2, %v4953_v62 }
 0x227   : > { %1058 = vmatmul.mubr.bf16.gmra.mrb[16].mxu0 %v804_v16  ;;  %v4986_v60 = vrot.slane %v840_v58, %v844_v57  ;;  %v4991_v63 = vrot.slane %v840_v58, %v848_v59  ;;  %v4995_v22 = vrot.slane %v840_v58, %v852_v61 }
 0x228   : > { %1067 = vmatprep.mubr.bf16.mxu0 %v4408_v20 }
 0x22f   : > { %1068 = vmatmul.mubr.bf16.gmra.mrb[20].mxu0 %v805_v29 }
 0x230   : > { %1077 = vmatprep.mubr.bf16.mxu0 %v4408_v20 }
 0x237   : > { %1078 = vmatmul.mubr.bf16.gmra.mrb[24].mxu0 %v806_v30 }
 0x238   : > { %1087 = vmatprep.mubr.bf16.mxu0 %v4408_v20 }
 0x23f   : > { %1088 = vmatmul.mubr.bf16.gmra.mrb[28].mxu0 %v807_v37 }
 0x2da   : > { %v1019_v56 = vpop.f32.mrb[0].mxu0 }
 0x2db   : > { %v1021_v16 = vpop.f32.mrb[1].mxu0  ;;  %v1020_v18 = vadd.f32 %v1019_v56, %v4986_v60 }
 0x2dc   : > { %v1023_v33 = vpop.f32.mrb[2].mxu0  ;;  %v1022_v23 = vadd.f32 %v1021_v16, %v4991_v63 }
 0x2dd   : > { %v1024_v17 = vadd.f32 %v1023_v33, %v4986_v60  ;;  %v1025_v21 = vpop.f32.mrb[3].mxu0 }
 0x2de   : > { %v1026_v39 = vadd.f32 %v1025_v21, %v4991_v63  ;;  %v3678_v19 = vpop.f32.mrb[0].mxu1 }
 0x2df   : > { %v1195_v29 = vpack.c.bf16 %v1024_v17, %v1020_v18  ;;  %v1132_v26 = vpop.f32.mrb[1].mxu1  ;;  %v1141_v28 = vadd.f32 %v3678_v19, %v4995_v22 }
 0x2e0   : > { %v4999_v27 = vpack.c.bf16 %v1026_v39, %v1022_v23  ;;  %v3679_v24 = vpop.f32.mrb[2].mxu1  ;;  %v1133_v30 = vadd.f32 %v1132_v26, %v4995_v22 }
 0x2e1   : > { %1204 = vst.msk [vmem:[#allocation2] sm:$0xff] %vm1203_vm8, %v1195_v29  ;;  %v1144_v34 = vadd.f32 %v3679_v24, %v4995_v22  ;;  %1252 = vrot.lane.b32.xlu0 %v1195_v29, %s4410_s24  ;;  %v1135_v35 = vpop.f32.mrb[3].mxu1 }
 0x2e2   : > { %1220 = vst.msk [vmem:[#allocation3] sm:$0xff] %vm1203_vm8, %v4999_v27  ;;  %v1136_v36 = vadd.f32 %v1135_v35, %v4995_v22  ;;  %v1029_v44 = vpop.f32.mrb[4].mxu0 }
 0x2e3   : > { %v1229_v41 = vpack.c.bf16 %v1144_v34, %v1141_v28  ;;  %v1031_v37 = vpop.f32.mrb[5].mxu0  ;;  %v1030_v31 = vadd.f32 %v1029_v44, %v4986_v60 }
 0x2e4   : > { %v5009_v45 = vpack.c.bf16 %v1136_v36, %v1133_v30  ;;  %v1033_v38 = vpop.f32.mrb[6].mxu0  ;;  %v1032_v40 = vadd.f32 %v1031_v37, %v4991_v63 }
 0x2e5   : > { %1237 = vst.msk [vmem:[#allocation4 + $0x8] sm:$0xff] %vm1203_vm8, %v1229_v41  ;;  %v1034_v32 = vadd.f32 %v1033_v38, %v4986_v60  ;;  %1367 = vrot.lane.b32.xlu0 %v1195_v29, %s4411_s21  ;;  %1336 = vrot.lane.b32.xlu1 %v1229_v41, %s4410_s24  ;;  %v1035_v47 = vpop.f32.mrb[7].mxu0 }
 0x2e6   : > { %1236 = vst.msk [vmem:[#allocation4] sm:$0xff] %vm1203_vm8, %v5009_v45  ;;  %v1036_v42 = vadd.f32 %v1035_v47, %v4991_v63  ;;  %v3682_v43 = vpop.f32.mrb[4].mxu1 }
 0x2e7   : > { %v5020_v46 = vpack.c.bf16 %v1034_v32, %v1030_v31  ;;  %v1148_v48 = vpop.f32.mrb[5].mxu1  ;;  %v1157_v56 = vadd.f32 %v3682_v43, %v4995_v22 }
 0x2e8   : > { %v5022_v58 = vpack.c.bf16 %v1036_v42, %v1032_v40  ;;  %v3683_v61 = vpop.f32.mrb[6].mxu1  ;;  %v1149_v18 = vadd.f32 %v1148_v48, %v4995_v22 }
 0x2e9   : > { %1205 = vst.msk [vmem:[#allocation2 + $0x8] sm:$0xff] %vm1203_vm8, %v5020_v46  ;;  %v1160_v16 = vadd.f32 %v3683_v61, %v4995_v22  ;;  %1466 = vrot.lane.b32.xlu0 %v1195_v29, %s4412_s30  ;;  %1435 = vrot.lane.b32.xlu1 %v1229_v41, %s4411_s21  ;;  %v1151_v33 = vpop.f32.mrb[7].mxu1 }
 0x2ea   : > { %1221 = vst.msk [vmem:[#allocation3 + $0x8] sm:$0xff] %vm1203_vm8, %v5022_v58  ;;  %v1152_v17 = vadd.f32 %v1151_v33, %v4995_v22  ;;  %v1039_v21 = vpop.f32.mrb[8].mxu0 }
 0x2eb   : > { %v5034_v23 = vpack.c.bf16 %v1160_v16, %v1157_v56  ;;  %v1041_v39 = vpop.f32.mrb[9].mxu0  ;;  %v1040_v29 = vadd.f32 %v1039_v21, %v4986_v60 }
 0x2ec   : > { %v5036_v19 = vpack.c.bf16 %v1152_v17, %v1149_v18  ;;  %v1043_v26 = vpop.f32.mrb[10].mxu0  ;;  %v1042_v34 = vadd.f32 %v1041_v39, %v4991_v63 }
 0x2ed   : > { %1239 = vst.msk [vmem:[#allocation4 + $0x18] sm:$0xff] %vm1203_vm8, %v5034_v23  ;;  %v1044_v24 = vadd.f32 %v1043_v26, %v4986_v60  ;;  %1293 = vrot.lane.b32.xlu0 %v4999_v27, %s4410_s24  ;;  %1534 = vrot.lane.b32.xlu1 %v1229_v41, %s4412_s30  ;;  %v1045_v28 = vpop.f32.mrb[11].mxu0 }
 0x2ee   : > { %1238 = vst.msk [vmem:[#allocation4 + $0x10] sm:$0xff] %vm1203_vm8, %v5036_v19  ;;  %v1046_v35 = vadd.f32 %v1045_v28, %v4991_v63  ;;  %v3686_v30 = vpop.f32.mrb[8].mxu1 }
 0x2ef   : > { %v5049_v36 = vpack.c.bf16 %v1044_v24, %v1040_v29  ;;  %v1164_v44 = vpop.f32.mrb[9].mxu1  ;;  %v1173_v41 = vadd.f32 %v3686_v30, %v4995_v22 }
 0x2f0   : > { %v5051_v37 = vpack.c.bf16 %v1046_v35, %v1042_v34  ;;  %v3687_v38 = vpop.f32.mrb[10].mxu1  ;;  %v1165_v47 = vadd.f32 %v1164_v44, %v4995_v22 }
 0x2f1   : > { %1206 = vst.msk [vmem:[#allocation2 + $0x10] sm:$0xff] %vm1203_vm8, %v5049_v36  ;;  %v1176_v31 = vadd.f32 %v3687_v38, %v4995_v22  ;;  %1400 = vrot.lane.b32.xlu0 %v4999_v27, %s4411_s21  ;;  %1254 = vrot.lane.b32.xlu1 %v5020_v46, %s4410_s24  ;;  %v1167_v32 = vpop.f32.mrb[11].mxu1 }
 0x2f2   : > { %1222 = vst.msk [vmem:[#allocation3 + $0x10] sm:$0xff] %vm1203_vm8, %v5051_v37  ;;  %v1168_v40 = vadd.f32 %v1167_v32, %v4995_v22  ;;  %v1049_v42 = vpop.f32.mrb[12].mxu0 }
 0x2f3   : > { %v5065_v43 = vpack.c.bf16 %v1176_v31, %v1173_v41  ;;  %v1051_v48 = vpop.f32.mrb[13].mxu0  ;;  %v1050_v16 = vadd.f32 %v1049_v42, %v4986_v60 }
 0x2f4   : > { %v5067_v61 = vpack.c.bf16 %v1168_v40, %v1165_v47  ;;  %v1053_v56 = vpop.f32.mrb[14].mxu0  ;;  %v1052_v17 = vadd.f32 %v1051_v48, %v4991_v63 }
 0x2f5   : > { %1241 = vst.msk [vmem:[#allocation4 + $0x28] sm:$0xff] %vm1203_vm8, %v5065_v43  ;;  %v1054_v33 = vadd.f32 %v1053_v56, %v4986_v60  ;;  %1499 = vrot.lane.b32.xlu0 %v4999_v27, %s4412_s30  ;;  %1369 = vrot.lane.b32.xlu1 %v5020_v46, %s4411_s21  ;;  %v1055_v18 = vpop.f32.mrb[15].mxu0 }
 0x2f6   : > { %1240 = vst.msk [vmem:[#allocation4 + $0x20] sm:$0xff] %vm1203_vm8, %v5067_v61  ;;  %v1056_v21 = vadd.f32 %v1055_v18, %v4991_v63  ;;  %v3690_v39 = vpop.f32.mrb[12].mxu1 }
 0x2f7   : > { %v5081_v26 = vpack.c.bf16 %v1054_v33, %v1050_v16  ;;  %v1180_v29 = vpop.f32.mrb[13].mxu1  ;;  %v1189_v27 = vadd.f32 %v3690_v39, %v4995_v22 }
 0x2f8   : > { %v5083_v24 = vpack.c.bf16 %v1056_v21, %v1052_v17  ;;  %v3691_v28 = vpop.f32.mrb[14].mxu1  ;;  %v1181_v30 = vadd.f32 %v1180_v29, %v4995_v22 }
 0x2f9   : > { %1207 = vst.msk [vmem:[#allocation2 + $0x18] sm:$0xff] %vm1203_vm8, %v5081_v26  ;;  %v1192_v34 = vadd.f32 %v3691_v28, %v4995_v22  ;;  %1334 = vrot.lane.b32.xlu0 %v5009_v45, %s4410_s24  ;;  %1468 = vrot.lane.b32.xlu1 %v5020_v46, %s4412_s30  ;;  %v1183_v35 = vpop.f32.mrb[15].mxu1 }
 0x2fa   : > { %1223 = vst.msk [vmem:[#allocation3 + $0x18] sm:$0xff] %vm1203_vm8, %v5083_v24  ;;  %v1184_v44 = vadd.f32 %v1183_v35, %v4995_v22  ;;  %v1059_v38 = vpop.f32.mrb[16].mxu0 }
 0x2fb   : > { %v5097_v41 = vpack.c.bf16 %v1192_v34, %v1189_v27  ;;  %v1061_v31 = vpop.f32.mrb[17].mxu0  ;;  %v1060_v46 = vadd.f32 %v1059_v38, %v4986_v60 }
 0x2fc   : > { %v5099_v32 = vpack.c.bf16 %v1184_v44, %v1181_v30  ;;  %v1063_v47 = vpop.f32.mrb[18].mxu0  ;;  %v1062_v42 = vadd.f32 %v1061_v31, %v4991_v63 }
 0x2fd   : > { %1243 = vst.msk [vmem:[#allocation4 + $0x38] sm:$0xff] %vm1203_vm8, %v5097_v41  ;;  %v1064_v40 = vadd.f32 %v1063_v47, %v4986_v60  ;;  %1433 = vrot.lane.b32.xlu0 %v5009_v45, %s4411_s21  ;;  %1295 = vrot.lane.b32.xlu1 %v5022_v58, %s4410_s24  ;;  %v1065_v22 = vpop.f32.mrb[19].mxu0 }
 0x2fe   : > { %1242 = vst.msk [vmem:[#allocation4 + $0x30] sm:$0xff] %vm1203_vm8, %v5099_v32  ;;  %v1066_v48 = vadd.f32 %v1065_v22, %v4991_v63 }
 0x2ff   : > { %v5113_v56 = vpack.c.bf16 %v1064_v40, %v1060_v46 }
 0x300   : > { %v5115_v16 = vpack.c.bf16 %v1066_v48, %v1062_v42 }
 0x301   : > { %1208 = vst.msk [vmem:[#allocation2 + $0x20] sm:$0xff] %vm1203_vm8, %v5113_v56  ;;  %1532 = vrot.lane.b32.xlu0 %v5009_v45, %s4412_s30  ;;  %1340 = vrot.lane.b32.xlu1 %v5034_v23, %s4410_s24 }
 0x302   : > { %1224 = vst.msk [vmem:[#allocation3 + $0x20] sm:$0xff] %vm1203_vm8, %v5115_v16  ;;  %v1069_v33 = vpop.f32.mrb[20].mxu0 }
 0x303   : > { %v1071_v18 = vpop.f32.mrb[21].mxu0  ;;  %v1070_v21 = vadd.f32 %v1069_v33, %v4986_v60 }
 0x304   : > { %v1073_v17 = vpop.f32.mrb[22].mxu0  ;;  %v1072_v29 = vadd.f32 %v1071_v18, %v4991_v63 }
 0x305   : > { %v1074_v39 = vadd.f32 %v1073_v17, %v4986_v60  ;;  %1402 = vrot.lane.b32.xlu1 %v5022_v58, %s4411_s21  ;;  %1338 = vrot.lane.b32.xlu0 %v5036_v19, %s4410_s24  ;;  %v1075_v45 = vpop.f32.mrb[23].mxu0 }
 0x306   : > { %v1076_v28 = vadd.f32 %v1075_v45, %v4991_v63 }
 0x307   : > { %v1200_v27 = vpack.c.bf16 %v1074_v39, %v1070_v21 }
 0x308   : > { %v5133_v34 = vpack.c.bf16 %v1076_v28, %v1072_v29 }
 0x309   : > { %1209 = vst.msk [vmem:[#allocation2 + $0x28] sm:$0xff] %vm1203_vm8, %v1200_v27  ;;  %1439 = vrot.lane.b32.xlu1 %v5034_v23, %s4411_s21  ;;  %1437 = vrot.lane.b32.xlu0 %v5036_v19, %s4411_s21 }
 0x30a   : > { %1225 = vst.msk [vmem:[#allocation3 + $0x28] sm:$0xff] %vm1203_vm8, %v5133_v34  ;;  %v1079_v35 = vpop.f32.mrb[24].mxu0 }
 0x30b   : > { %v1081_v30 = vpop.f32.mrb[25].mxu0  ;;  %v1080_v38 = vadd.f32 %v1079_v35, %v4986_v60 }
 0x30c   : > { %v1083_v44 = vpop.f32.mrb[26].mxu0  ;;  %v1082_v46 = vadd.f32 %v1081_v30, %v4991_v63 }
 0x30d   : > { %v1084_v31 = vadd.f32 %v1083_v44, %v4986_v60  ;;  %1501 = vrot.lane.b32.xlu1 %v5022_v58, %s4412_s30  ;;  %1536 = vrot.lane.b32.xlu0 %v5036_v19, %s4412_s30  ;;  %v1085_v47 = vpop.f32.mrb[27].mxu0 }
 0x30e   : > { %v1086_v40 = vadd.f32 %v1085_v47, %v4991_v63 }
 0x30f   : > { %v1201_v22 = vpack.c.bf16 %v1084_v31, %v1080_v38 }
 0x310   : > { %v5150_v42 = vpack.c.bf16 %v1086_v40, %v1082_v46 }
 0x311   : > { %1210 = vst.msk [vmem:[#allocation2 + $0x30] sm:$0xff] %vm1203_vm8, %v1201_v22  ;;  %1538 = vrot.lane.b32.xlu1 %v5034_v23, %s4412_s30  ;;  %1371 = vrot.lane.b32.xlu0 %v5049_v36, %s4411_s21 }
 0x312   : > { %1226 = vst.msk [vmem:[#allocation3 + $0x30] sm:$0xff] %vm1203_vm8, %v5150_v42  ;;  %v1089_v58 = vpop.f32.mrb[28].mxu0 }
 0x313   : > { %v1091_v19 = vpop.f32.mrb[29].mxu0  ;;  %v1090_v33 = vadd.f32 %v1089_v58, %v4986_v60 }
 0x314   : > { %v1093_v48 = vpop.f32.mrb[30].mxu0  ;;  %v1092_v17 = vadd.f32 %v1091_v19, %v4991_v63 }
 0x315   : > { %v1094_v18 = vadd.f32 %v1093_v48, %v4986_v60  ;;  %1256 = vrot.lane.b32.xlu1 %v5049_v36, %s4410_s24  ;;  %1470 = vrot.lane.b32.xlu0 %v5049_v36, %s4412_s30  ;;  %v1095_v23 = vpop.f32.mrb[31].mxu0 }
 0x316   : > { %v1096_v21 = vadd.f32 %v1095_v23, %v4991_v63 }
 0x317   : > { %v1202_v39 = vpack.c.bf16 %v1094_v18, %v1090_v33 }
 0x318   : > { %v5167_v45 = vpack.c.bf16 %v1096_v21, %v1092_v17 }
 0x319   : > { %1211 = vst.msk [vmem:[#allocation2 + $0x38] sm:$0xff] %vm1203_vm8, %v1202_v39  ;;  %1297 = vrot.lane.b32.xlu0 %v5051_v37, %s4410_s24  ;;  %1344 = vrot.lane.b32.xlu1 %v5065_v43, %s4410_s24 }
 0x31a   : > { %1227 = vst.msk [vmem:[#allocation3 + $0x38] sm:$0xff] %vm1203_vm8, %v5167_v45 }
 0x31d   : > { %1404 = vrot.lane.b32.xlu0 %v5051_v37, %s4411_s21  ;;  %1443 = vrot.lane.b32.xlu1 %v5065_v43, %s4411_s21 }
 0x321   : > { %1503 = vrot.lane.b32.xlu0 %v5051_v37, %s4412_s30  ;;  %1542 = vrot.lane.b32.xlu1 %v5065_v43, %s4412_s30 }
 0x325   : > { %1258 = vrot.lane.b32.xlu1 %v5081_v26, %s4410_s24  ;;  %1342 = vrot.lane.b32.xlu0 %v5067_v61, %s4410_s24 }
 0x329   : > { %1373 = vrot.lane.b32.xlu1 %v5081_v26, %s4411_s21  ;;  %1441 = vrot.lane.b32.xlu0 %v5067_v61, %s4411_s21 }
 0x32d   : > { %1472 = vrot.lane.b32.xlu1 %v5081_v26, %s4412_s30  ;;  %1540 = vrot.lane.b32.xlu0 %v5067_v61, %s4412_s30 }
 0x331   : > { %1299 = vrot.lane.b32.xlu1 %v5083_v24, %s4410_s24  ;;  %1346 = vrot.lane.b32.xlu0 %v5099_v32, %s4410_s24 }
 0x335   : > { %1348 = vrot.lane.b32.xlu1 %v5097_v41, %s4410_s24  ;;  %1445 = vrot.lane.b32.xlu0 %v5099_v32, %s4411_s21 }
 0x339   : > { %1406 = vrot.lane.b32.xlu1 %v5083_v24, %s4411_s21  ;;  %1260 = vrot.lane.b32.xlu0 %v5113_v56, %s4410_s24 }
 0x33d   : > { %1447 = vrot.lane.b32.xlu1 %v5097_v41, %s4411_s21  ;;  %1375 = vrot.lane.b32.xlu0 %v5113_v56, %s4411_s21 }
 0x341   : > { %1505 = vrot.lane.b32.xlu1 %v5083_v24, %s4412_s30  ;;  %1474 = vrot.lane.b32.xlu0 %v5113_v56, %s4412_s30 }
 0x345   : > { %1262 = vrot.lane.b32.xlu1 %v1200_v27, %s4410_s24  ;;  %1301 = vrot.lane.b32.xlu0 %v5115_v16, %s4410_s24 }
 0x349   : > { %1377 = vrot.lane.b32.xlu1 %v1200_v27, %s4411_s21  ;;  %1408 = vrot.lane.b32.xlu0 %v5115_v16, %s4411_s21 }
 0x34d   : > { %1476 = vrot.lane.b32.xlu1 %v1200_v27, %s4412_s30  ;;  %1507 = vrot.lane.b32.xlu0 %v5115_v16, %s4412_s30 }
 0x351   : > { %1303 = vrot.lane.b32.xlu1 %v5133_v34, %s4410_s24  ;;  %1264 = vrot.lane.b32.xlu0 %v1201_v22, %s4410_s24 }
 0x353   : > { %v1253_v60 = vpop.permute.xlu0 %1252 }
 0x354   : > { %1277 = vst.msk [vmem:[#allocation2 + $0x40] sm:$0xff] %vm1203_vm8, %v1253_v60 }
 0x355   : > { %1410 = vrot.lane.b32.xlu1 %v5133_v34, %s4411_s21  ;;  %1379 = vrot.lane.b32.xlu0 %v1201_v22, %s4411_s21 }
 0x357   : > { %v1337_v63 = vpop.permute.xlu1 %1336  ;;  %v1368_v36 = vpop.permute.xlu0 %1367 }
 0x358   : > { %1360 = vst.msk [vmem:[#allocation4 + $0x48] sm:$0xff] %vm1203_vm8, %v1337_v63  ;;  %1392 = vst.msk [vmem:[#allocation2 + $0x80] sm:$0xff] %vm1203_vm8, %v1368_v36 }
 0x359   : > { %1509 = vrot.lane.b32.xlu1 %v5133_v34, %s4412_s30  ;;  %1478 = vrot.lane.b32.xlu0 %v1201_v22, %s4412_s30 }
 0x35b   : > { %v1436_v37 = vpop.permute.xlu1 %1435  ;;  %v1467_v43 = vpop.permute.xlu0 %1466 }
 0x35c   : > { %1459 = vst.msk [vmem:[#allocation4 + $0x88] sm:$0xff] %vm1203_vm8, %v1436_v37  ;;  %1491 = vst.msk [vmem:[#allocation2 + $0xc0] sm:$0xff] %vm1203_vm8, %v1467_v43 }
 0x35d   : > { %1305 = vrot.lane.b32.xlu0 %v5150_v42, %s4410_s24  ;;  %1266 = vrot.lane.b32.xlu1 %v1202_v39, %s4410_s24 }
 0x35f   : > { %v1535_v61 = vpop.permute.xlu1 %1534  ;;  %v1294_v26 = vpop.permute.xlu0 %1293 }
 0x360   : > { %1558 = vst.msk [vmem:[#allocation4 + $0xc8] sm:$0xff] %vm1203_vm8, %v1535_v61  ;;  %1318 = vst.msk [vmem:[#allocation3 + $0x40] sm:$0xff] %vm1203_vm8, %v1294_v26 }
 0x361   : > { %1412 = vrot.lane.b32.xlu0 %v5150_v42, %s4411_s21  ;;  %1381 = vrot.lane.b32.xlu1 %v1202_v39, %s4411_s21 }
 0x363   : > { %v1255_v24 = vpop.permute.xlu1 %1254  ;;  %v1401_v56 = vpop.permute.xlu0 %1400 }
 0x364   : > { %1278 = vst.msk [vmem:[#allocation2 + $0x48] sm:$0xff] %vm1203_vm8, %v1255_v24  ;;  %1425 = vst.msk [vmem:[#allocation3 + $0x80] sm:$0xff] %vm1203_vm8, %v1401_v56 }
 0x365   : > { %1511 = vrot.lane.b32.xlu0 %v5150_v42, %s4412_s30  ;;  %1480 = vrot.lane.b32.xlu1 %v1202_v39, %s4412_s30 }
 0x367   : > { %v1370_v16 = vpop.permute.xlu1 %1369  ;;  %v1500_v29 = vpop.permute.xlu0 %1499 }
 0x368   : > { %1393 = vst.msk [vmem:[#allocation2 + $0x88] sm:$0xff] %vm1203_vm8, %v1370_v16  ;;  %1524 = vst.msk [vmem:[#allocation3 + $0xc0] sm:$0xff] %vm1203_vm8, %v1500_v29 }
 0x369   : > { %1544 = vrot.lane.b32.xlu0 %v5099_v32, %s4412_s30  ;;  %1307 = vrot.lane.b32.xlu1 %v5167_v45, %s4410_s24 }
 0x36b   : > { %v1469_v28 = vpop.permute.xlu1 %1468  ;;  %v1335_v27 = vpop.permute.xlu0 %1334 }
 0x36c   : > { %1492 = vst.msk [vmem:[#allocation2 + $0xc8] sm:$0xff] %vm1203_vm8, %v1469_v28  ;;  %1359 = vst.msk [vmem:[#allocation4 + $0x40] sm:$0xff] %vm1203_vm8, %v1335_v27 }
 0x36d   : > { %1414 = vrot.lane.b32.xlu1 %v5167_v45, %s4411_s21 }
 0x36f   : > { %v1296_v34 = vpop.permute.xlu1 %1295  ;;  %v1434_v35 = vpop.permute.xlu0 %1433 }
 0x370   : > { %1319 = vst.msk [vmem:[#allocation3 + $0x48] sm:$0xff] %vm1203_vm8, %v1296_v34  ;;  %1458 = vst.msk [vmem:[#allocation4 + $0x80] sm:$0xff] %vm1203_vm8, %v1434_v35 }
 0x371   : > { %1513 = vrot.lane.b32.xlu1 %v5167_v45, %s4412_s30 }
 0x373   : > { %v1341_v32 = vpop.permute.xlu1 %1340  ;;  %v1533_v30 = vpop.permute.xlu0 %1532 }
 0x374   : > { %1362 = vst.msk [vmem:[#allocation4 + $0x58] sm:$0xff] %vm1203_vm8, %v1341_v32  ;;  %1557 = vst.msk [vmem:[#allocation4 + $0xc0] sm:$0xff] %vm1203_vm8, %v1533_v30 }
 0x375   : > { %1546 = vrot.lane.b32.xlu1 %v5097_v41, %s4412_s30 }
 0x377   : > { %v1403_v44 = vpop.permute.xlu1 %1402  ;;  %v1339_v38 = vpop.permute.xlu0 %1338 }
 0x378   : > { %1426 = vst.msk [vmem:[#allocation3 + $0x88] sm:$0xff] %vm1203_vm8, %v1403_v44  ;;  %1361 = vst.msk [vmem:[#allocation4 + $0x50] sm:$0xff] %vm1203_vm8, %v1339_v38 }
 0x37b   : > { %v1440_v31 = vpop.permute.xlu1 %1439  ;;  %v1438_v47 = vpop.permute.xlu0 %1437 }
 0x37c   : > { %1461 = vst.msk [vmem:[#allocation4 + $0x98] sm:$0xff] %vm1203_vm8, %v1440_v31  ;;  %1460 = vst.msk [vmem:[#allocation4 + $0x90] sm:$0xff] %vm1203_vm8, %v1438_v47 }
 0x37f   : > { %v1502_v46 = vpop.permute.xlu1 %1501  ;;  %v1537_v40 = vpop.permute.xlu0 %1536 }
 0x380   : > { %1525 = vst.msk [vmem:[#allocation3 + $0xc8] sm:$0xff] %vm1203_vm8, %v1502_v46  ;;  %1559 = vst.msk [vmem:[#allocation4 + $0xd0] sm:$0xff] %vm1203_vm8, %v1537_v40 }
 0x383   : > { %v1539_v22 = vpop.permute.xlu1 %1538  ;;  %v1372_v41 = vpop.permute.xlu0 %1371 }
 0x384   : > { %1560 = vst.msk [vmem:[#allocation4 + $0xd8] sm:$0xff] %vm1203_vm8, %v1539_v22  ;;  %1394 = vst.msk [vmem:[#allocation2 + $0x90] sm:$0xff] %vm1203_vm8, %v1372_v41 }
 0x387   : > { %v1257_v42 = vpop.permute.xlu1 %1256  ;;  %v1471_v58 = vpop.permute.xlu0 %1470 }
 0x388   : > { %1279 = vst.msk [vmem:[#allocation2 + $0x50] sm:$0xff] %vm1203_vm8, %v1257_v42  ;;  %1493 = vst.msk [vmem:[#allocation2 + $0xd0] sm:$0xff] %vm1203_vm8, %v1471_v58 }
 0x38b   : > { %v1345_v19 = vpop.permute.xlu1 %1344  ;;  %v1298_v48 = vpop.permute.xlu0 %1297 }
 0x38c   : > { %1364 = vst.msk [vmem:[#allocation4 + $0x68] sm:$0xff] %vm1203_vm8, %v1345_v19  ;;  %1320 = vst.msk [vmem:[#allocation3 + $0x50] sm:$0xff] %vm1203_vm8, %v1298_v48 }
 0x38f   : > { %v1444_v33 = vpop.permute.xlu1 %1443  ;;  %v1405_v18 = vpop.permute.xlu0 %1404 }
 0x390   : > { %1463 = vst.msk [vmem:[#allocation4 + $0xa8] sm:$0xff] %vm1203_vm8, %v1444_v33  ;;  %1427 = vst.msk [vmem:[#allocation3 + $0x90] sm:$0xff] %vm1203_vm8, %v1405_v18 }
 0x393   : > { %v1543_v23 = vpop.permute.xlu1 %1542  ;;  %v1504_v17 = vpop.permute.xlu0 %1503 }
 0x394   : > { %1562 = vst.msk [vmem:[#allocation4 + $0xe8] sm:$0xff] %vm1203_vm8, %v1543_v23  ;;  %1526 = vst.msk [vmem:[#allocation3 + $0xd0] sm:$0xff] %vm1203_vm8, %v1504_v17 }
 0x397   : > { %v1259_v21 = vpop.permute.xlu1 %1258  ;;  %v1343_v39 = vpop.permute.xlu0 %1342 }
 0x398   : > { %1280 = vst.msk [vmem:[#allocation2 + $0x58] sm:$0xff] %vm1203_vm8, %v1259_v21  ;;  %1363 = vst.msk [vmem:[#allocation4 + $0x60] sm:$0xff] %vm1203_vm8, %v1343_v39 }
 0x39b   : > { %v1374_v45 = vpop.permute.xlu1 %1373  ;;  %v1442_v60 = vpop.permute.xlu0 %1441 }
 0x39c   : > { %1395 = vst.msk [vmem:[#allocation2 + $0x98] sm:$0xff] %vm1203_vm8, %v1374_v45  ;;  %1462 = vst.msk [vmem:[#allocation4 + $0xa0] sm:$0xff] %vm1203_vm8, %v1442_v60 }
 0x39f   : > { %v1473_v63 = vpop.permute.xlu1 %1472  ;;  %v1541_v36 = vpop.permute.xlu0 %1540 }
 0x3a0   : > { %1494 = vst.msk [vmem:[#allocation2 + $0xd8] sm:$0xff] %vm1203_vm8, %v1473_v63  ;;  %1561 = vst.msk [vmem:[#allocation4 + $0xe0] sm:$0xff] %vm1203_vm8, %v1541_v36 }
 0x3a3   : > { %v1300_v37 = vpop.permute.xlu1 %1299  ;;  %v1347_v43 = vpop.permute.xlu0 %1346 }
 0x3a4   : > { %1321 = vst.msk [vmem:[#allocation3 + $0x58] sm:$0xff] %vm1203_vm8, %v1300_v37  ;;  %1365 = vst.msk [vmem:[#allocation4 + $0x70] sm:$0xff] %vm1203_vm8, %v1347_v43 }
 0x3a7   : > { %v1349_v61 = vpop.permute.xlu1 %1348  ;;  %v1446_v26 = vpop.permute.xlu0 %1445 }
 0x3a8   : > { %1366 = vst.msk [vmem:[#allocation4 + $0x78] sm:$0xff] %vm1203_vm8, %v1349_v61  ;;  %1464 = vst.msk [vmem:[#allocation4 + $0xb0] sm:$0xff] %vm1203_vm8, %v1446_v26 }
 0x3ab   : > { %v1407_v24 = vpop.permute.xlu1 %1406  ;;  %v1261_v56 = vpop.permute.xlu0 %1260 }
 0x3ac   : > { %1428 = vst.msk [vmem:[#allocation3 + $0x98] sm:$0xff] %vm1203_vm8, %v1407_v24  ;;  %1281 = vst.msk [vmem:[#allocation2 + $0x60] sm:$0xff] %vm1203_vm8, %v1261_v56 }
 0x3af   : > { %v1448_v16 = vpop.permute.xlu1 %1447  ;;  %v1376_v29 = vpop.permute.xlu0 %1375 }
 0x3b0   : > { %1465 = vst.msk [vmem:[#allocation4 + $0xb8] sm:$0xff] %vm1203_vm8, %v1448_v16  ;;  %1396 = vst.msk [vmem:[#allocation2 + $0xa0] sm:$0xff] %vm1203_vm8, %v1376_v29 }
 0x3b3   : > { %v1506_v28 = vpop.permute.xlu1 %1505  ;;  %v1475_v27 = vpop.permute.xlu0 %1474 }
 0x3b4   : > { %1527 = vst.msk [vmem:[#allocation3 + $0xd8] sm:$0xff] %vm1203_vm8, %v1506_v28  ;;  %1495 = vst.msk [vmem:[#allocation2 + $0xe0] sm:$0xff] %vm1203_vm8, %v1475_v27 }
 0x3b7   : > { %v1263_v34 = vpop.permute.xlu1 %1262  ;;  %v1302_v35 = vpop.permute.xlu0 %1301 }
 0x3b8   : > { %1282 = vst.msk [vmem:[#allocation2 + $0x68] sm:$0xff] %vm1203_vm8, %v1263_v34  ;;  %1322 = vst.msk [vmem:[#allocation3 + $0x60] sm:$0xff] %vm1203_vm8, %v1302_v35 }
 0x3bb   : > { %v1378_v32 = vpop.permute.xlu1 %1377  ;;  %v1409_v30 = vpop.permute.xlu0 %1408 }
 0x3bc   : > { %1397 = vst.msk [vmem:[#allocation2 + $0xa8] sm:$0xff] %vm1203_vm8, %v1378_v32  ;;  %1429 = vst.msk [vmem:[#allocation3 + $0xa0] sm:$0xff] %vm1203_vm8, %v1409_v30 }
 0x3bf   : > { %v1477_v44 = vpop.permute.xlu1 %1476  ;;  %v1508_v38 = vpop.permute.xlu0 %1507 }
 0x3c0   : > { %1496 = vst.msk [vmem:[#allocation2 + $0xe8] sm:$0xff] %vm1203_vm8, %v1477_v44  ;;  %1528 = vst.msk [vmem:[#allocation3 + $0xe0] sm:$0xff] %vm1203_vm8, %v1508_v38 }
 0x3c3   : > { %v1304_v31 = vpop.permute.xlu1 %1303  ;;  %v1265_v47 = vpop.permute.xlu0 %1264 }
 0x3c4   : > { %1323 = vst.msk [vmem:[#allocation3 + $0x68] sm:$0xff] %vm1203_vm8, %v1304_v31  ;;  %1283 = vst.msk [vmem:[#allocation2 + $0x70] sm:$0xff] %vm1203_vm8, %v1265_v47 }
 0x3c7   : > { %v1411_v46 = vpop.permute.xlu1 %1410  ;;  %v1380_v40 = vpop.permute.xlu0 %1379 }
 0x3c8   : > { %1430 = vst.msk [vmem:[#allocation3 + $0xa8] sm:$0xff] %vm1203_vm8, %v1411_v46  ;;  %1398 = vst.msk [vmem:[#allocation2 + $0xb0] sm:$0xff] %vm1203_vm8, %v1380_v40 }
 0x3cb   : > { %v1510_v22 = vpop.permute.xlu1 %1509  ;;  %v1479_v41 = vpop.permute.xlu0 %1478 }
 0x3cc   : > { %1529 = vst.msk [vmem:[#allocation3 + $0xe8] sm:$0xff] %vm1203_vm8, %v1510_v22  ;;  %1497 = vst.msk [vmem:[#allocation2 + $0xf0] sm:$0xff] %vm1203_vm8, %v1479_v41 }
 0x3cf   : > { %v1267_v42 = vpop.permute.xlu1 %1266  ;;  %v1306_v58 = vpop.permute.xlu0 %1305 }
 0x3d0   : > { %1284 = vst.msk [vmem:[#allocation2 + $0x78] sm:$0xff] %vm1203_vm8, %v1267_v42  ;;  %1324 = vst.msk [vmem:[#allocation3 + $0x70] sm:$0xff] %vm1203_vm8, %v1306_v58 }
 0x3d3   : > { %v1382_v19 = vpop.permute.xlu1 %1381  ;;  %v1413_v48 = vpop.permute.xlu0 %1412 }
 0x3d4   : > { %1399 = vst.msk [vmem:[#allocation2 + $0xb8] sm:$0xff] %vm1203_vm8, %v1382_v19  ;;  %1431 = vst.msk [vmem:[#allocation3 + $0xb0] sm:$0xff] %vm1203_vm8, %v1413_v48 }
 0x3d7   : > { %v1481_v33 = vpop.permute.xlu1 %1480  ;;  %v1512_v18 = vpop.permute.xlu0 %1511 }
 0x3d8   : > { %1498 = vst.msk [vmem:[#allocation2 + $0xf8] sm:$0xff] %vm1203_vm8, %v1481_v33  ;;  %1530 = vst.msk [vmem:[#allocation3 + $0xf0] sm:$0xff] %vm1203_vm8, %v1512_v18 }
 0x3db   : > { %v1308_v23 = vpop.permute.xlu1 %1307  ;;  %v1545_v17 = vpop.permute.xlu0 %1544 }
 0x3dc   : > { %1325 = vst.msk [vmem:[#allocation3 + $0x78] sm:$0xff] %vm1203_vm8, %v1308_v23  ;;  %1563 = vst.msk [vmem:[#allocation4 + $0xf0] sm:$0xff] %vm1203_vm8, %v1545_v17 }
 0x3df   : > { %v1415_v21 = vpop.permute.xlu1 %1414 }
 0x3e0   : > { %1432 = vst.msk [vmem:[#allocation3 + $0xb8] sm:$0xff] %vm1203_vm8, %v1415_v21 }
 0x3e3   : > { %v1514_v39 = vpop.permute.xlu1 %1513 }
 0x3e4   : > { %1531 = vst.msk [vmem:[#allocation3 + $0xf8] sm:$0xff] %vm1203_vm8, %v1514_v39 }
 0x3e7   : > { %v1547_v45 = vpop.permute.xlu1 %1546 }
 0x3e8   : > { %1564 = vst.msk [vmem:[#allocation4 + $0xf8] sm:$0xff] %vm1203_vm8, %v1547_v45 }
 0x3e9 LB: >> { %s5335_s13 = sshll.u32 %s4394_s20, 6  ;;  %vm1780_vm9 = vcmask 523264   ;;  %s1570_s20 = sadd.s32 1, %s4394_s20   ;;  %s4394_s20 = sphi %s5329_s20, %s1570_s20  }
 0x3ea   : >> { %s1583_s8 = scalar_lea.vmem [#allocation3], %s5335_s13  ;;  %s5343_s22 = scalar_lea.vmem [#allocation2], %s5335_s13 }
 0x3eb   : >> { %v1584_v60 = vld [vmem:[%s1583_s8] sm:$0xff]  ;;  %v1585_v36 = vld [vmem:[%s1583_s8 + $0x8] sm:$0xff]  ;;  %v1586_v29 = vld [vmem:[%s1583_s8 + $0x10] sm:$0xff]  ;;  %s1593_s15 = scalar_lea.vmem [#allocation4], %s5335_s13  ;;  %s5499_s4 = scalar_lea.vmem [#allocation5], %s5335_s13 }
 0x3ec   : >> { %v1588_v63 = vld [vmem:[%s1583_s8 + $0x20] sm:$0xff]  ;;  %3804 = vmatprep.subr.msk.bf16.mxu0 %vm1203_vm8, %v1584_v60  ;;  %v1615_v37 = vsel %vm1203_vm8, %v1584_v60, 0  ;;  %v1589_v61 = vld [vmem:[%s1583_s8 + $0x28] sm:$0xff]  ;;  %v1618_v56 = vsel %vm1203_vm8, %v1585_v36, 0  ;;  %v1590_v28 = vld [vmem:[%s1583_s8 + $0x30] sm:$0xff]  ;;  %v1621_v27 = vsel %vm1203_vm8, %v1586_v29, 0 }
 0x3ed   : >> { %3808 = vmatprep.subr.msk.bf16.mxu1 %vm1203_vm8, %v1588_v63  ;;  %v1704_v43 = vsel %vm1203_vm8, %v1588_v63, 0  ;;  %3693 = vmatpush3.bf16.xpose.msra.mxu0 %v1615_v37  ;;  %v1574_v26 = vld [vmem:[%s5343_s22] sm:$0xff]  ;;  %v1707_v16 = vsel %vm1203_vm8, %v1589_v61, 0  ;;  %v1710_v34 = vsel %vm1203_vm8, %v1590_v28, 0  ;;  %v1587_v35 = vld [vmem:[%s1583_s8 + $0x18] sm:$0xff]  ;;  %v1575_v38 = vld [vmem:[%s5343_s22 + $0x8] sm:$0xff] }
 0x3ee   : >> { %3709 = vmatpush3.bf16.xpose.msra.mxu1 %v1704_v43  ;;  %3805 = vmatprep.subr.msk.bf16.mxu0 %vm1203_vm8, %v1585_v36  ;;  %v1578_v24 = vld [vmem:[%s5343_s22 + $0x20] sm:$0xff]  ;;  %v1591_v32 = vld [vmem:[%s1583_s8 + $0x38] sm:$0xff]  ;;  %v1624_v30 = vsel %vm1203_vm8, %v1587_v35, 0  ;;  %v1579_v31 = vld [vmem:[%s5343_s22 + $0x28] sm:$0xff]  ;;  %p1567_p2 = scmp.ge.s32.totalorder %s1570_s20, 4  }
 0x3ef   : >> { %3809 = vmatprep.subr.msk.bf16.mxu1 %vm1203_vm8, %v1589_v61  ;;  %3700 = vmatprep.mubr.msk.bf16.mxu0 %vm1203_vm8, %v1574_v26  ;;  %v1713_v44 = vsel %vm1203_vm8, %v1591_v32, 0  ;;  %v1576_v47 = vld [vmem:[%s5343_s22 + $0x10] sm:$0xff]  ;;  %v1577_v40 = vld [vmem:[%s5343_s22 + $0x18] sm:$0xff]  ;;  %vm2194_vm10 = vcmask (%p1567_p2), 523520   ;;  %vm2244_vm11 = vcmask (%p1567_p2), 785920   ;;  %vm2294_vm12 = vcmask (%p1567_p2), 1048320  }
 0x3f0   : >> { %3716 = vmatprep.mubr.msk.bf16.mxu1 %vm1203_vm8, %v1578_v24  ;;  %v1580_v46 = vld [vmem:[%s5343_s22 + $0x30] sm:$0xff]  ;;  %v1581_v22 = vld [vmem:[%s5343_s22 + $0x38] sm:$0xff]  ;;  %s6019_s23 = sld [smem:[#allocation25_spill]] (%p1567_p2)  ;;  %s6021_s13 = sld [smem:[#allocation27_spill]] (%p1567_p2) }
 0x3f1   : > { %s3273_s19 = sshll.u32 (%p1567_p2), %s5327_s16, 4  ;;  %s6023_s1 = sld [smem:[#allocation30_spill]] (%p1567_p2)  ;;  %s5926_s19 = int_to_ptr.vmem [resolvable:$true] %s3273_s19 }
 0x3f2   : > { %p6024_p10 = scmp.ne.s32.totalorder (%p1567_p2), %s6007_s29, 0 }
 0x3f5   : >> { %3695 = vmatpush3.bf16.xpose.msra.mxu0 %v1618_v56 }
 0x3f6   : >> { %3711 = vmatpush3.bf16.xpose.msra.mxu1 %v1707_v16  ;;  %3806 = vmatprep.subr.msk.bf16.mxu0 %vm1203_vm8, %v1586_v29 }
 0x3f7   : >> { %3810 = vmatprep.subr.msk.bf16.mxu1 %vm1203_vm8, %v1590_v28 }
 0x3fd   : >> { %3697 = vmatpush3.bf16.xpose.msra.mxu0 %v1621_v27 }
 0x3fe   : >> { %3713 = vmatpush3.bf16.xpose.msra.mxu1 %v1710_v34  ;;  %3807 = vmatprep.subr.msk.bf16.mxu0 %vm1203_vm8, %v1587_v35 }
 0x3ff   : >> { %3811 = vmatprep.subr.msk.bf16.mxu1 %vm1203_vm8, %v1591_v32 }
 0x405   : >> { %3699 = vmatpush3.bf16.xpose.msra.mxu0 %v1624_v30 }
 0x406   : >> { %3715 = vmatpush3.bf16.xpose.msra.mxu1 %v1713_v44 }
 0x40c   : >> { %3701 = vmatmul.mubr.msk.bf16.vlgmr.msra.gmra.mrb[0].mxu0 %vm1203_vm8, %v1575_v38 }
 0x40d   : >> { %3717 = vmatmul.mubr.msk.bf16.vlgmr.msra.gmra.mrb[0].mxu1 %vm1203_vm8, %v1579_v31  ;;  %3704 = vmatprep.mubr.msk.bf16.mxu0 %vm1203_vm8, %v1576_v47 }
 0x40e   : >> { %3720 = vmatprep.mubr.msk.bf16.mxu1 %vm1203_vm8, %v1580_v46 }
 0x414   : >> { %3705 = vmatmul.mubr.msk.bf16.gmra.mrb[4].mxu0 %vm1203_vm8, %v1577_v40 }
 0x415   : >> { %3721 = vmatmul.mubr.msk.bf16.gmra.mrb[4].mxu1 %vm1203_vm8, %v1581_v22 }
 0x4df   : >> { %v3702_v41 = vpop.f32.mrb[0].mxu0 }
 0x4e0   : >> { %v3718_v42 = vpop.f32.mrb[0].mxu1  ;;  %v5374_v58 = vadd.f32 %v3702_v41, %v4967_v25  ;;  %v1660_v19 = vpop.f32.mrb[1].mxu0 }
 0x4e1   : >> { %v1749_v48 = vpop.f32.mrb[1].mxu1  ;;  %v3703_v18 = vpop.f32.mrb[2].mxu0  ;;  %v5380_v17 = vadd.f32 %v3718_v42, %v4967_v25  ;;  %v5390_v36 = vadd.f32 %v1660_v19, %v4963_v50  ;;  %v4060_v25 = vld [vmem:[#allocation12 + $0x10] sm:$0xff] (%p1567_p2)  }
 0x4e2   : >> { %v5377_v33 = vadd.f32 %v1749_v48, %v4963_v50  ;;  %v3719_v23 = vpop.f32.mrb[2].mxu1  ;;  %v1663_v21 = vpop.f32.mrb[3].mxu0  ;;  %v1787_v45 = vsel %vm1780_vm9, %v5374_v58, -inf  ;;  %v5385_v60 = vadd.f32 %v3703_v18, %v4969_v52  ;;  %v4059_v50 = vld [vmem:[#allocation12 + $0x8] sm:$0xff] (%p1567_p2)  }
 0x4e3   : >> { %v1752_v39 = vpop.f32.mrb[3].mxu1  ;;  %1788 = vmax.xlane.f32.xlu0 %v1787_v45  ;;  %v1811_v37 = vsel %vm1780_vm9, %v5380_v17, -inf  ;;  %v5395_v43 = vadd.f32 %v3719_v23, %v4969_v52  ;;  %v5400_v27 = vadd.f32 %v1663_v21, %v4965_v51  ;;  %v1781_v34 = vsel %vm1780_vm9, %v5390_v36, -inf }
 0x4e4   : >> { %v1805_v63 = vsel %vm1780_vm9, %v5377_v33, -inf  ;;  %v1790_v61 = vsel %vm1780_vm9, %v5385_v60, -inf  ;;  %v5405_v30 = vadd.f32 %v1752_v39, %v4965_v51 }
 0x4e5   : >> { %1806 = vmax.xlane.f32.xlu1 %v1805_v63  ;;  %v1814_v44 = vsel %vm1780_vm9, %v5395_v43, -inf  ;;  %v1784_v31 = vsel %vm1780_vm9, %v5400_v27, -inf }
 0x4e6   : >> { %v1808_v46 = vsel %vm1780_vm9, %v5405_v30, -inf }
 0x4e7   : >> { %1812 = vmax.xlane.f32.xlu0 %v1811_v37  ;;  %v3706_v26 = vpop.f32.mrb[4].mxu0 }
 0x4e8   : >> { %v3722_v24 = vpop.f32.mrb[4].mxu1  ;;  %v1676_v56 = vpop.f32.mrb[5].mxu0  ;;  %v5410_v38 = vadd.f32 %v3706_v26, %v4975_v53 }
 0x4e9   : >> { %1791 = vmax.xlane.f32.xlu1 %v1790_v61  ;;  %v1765_v16 = vpop.f32.mrb[5].mxu1  ;;  %v3707_v29 = vpop.f32.mrb[6].mxu0  ;;  %v5422_v22 = vadd.f32 %v1676_v56, %v4971_v49  ;;  %v5440_v21 = vadd.f32 %v3722_v24, %v4975_v53  ;;  %v1594_v61 = vld [vmem:[%s1593_s15] sm:$0xff]  ;;  %v1595_v56 = vld [vmem:[%s1593_s15 + $0x8] sm:$0xff] }
 0x4ea   : >> { %v3723_v28 = vpop.f32.mrb[6].mxu1  ;;  %v1679_v35 = vpop.f32.mrb[7].mxu0  ;;  %v5415_v47 = vadd.f32 %v3707_v29, %v4977_v54  ;;  %v1799_v40 = vsel %vm1780_vm9, %v5410_v38, -inf  ;;  %v5430_v19 = vadd.f32 %v1765_v16, %v4971_v49  ;;  %3724 = vmatprep.subr.bf16.mxu0 %v1594_v61  ;;  %v1598_v24 = vld [vmem:[%s1593_s15 + $0x20] sm:$0xff]  ;;  %v1599_v16 = vld [vmem:[%s1593_s15 + $0x28] sm:$0xff]  ;;  %v1596_v29 = vld [vmem:[%s1593_s15 + $0x10] sm:$0xff] }
 0x4eb   : >> { %v1768_v32 = vpop.f32.mrb[7].mxu1  ;;  %1782 = vmax.xlane.f32.xlu0 %v1781_v34  ;;  %v5425_v41 = vadd.f32 %v1679_v35, %v4973_v55  ;;  %v1793_v48 = vsel %vm1780_vm9, %v5422_v22, -inf  ;;  %v5445_v45 = vadd.f32 %v3723_v28, %v4977_v54  ;;  %v1823_v37 = vsel %vm1780_vm9, %v5440_v21, -inf  ;;  %3725 = vmatpush3.bf16.msra.mxu0 %v1594_v61  ;;  %v1600_v28 = vld [vmem:[%s1593_s15 + $0x30] sm:$0xff]  ;;  %v1597_v34 = vld [vmem:[%s1593_s15 + $0x18] sm:$0xff] }
 0x4ec   : >> { %v1802_v42 = vsel %vm1780_vm9, %v5415_v47, -inf  ;;  %v5435_v18 = vadd.f32 %v1768_v32, %v4973_v55  ;;  %v1817_v39 = vsel %vm1780_vm9, %v5430_v19, -inf  ;;  %3740 = vmatprep.subr.bf16.mxu1 %v1598_v24  ;;  %3726 = vmatprep.subr.bf16.mxu0 %v1595_v56  ;;  %v1601_v35 = vld [vmem:[%s1593_s15 + $0x38] sm:$0xff]  ;;  %s6022_s15 = sld [smem:[#allocation29_spill]] (%p1567_p2) }
 0x4ed   : >> { %1815 = vmax.xlane.f32.xlu1 %v1814_v44  ;;  %v1796_v23 = vsel %vm1780_vm9, %v5425_v41, -inf  ;;  %v1826_v26 = vsel %vm1780_vm9, %v5445_v45, -inf  ;;  %3741 = vmatpush3.bf16.msra.mxu1 %v1598_v24  ;;  %v4061_v54 = vld [vmem:[#allocation12 + $0x18] sm:$0xff] (%p1567_p2)  }
 0x4ee   : >> { %v1820_v63 = vsel %vm1780_vm9, %v5435_v18, -inf  ;;  %3742 = vmatprep.subr.bf16.mxu1 %v1599_v16 }
 0x4ef   : >> { %1785 = vmax.xlane.f32.xlu0 %v1784_v31  ;;  %3727 = vmatpush3.bf16.msra.mxu0 %v1595_v56 }
 0x4f0   : >> { %3728 = vmatprep.subr.bf16.mxu0 %v1596_v29 }
 0x4f1   : >> { %1809 = vmax.xlane.f32.xlu1 %v1808_v46  ;;  %3743 = vmatpush3.bf16.msra.mxu1 %v1599_v16 }
 0x4f2   : >> { %3744 = vmatprep.subr.bf16.mxu1 %v1600_v28 }
 0x4f3   : >> { %1800 = vmax.xlane.f32.xlu0 %v1799_v40  ;;  %3729 = vmatpush3.bf16.msra.mxu0 %v1596_v29 }
 0x4f4   : >> { %3730 = vmatprep.subr.bf16.mxu0 %v1597_v34 }
 0x4f5   : >> { %1803 = vmax.xlane.f32.xlu1 %v1802_v42  ;;  %3745 = vmatpush3.bf16.msra.mxu1 %v1600_v28 }
 0x4f6   : >> { %3746 = vmatprep.subr.bf16.mxu1 %v1601_v35 }
 0x4f7   : >> { %1794 = vmax.xlane.f32.xlu0 %v1793_v48  ;;  %3731 = vmatpush3.bf16.msra.mxu0 %v1597_v34 }
 0x4f9   : >> { %1797 = vmax.xlane.f32.xlu1 %v1796_v23  ;;  %3747 = vmatpush3.bf16.msra.mxu1 %v1601_v35 }
 0x4fb   : >> { %1818 = vmax.xlane.f32.xlu0 %v1817_v39 }
 0x4fd   : >> { %1821 = vmax.xlane.f32.xlu1 %v1820_v63 }
 0x4ff   : >> { %1824 = vmax.xlane.f32.xlu0 %v1823_v37 }
 0x501   : >> { %1827 = vmax.xlane.f32.xlu1 %v1826_v26 }
 0x570   : >> { %v1789_v32 = vpop.xlane.xlu0 %1788 }
 0x571   : >> { %v1831_v44 = vsub.f32 %v5374_v58, %v1789_v32 }
 0x572   : >> { %v1807_v31 = vpop.xlane.xlu1 %1806 }
 0x573   : >> { %v1849_v46 = vmul.f32 1.442695, %v1831_v44  ;;  %v1837_v39 = vsub.f32 %v5377_v33, %v1807_v31 }
 0x574   : >> { %v1813_v40 = vpop.xlane.xlu0 %1812 }
 0x575   : >> { %3994 = vpow2.f32 %v1849_v46  ;;  %v1839_v42 = vsub.f32 %v5380_v17, %v1813_v40  ;;  %v1861_v56 = vmul.f32 1.442695, %v1837_v39 }
 0x576   : >> { %v1792_v48 = vpop.xlane.xlu1 %1791 }
 0x577   : >> { %v1832_v23 = vsub.f32 %v5385_v60, %v1792_v48  ;;  %v1865_v63 = vmul.f32 1.442695, %v1839_v42 }
 0x578   : >> { %v1783_v61 = vpop.xlane.xlu0 %1782 }
 0x579   : >> { %v1851_v37 = vmul.f32 1.442695, %v1832_v23  ;;  %3996 = vpow2.f32 %v1865_v63  ;;  %v1829_v26 = vsub.f32 %v5390_v36, %v1783_v61 }
 0x57a   : >> { %v1816_v24 = vpop.xlane.xlu1 %1815 }
 0x57b   : >> { %3998 = vpow2.f32 %v1851_v37  ;;  %v1840_v58 = vsub.f32 %v5395_v43, %v1816_v24  ;;  %v1845_v16 = vmul.f32 1.442695, %v1829_v26 }
 0x57c   : >> { %v1786_v28 = vpop.xlane.xlu0 %1785 }
 0x57d   : >> { %v1867_v29 = vmul.f32 1.442695, %v1840_v58  ;;  %4000 = vpow2.f32 %v1845_v16  ;;  %v1830_v17 = vsub.f32 %v5400_v27, %v1786_v28 }
 0x57e   : >> { %v1810_v60 = vpop.xlane.xlu1 %1809 }
 0x57f   : >> { %4002 = vpow2.f32 %v1867_v29  ;;  %v1838_v33 = vsub.f32 %v5405_v30, %v1810_v60  ;;  %v5462_v34 = vpop.eup %3994  ;;  %v1847_v35 = vmul.f32 1.442695, %v1830_v17 }
 0x580   : >> { %4004 = vpow2.f32 %v1861_v56  ;;  %v1801_v32 = vpop.xlane.xlu0 %1800  ;;  %v1883_v43 = vsel %vm1780_vm9, %v5462_v34, 0.0 }
 0x581   : >> { %v1863_v36 = vmul.f32 1.442695, %v1838_v33  ;;  %4006 = vpow2.f32 %v1847_v35  ;;  %v1835_v44 = vsub.f32 %v5410_v38, %v1801_v32  ;;  %1884 = vadd.xlane.f32.xlu0 %v1883_v43 }
 0x582   : >> { %v1804_v31 = vpop.xlane.xlu1 %1803 }
 0x583   : >> { %4008 = vpow2.f32 %v1863_v36  ;;  %v1836_v27 = vsub.f32 %v5415_v47, %v1804_v31  ;;  %v3997_v46 = vpop.eup %3996  ;;  %v1857_v40 = vmul.f32 1.442695, %v1835_v44 }
 0x584   : >> { %v1795_v48 = vpop.xlane.xlu0 %1794  ;;  %v1907_v23 = vsel %vm1780_vm9, %v3997_v46, 0.0 }
 0x585   : >> { %v3999_v30 = vpop.eup %3998  ;;  %v1859_v42 = vmul.f32 1.442695, %v1836_v27  ;;  %4010 = vpow2.f32 %v1857_v40  ;;  %v1833_v39 = vsub.f32 %v5422_v22, %v1795_v48  ;;  %1908 = vadd.xlane.f32.xlu0 %v1907_v23 }
 0x586   : >> { %v1798_v63 = vpop.xlane.xlu1 %1797  ;;  %v1886_v37 = vsel %vm1780_vm9, %v3999_v30, 0.0 }
 0x587   : >> { %v1834_v38 = vsub.f32 %v5425_v41, %v1798_v63  ;;  %1887 = vadd.xlane.f32.xlu1 %v1886_v37  ;;  %v4001_v61 = vpop.eup %4000  ;;  %v1853_v26 = vmul.f32 1.442695, %v1833_v39  ;;  %4012 = vpow2.f32 %v1859_v42 }
 0x588   : >> { %v1819_v58 = vpop.xlane.xlu0 %1818  ;;  %v1877_v56 = vsel %vm1780_vm9, %v4001_v61, 0.0 }
 0x589   : >> { %v4003_v47 = vpop.eup %4002  ;;  %v1855_v24 = vmul.f32 1.442695, %v1834_v38  ;;  %4014 = vpow2.f32 %v1853_v26  ;;  %v1841_v29 = vsub.f32 %v5430_v19, %v1819_v58  ;;  %1878 = vadd.xlane.f32.xlu0 %v1877_v56  ;;  %v1942_v19 = vpack.c.bf16 %v3999_v30, %v5462_v34 }
 0x58a   : >> { %v4005_v16 = vpop.eup %4004  ;;  %v1822_v22 = vpop.xlane.xlu1 %1821  ;;  %v1910_v28 = vsel %vm1780_vm9, %v4003_v47, 0.0 }
 0x58b   : >> { %4016 = vpow2.f32 %v1855_v24  ;;  %v1842_v41 = vsub.f32 %v5435_v18, %v1822_v22  ;;  %1911 = vadd.xlane.f32.xlu1 %v1910_v28  ;;  %v4007_v17 = vpop.eup %4006  ;;  %v1869_v60 = vmul.f32 1.442695, %v1841_v29  ;;  %v1901_v32 = vsel %vm1780_vm9, %v4005_v16, 0.0 }
 0x58c   : >> { %v1825_v36 = vpop.xlane.xlu0 %1824  ;;  %v1941_v43 = vpack.c.bf16 %v4007_v17, %v4001_v61  ;;  %v1880_v44 = vsel %vm1780_vm9, %v4007_v17, 0.0  ;;  %v1946_v18 = vpack.c.bf16 %v4003_v47, %v3997_v46 }
 0x58d   : >> { %v4009_v33 = vpop.eup %4008  ;;  %v1871_v35 = vmul.f32 1.442695, %v1842_v41  ;;  %4018 = vpow2.f32 %v1869_v60  ;;  %v1843_v31 = vsub.f32 %v5440_v21, %v1825_v36  ;;  %1902 = vadd.xlane.f32.xlu0 %v1901_v32 }
 0x58e   : >> { %v1828_v27 = vpop.xlane.xlu1 %1827  ;;  %v1945_v40 = vpack.c.bf16 %v4009_v33, %v4005_v16  ;;  %3732 = vmatprep.mubr.msk.bf16.mxu0 %vm1780_vm9, %v1941_v43  ;;  %v1904_v46 = vsel %vm1780_vm9, %v4009_v33, 0.0 }
 0x58f   : >> { %4020 = vpow2.f32 %v1871_v35  ;;  %v1844_v42 = vsub.f32 %v5445_v45, %v1828_v27  ;;  %1881 = vadd.xlane.f32.xlu1 %v1880_v44  ;;  %v4011_v48 = vpop.eup %4010  ;;  %v1873_v23 = vmul.f32 1.442695, %v1843_v31  ;;  %3733 = vmatmul.mubr.msk.bf16.vlgmr.msra.gmra.mrb[8].mxu0 %vm1780_vm9, %v1942_v19 }
 0x590   : >> { %3748 = vmatprep.mubr.msk.bf16.mxu1 %vm1780_vm9, %v1945_v40  ;;  %v1895_v21 = vsel %vm1780_vm9, %v4011_v48, 0.0 }
 0x591   : >> { %v1875_v34 = vmul.f32 1.442695, %v1844_v42  ;;  %3749 = vmatmul.mubr.msk.bf16.vlgmr.msra.gmra.mrb[8].mxu1 %vm1780_vm9, %v1946_v18  ;;  %4022 = vpow2.f32 %v1873_v23  ;;  %1896 = vadd.xlane.f32.xlu0 %v1895_v21  ;;  %v4013_v30 = vpop.eup %4012 }
 0x592   : >> { %v1898_v37 = vsel %vm1780_vm9, %v4013_v30, 0.0  ;;  %v1944_v61 = vpack.c.bf16 %v4013_v30, %v4011_v48 }
 0x593   : >> { %4024 = vpow2.f32 %v1875_v34  ;;  %1905 = vadd.xlane.f32.xlu1 %v1904_v46  ;;  %v4015_v45 = vpop.eup %4014 }
 0x594   : >> { %v1889_v63 = vsel %vm1780_vm9, %v4015_v45, 0.0 }
 0x595   : >> { %v4017_v39 = vpop.eup %4016  ;;  %1890 = vadd.xlane.f32.xlu0 %v1889_v63 }
 0x596   : >> { %v1943_v38 = vpack.c.bf16 %v4017_v39, %v4015_v45  ;;  %v1892_v58 = vsel %vm1780_vm9, %v4017_v39, 0.0 }
 0x597   : >> { %1899 = vadd.xlane.f32.xlu1 %v1898_v37  ;;  %v4019_v26 = vpop.eup %4018 }
 0x598   : >> { %3736 = vmatprep.mubr.msk.bf16.mxu0 %vm1780_vm9, %v1943_v38  ;;  %v1913_v24 = vsel %vm1780_vm9, %v4019_v26, 0.0 }
 0x599   : >> { %v4021_v47 = vpop.eup %4020  ;;  %3737 = vmatmul.mubr.msk.bf16.gmra.mrb[12].mxu0 %vm1780_vm9, %v1944_v61  ;;  %1914 = vadd.xlane.f32.xlu0 %v1913_v24 }
 0x59a   : >> { %v1947_v56 = vpack.c.bf16 %v4021_v47, %v4019_v26  ;;  %v1916_v28 = vsel %vm1780_vm9, %v4021_v47, 0.0 }
 0x59b   : >> { %1893 = vadd.xlane.f32.xlu1 %v1892_v58  ;;  %v4023_v16 = vpop.eup %4022 }
 0x59c   : >> { %3752 = vmatprep.mubr.msk.bf16.mxu1 %vm1780_vm9, %v1947_v56  ;;  %v1919_v22 = vsel %vm1780_vm9, %v4023_v16, 0.0 }
 0x59d   : >> { %v4025_v29 = vpop.eup %4024  ;;  %1920 = vadd.xlane.f32.xlu0 %v1919_v22 }
 0x59e   : >> { %v1948_v41 = vpack.c.bf16 %v4025_v29, %v4023_v16  ;;  %v1922_v17 = vsel %vm1780_vm9, %v4025_v29, 0.0 }
 0x59f   : >> { %1917 = vadd.xlane.f32.xlu1 %v1916_v28 }
 0x5a0   : >> { %3753 = vmatmul.mubr.msk.bf16.gmra.mrb[12].mxu1 %vm1780_vm9, %v1948_v41 }
 0x5a1   : > { %2865 = vmatprep.mubr.bf16.mxu1 (%p1567_p2), %v4408_v20 }
 0x5a3   : >> { %1923 = vadd.xlane.f32.xlu1 %v1922_v17 }
 0x60e   : >> { %v1885_v60 = vpop.xlane.xlu0 %1884 }
 0x60f   : >> { %4026 = vrcp.f32 %v1885_v60 }
 0x612   : >> { %v1909_v35 = vpop.xlane.xlu0 %1908 }
 0x613   : >> { %4028 = vrcp.f32 %v1909_v35 }
 0x614   : >> { %v1888_v33 = vpop.xlane.xlu1 %1887 }
 0x615   : >> { %4030 = vrcp.f32 %v1888_v33 }
 0x616   : >> { %v1879_v32 = vpop.xlane.xlu0 %1878 }
 0x617   : >> { %4032 = vrcp.f32 %v1879_v32 }
 0x618   : >> { %v1912_v36 = vpop.xlane.xlu1 %1911 }
 0x619   : >> { %4034 = vrcp.f32 %v1912_v36  ;;  %v4027_v42 = vpop.eup %4026 }
 0x61a   : >> { %v1903_v44 = vpop.xlane.xlu0 %1902 }
 0x61b   : >> { %4036 = vrcp.f32 %v1903_v44 }
 0x61c   : >> { %v1882_v43 = vpop.xlane.xlu1 %1881 }
 0x61d   : >> { %4038 = vrcp.f32 %v1882_v43  ;;  %v4029_v48 = vpop.eup %4028 }
 0x61e   : >> { %v1897_v31 = vpop.xlane.xlu0 %1896 }
 0x61f   : >> { %v4031_v34 = vpop.eup %4030 }
 0x620   : >> { %v1906_v19 = vpop.xlane.xlu1 %1905 }
 0x621   : >> { %4040 = vrcp.f32 %v1906_v19  ;;  %v4033_v46 = vpop.eup %4032 }
 0x622   : >> { %v1891_v40 = vpop.xlane.xlu0 %1890  ;;  %4042 = vrcp.f32 %v1897_v31 }
 0x623   : >> { %4044 = vrcp.f32 %v1891_v40  ;;  %v4035_v45 = vpop.eup %4034 }
 0x624   : >> { %v1900_v27 = vpop.xlane.xlu1 %1899 }
 0x625   : >> { %4046 = vrcp.f32 %v1900_v27  ;;  %v4037_v37 = vpop.eup %4036 }
 0x626   : >> { %v1915_v23 = vpop.xlane.xlu0 %1914 }
 0x627   : >> { %v4039_v26 = vpop.eup %4038 }
 0x628   : >> { %v1894_v18 = vpop.xlane.xlu1 %1893 }
 0x629   : >> { %4048 = vrcp.f32 %v1894_v18 }
 0x62a   : >> { %v1921_v29 = vpop.xlane.xlu0 %1920  ;;  %4050 = vrcp.f32 %v1915_v23 }
 0x62b   : >> { %v4041_v16 = vpop.eup %4040  ;;  %4052 = vrcp.f32 %v1921_v29 }
 0x62c   : >> { %v1918_v21 = vpop.xlane.xlu1 %1917  ;;  %v4043_v31 = vpop.eup %4042 }
 0x62d   : >> { %v4045_v40 = vpop.eup %4044 }
 0x630   : >> { %v1924_v33 = vpop.xlane.xlu1 %1923 }
 0x631   : >> { %4054 = vrcp.f32 %v1924_v33 }
 0x632   : >> { %4056 = vrcp.f32 %v1918_v21 }
 0x662   : >> { %v3734_v30 = vpop.f32.mrb[8].mxu0 }
 0x663   : >> { %v1995_v39 = vpop.f32.mrb[9].mxu0  ;;  %v2105_v47 = vmul.f32 %v4027_v42, %v3734_v30  ;;  %v4047_v42 = vpop.eup %4046 }
 0x664   : >> { %v3750_v63 = vpop.f32.mrb[8].mxu1  ;;  %v3735_v38 = vpop.f32.mrb[10].mxu0  ;;  %v2103_v22 = vmul.f32 %v4033_v46, %v1995_v39 }
 0x665   : >> { %v2072_v61 = vpop.f32.mrb[9].mxu1  ;;  %v2106_v24 = vmul.f32 %v4031_v34, %v3735_v38  ;;  %v1998_v58 = vpop.f32.mrb[11].mxu0  ;;  %v2113_v28 = vmul.f32 %v4029_v48, %v3750_v63 }
 0x666   : >> { %v3751_v56 = vpop.f32.mrb[10].mxu1  ;;  %v2104_v41 = vmul.f32 %v4039_v26, %v1998_v58  ;;  %v2111_v36 = vmul.f32 %v4037_v37, %v2072_v61  ;;  %v4049_v23 = vpop.eup %4048 }
 0x667   : >> { %v2114_v17 = vmul.f32 %v4035_v45, %v3751_v56  ;;  %v2075_v60 = vpop.f32.mrb[11].mxu1  ;;  %v2120_v35 = vpack.c.bf16 %v2106_v24, %v2105_v47  ;;  %v4051_v38 = vpop.eup %4050 }
 0x668   : >> { %v2112_v32 = vmul.f32 %v4041_v16, %v2075_v60  ;;  %v2119_v43 = vpack.c.bf16 %v2104_v41, %v2103_v22  ;;  %v4053_v61 = vpop.eup %4052 }
 0x669   : >> { %v2124_v44 = vpack.c.bf16 %v2114_v17, %v2113_v28  ;;  %2130 = vst.msk [vmem:[%s5499_s4 + $0x8] sm:$0xff] %vm1203_vm8, %v2120_v35  ;;  %v4055_v47 = vpop.eup %4054 }
 0x66a   : >> { %v2123_v19 = vpack.c.bf16 %v2112_v32, %v2111_v36  ;;  %2129 = vst.msk [vmem:[%s5499_s4] sm:$0xff] %vm1203_vm8, %v2119_v43  ;;  %v4057_v58 = vpop.eup %4056 }
 0x66b   : >> { %2134 = vst.msk [vmem:[%s5499_s4 + $0x28] sm:$0xff] %vm1203_vm8, %v2124_v44 }
 0x66c   : >> { %2133 = vst.msk [vmem:[%s5499_s4 + $0x20] sm:$0xff] %vm1203_vm8, %v2123_v19  ;;  %v3738_v27 = vpop.f32.mrb[12].mxu0  ;;  %v4058_v19 = vld [vmem:[#allocation12] sm:$0xff] (%p1567_p2)  }
 0x66d   : >> { %v2011_v18 = vpop.f32.mrb[13].mxu0  ;;  %v2109_v34 = vmul.f32 %v4043_v31, %v3738_v27  ;;  %3756 = vmatprep.subr.bf16.mxu0 (%p1567_p2), %v4058_v19 }
 0x66e   : >> { %v3739_v48 = vpop.f32.mrb[14].mxu0  ;;  %v2107_v45 = vmul.f32 %v4045_v40, %v2011_v18  ;;  %3757 = vmatpush3.bf16.msra.mxu0 (%p1567_p2), %v4058_v19 }
 0x66f   : >> { %v2110_v46 = vmul.f32 %v4047_v42, %v3739_v48  ;;  %v2014_v30 = vpop.f32.mrb[15].mxu0  ;;  %3758 = vmatprep.subr.bf16.mxu0 (%p1567_p2), %v4059_v50 }
 0x670   : >> { %v2108_v39 = vmul.f32 %v4049_v23, %v2014_v30  ;;  %v4062_v23 = vld [vmem:[#allocation12 + $0x20] sm:$0xff] (%p1567_p2)   ;;  %v4063_v30 = vld [vmem:[#allocation12 + $0x28] sm:$0xff] (%p1567_p2)  }
 0x671   : >> { %v2122_v63 = vpack.c.bf16 %v2110_v46, %v2109_v34 }
 0x672   : >> { %v2121_v37 = vpack.c.bf16 %v2108_v39, %v2107_v45  ;;  %3759 = vmatpush3.bf16.msra.mxu0 (%p1567_p2), %v4059_v50 }
 0x673   : >> { %2132 = vst.msk [vmem:[%s5499_s4 + $0x18] sm:$0xff] %vm1203_vm8, %v2122_v63  ;;  %v3754_v21 = vpop.f32.mrb[12].mxu1  ;;  %3760 = vmatprep.subr.bf16.mxu0 (%p1567_p2), %v4060_v25 }
 0x674   : >> { %2131 = vst.msk [vmem:[%s5499_s4 + $0x10] sm:$0xff] %vm1203_vm8, %v2121_v37  ;;  %v2088_v26 = vpop.f32.mrb[13].mxu1  ;;  %v2117_v56 = vmul.f32 %v4053_v61, %v3754_v21 }
 0x675   : >> { %v3755_v24 = vpop.f32.mrb[14].mxu1  ;;  %v2115_v22 = vmul.f32 %v4051_v38, %v2088_v26  ;;  %1569 = sbr.rel (!%p1567_p2) target bundleno = 1001 (0x3e9), region = 160  ;;  %v4064_v38 = vld [vmem:[#allocation12 + $0x30] sm:$0xff] (%p1567_p2)   ;;  %v4065_v26 = vld [vmem:[#allocation12 + $0x38] sm:$0xff] (%p1567_p2)  }
 0x676   : >> { %v2118_v16 = vmul.f32 %v4055_v47, %v3755_v24  ;;  %v2091_v29 = vpop.f32.mrb[15].mxu1  ;;  %3761 = vmatpush3.bf16.msra.mxu0 (%p1567_p2), %v4060_v25 }
 0x677   : >> { %v2116_v28 = vmul.f32 %v4057_v58, %v2091_v29  ;;  %3762 = vmatprep.subr.bf16.mxu0 (%p1567_p2), %v4061_v54 }
 0x678   : >> { %v2126_v41 = vpack.c.bf16 %v2118_v16, %v2117_v56 }
 0x679   : >> { %v2125_v17 = vpack.c.bf16 %v2116_v28, %v2115_v22 }
 0x67a   : >> { %2136 = vst.msk [vmem:[%s5499_s4 + $0x38] sm:$0xff] %vm1203_vm8, %v2126_v41  ;;  %3763 = vmatpush3.bf16.msra.mxu0 (%p1567_p2), %v4061_v54 }
 0x67b   : >> { %2135 = vst.msk [vmem:[%s5499_s4 + $0x30] sm:$0xff] %vm1203_vm8, %v2125_v17  ;;  %3764 = vmatprep.subr.bf16.mxu0 (%p1567_p2), %v4062_v23  ;;  %s3531_s4 = sshll.u32 (%p1567_p2), %s4507_s14, 11  ;;  %s3259_s14 = scalar_lea.sflag (%p1567_p2), [#allocation9], %s4719_s10 }
 0x67e   : > { %3765 = vmatpush3.bf16.msra.mxu0 %v4062_v23 }
 0x67f   : > { %3766 = vmatprep.subr.bf16.mxu0 %v4063_v30 }
 0x682   : > { %v2154_v60 = vld [vmem:[#allocation5 + $0x40] sm:$0xff]  ;;  %v2155_v35 = vld [vmem:[#allocation5 + $0x48] sm:$0xff]  ;;  %v2156_v44 = vld [vmem:[#allocation5 + $0x50] sm:$0xff]  ;;  %3767 = vmatpush3.bf16.msra.mxu0 %v4063_v30 }
 0x683   : > { %v2204_v33 = vld [vmem:[#allocation5 + $0x80] sm:$0xff]  ;;  %2170 = vrot.lane.b32.xlu0 %v2154_v60, %s4412_s30  ;;  %v2205_v36 = vld [vmem:[#allocation5 + $0x88] sm:$0xff]  ;;  %v2157_v51 = vld [vmem:[#allocation5 + $0x58] sm:$0xff]  ;;  %3768 = vmatprep.subr.bf16.mxu0 %v4064_v38 }
 0x684   : > { %2220 = vrot.lane.b32.xlu1 %v2204_v33, %s4411_s21  ;;  %v2254_v32 = vld [vmem:[#allocation5 + $0xc0] sm:$0xff]  ;;  %v2255_v43 = vld [vmem:[#allocation5 + $0xc8] sm:$0xff]  ;;  %v2206_v49 = vld [vmem:[#allocation5 + $0x90] sm:$0xff] }
 0x685   : > { %v2137_v52 = vld [vmem:[#allocation5] sm:$0xff]  ;;  %v2138_v55 = vld [vmem:[#allocation5 + $0x8] sm:$0xff]  ;;  %v2207_v53 = vld [vmem:[#allocation5 + $0x98] sm:$0xff] }
 0x686   : > { %2145 = vst.msk [vmem:[#allocation6] sm:$0xff] %vm1203_vm8, %v2137_v52  ;;  %2146 = vst.msk [vmem:[#allocation6 + $0x8] sm:$0xff] %vm1203_vm8, %v2138_v55  ;;  %v2139_v31 = vld [vmem:[#allocation5 + $0x10] sm:$0xff]  ;;  %v2140_v40 = vld [vmem:[#allocation5 + $0x18] sm:$0xff]  ;;  %3769 = vmatpush3.bf16.msra.mxu0 %v4064_v38 }
 0x687   : > { %2172 = vrot.lane.b32.xlu0 %v2155_v35, %s4412_s30  ;;  %v2256_v27 = vld [vmem:[#allocation5 + $0xd0] sm:$0xff]  ;;  %2147 = vst.msk [vmem:[#allocation6 + $0x10] sm:$0xff] %vm1203_vm8, %v2139_v31  ;;  %v2257_v18 = vld [vmem:[#allocation5 + $0xd8] sm:$0xff]  ;;  %2148 = vst.msk [vmem:[#allocation6 + $0x18] sm:$0xff] %vm1203_vm8, %v2140_v40  ;;  %3770 = vmatprep.subr.bf16.mxu0 %v4065_v26 }
 0x688   : > { %2222 = vrot.lane.b32.xlu1 %v2205_v36, %s4411_s21  ;;  %v2141_v42 = vld [vmem:[#allocation5 + $0x20] sm:$0xff]  ;;  %v2142_v48 = vld [vmem:[#allocation5 + $0x28] sm:$0xff]  ;;  %v2143_v45 = vld [vmem:[#allocation5 + $0x30] sm:$0xff] }
 0x689   : > { %2149 = vst.msk [vmem:[#allocation6 + $0x20] sm:$0xff] %vm1203_vm8, %v2141_v42  ;;  %2150 = vst.msk [vmem:[#allocation6 + $0x28] sm:$0xff] %vm1203_vm8, %v2142_v48  ;;  %v2158_v34 = vld [vmem:[#allocation5 + $0x60] sm:$0xff]  ;;  %v2159_v46 = vld [vmem:[#allocation5 + $0x68] sm:$0xff] }
 0x68a   : > { %v2208_v39 = vld [vmem:[#allocation5 + $0xa0] sm:$0xff]  ;;  %v2209_v63 = vld [vmem:[#allocation5 + $0xa8] sm:$0xff]  ;;  %2151 = vst.msk [vmem:[#allocation6 + $0x30] sm:$0xff] %vm1203_vm8, %v2143_v45  ;;  %v2144_v37 = vld [vmem:[#allocation5 + $0x38] sm:$0xff]  ;;  %3771 = vmatpush3.bf16.msra.mxu0 %v4065_v26 }
 0x68b   : > { %2270 = vrot.lane.b32.xlu0 %v2254_v32, %s4410_s24  ;;  %2152 = vst.msk [vmem:[#allocation6 + $0x38] sm:$0xff] %vm1203_vm8, %v2144_v37  ;;  %v2258_v21 = vld [vmem:[#allocation5 + $0xe0] sm:$0xff]  ;;  %v2259_v61 = vld [vmem:[#allocation5 + $0xe8] sm:$0xff]  ;;  %v2160_v47 = vld [vmem:[#allocation5 + $0x70] sm:$0xff] }
 0x68c   : > { %2272 = vrot.lane.b32.xlu1 %v2255_v43, %s4410_s24  ;;  %v2161_v24 = vld [vmem:[#allocation5 + $0x78] sm:$0xff]  ;;  %v2210_v58 = vld [vmem:[#allocation5 + $0xb0] sm:$0xff] }
 0x68d   : > { %v2211_v56 = vld [vmem:[#allocation5 + $0xb8] sm:$0xff]  ;;  %v2260_v16 = vld [vmem:[#allocation5 + $0xf0] sm:$0xff] }
 0x68e   : > { %v2261_v29 = vld [vmem:[#allocation5 + $0xf8] sm:$0xff] }
 0x68f   : > { %2174 = vrot.lane.b32.xlu0 %v2156_v44, %s4412_s30 }
 0x690   : > { %2176 = vrot.lane.b32.xlu1 %v2157_v51, %s4412_s30 }
 0x693   : > { %2224 = vrot.lane.b32.xlu0 %v2206_v49, %s4411_s21 }
 0x694   : > { %2226 = vrot.lane.b32.xlu1 %v2207_v53, %s4411_s21 }
 0x697   : > { %2274 = vrot.lane.b32.xlu0 %v2256_v27, %s4410_s24 }
 0x698   : > { %2276 = vrot.lane.b32.xlu1 %v2257_v18, %s4410_s24 }
 0x69b   : > { %2178 = vrot.lane.b32.xlu0 %v2158_v34, %s4412_s30 }
 0x69c   : > { %2180 = vrot.lane.b32.xlu1 %v2159_v46, %s4412_s30 }
 0x69f   : > { %2228 = vrot.lane.b32.xlu0 %v2208_v39, %s4411_s21 }
 0x6a0   : > { %2230 = vrot.lane.b32.xlu1 %v2209_v63, %s4411_s21  ;;  %v3474_v63 = vld [vmem:[%s6019_s23] ss:$0 sm:$0xff] }
 0x6a3   : > { %2278 = vrot.lane.b32.xlu0 %v2258_v21, %s4410_s24 }
 0x6a4   : > { %2280 = vrot.lane.b32.xlu1 %v2259_v61, %s4410_s24 }
 0x6a7   : > { %2182 = vrot.lane.b32.xlu0 %v2160_v47, %s4412_s30 }
 0x6a8   : > { %2184 = vrot.lane.b32.xlu1 %v2161_v24, %s4412_s30  ;;  %s4413_s30 = smov [#allocation18]  }
 0x6a9   : > { %s4312_s20 = sshll.u32 %s4413_s30, 4  ;;  %s4313_s20 = int_to_ptr.vmem [resolvable:$false] %s4312_s20 }
 0x6aa   : > { %p4315_p12 = scmp.lt.s32.totalorder %s5926_s19, %s4313_s20 }
 0x6ab   : > { %2232 = vrot.lane.b32.xlu0 %v2210_v58, %s4411_s21 }
 0x6ac   : > { %2234 = vrot.lane.b32.xlu1 %v2211_v56, %s4411_s21  ;;  %s6020_s21 = sld [smem:[#allocation26_spill]] }
 0x6af   : > { %2282 = vrot.lane.b32.xlu0 %v2260_v16, %s4410_s24 }
 0x6b0   : > { %2284 = vrot.lane.b32.xlu1 %v2261_v29, %s4410_s24  ;;  %s5924_s24 = scalar_lea.hbm %s6023_s1, %s3531_s4 }
 0x6f5   : > { %v2171_v22 = vpop.permute.xlu0 %2170 }
 0x6f6   : > { %v2221_v28 = vpop.permute.xlu1 %2220  ;;  %2195 = vst.msk [vmem:[#allocation6] sm:$0xff] %vm2194_vm10, %v2171_v22 }
 0x6f7   : > { %2245 = vst.msk [vmem:[#allocation6] sm:$0xff] %vm2244_vm11, %v2221_v28 }
 0x6f9   : > { %v2173_v41 = vpop.permute.xlu0 %2172 }
 0x6fa   : > { %v2223_v17 = vpop.permute.xlu1 %2222  ;;  %2196 = vst.msk [vmem:[#allocation6 + $0x8] sm:$0xff] %vm2194_vm10, %v2173_v41 }
 0x6fb   : > { %2246 = vst.msk [vmem:[#allocation6 + $0x8] sm:$0xff] %vm2244_vm11, %v2223_v17 }
 0x6fd   : > { %v2271_v60 = vpop.permute.xlu0 %2270 }
 0x6fe   : > { %v2273_v33 = vpop.permute.xlu1 %2272  ;;  %2295 = vst.msk [vmem:[#allocation6] sm:$0xff] %vm2294_vm12, %v2271_v60 }
 0x6ff   : > { %2296 = vst.msk [vmem:[#allocation6 + $0x8] sm:$0xff] %vm2294_vm12, %v2273_v33 }
 0x701   : > { %v2175_v35 = vpop.permute.xlu0 %2174 }
 0x702   : > { %v2177_v36 = vpop.permute.xlu1 %2176  ;;  %2197 = vst.msk [vmem:[#allocation6 + $0x10] sm:$0xff] %vm2194_vm10, %v2175_v35 }
 0x703   : > { %2198 = vst.msk [vmem:[#allocation6 + $0x18] sm:$0xff] %vm2194_vm10, %v2177_v36 }
 0x705   : > { %v2225_v32 = vpop.permute.xlu0 %2224  ;;  %v2303_v44 = vld [vmem:[#allocation6] sm:$0xff] }
 0x706   : > { %v2227_v43 = vpop.permute.xlu1 %2226  ;;  %v2304_v19 = vld [vmem:[#allocation6 + $0x8] sm:$0xff]  ;;  %2247 = vst.msk [vmem:[#allocation6 + $0x10] sm:$0xff] %vm2244_vm11, %v2225_v32  ;;  %3772 = vmatprep.mubr.bf16.mxu0 %v2303_v44 }
 0x707   : > { %2248 = vst.msk [vmem:[#allocation6 + $0x18] sm:$0xff] %vm2244_vm11, %v2227_v43  ;;  %3773 = vmatmul.mubr.bf16.vlgmr.msra.gmra.mrb[0].mxu0 %v2304_v19 }
 0x709   : > { %v2275_v50 = vpop.permute.xlu0 %2274 }
 0x70a   : > { %v2277_v51 = vpop.permute.xlu1 %2276  ;;  %2297 = vst.msk [vmem:[#allocation6 + $0x10] sm:$0xff] %vm2294_vm12, %v2275_v50 }
 0x70b   : > { %2298 = vst.msk [vmem:[#allocation6 + $0x18] sm:$0xff] %vm2294_vm12, %v2277_v51 }
 0x70d   : > { %v2179_v25 = vpop.permute.xlu0 %2178 }
 0x70e   : > { %v2181_v52 = vpop.permute.xlu1 %2180  ;;  %2199 = vst.msk [vmem:[#allocation6 + $0x20] sm:$0xff] %vm2194_vm10, %v2179_v25 }
 0x70f   : > { %2200 = vst.msk [vmem:[#allocation6 + $0x28] sm:$0xff] %vm2194_vm10, %v2181_v52 }
 0x711   : > { %v2229_v49 = vpop.permute.xlu0 %2228  ;;  %v2305_v53 = vld [vmem:[#allocation6 + $0x10] sm:$0xff] }
 0x712   : > { %v2231_v55 = vpop.permute.xlu1 %2230  ;;  %v2306_v54 = vld [vmem:[#allocation6 + $0x18] sm:$0xff]  ;;  %2249 = vst.msk [vmem:[#allocation6 + $0x20] sm:$0xff] %vm2244_vm11, %v2229_v49  ;;  %3776 = vmatprep.mubr.bf16.mxu0 %v2305_v53 }
 0x713   : > { %2250 = vst.msk [vmem:[#allocation6 + $0x28] sm:$0xff] %vm2244_vm11, %v2231_v55  ;;  %3777 = vmatmul.mubr.bf16.gmra.mrb[4].mxu0 %v2306_v54 }
 0x715   : > { %v2279_v31 = vpop.permute.xlu0 %2278 }
 0x716   : > { %v2281_v27 = vpop.permute.xlu1 %2280  ;;  %2299 = vst.msk [vmem:[#allocation6 + $0x20] sm:$0xff] %vm2294_vm12, %v2279_v31 }
 0x717   : > { %2300 = vst.msk [vmem:[#allocation6 + $0x28] sm:$0xff] %vm2294_vm12, %v2281_v27 }
 0x719   : > { %v2183_v40 = vpop.permute.xlu0 %2182 }
 0x71a   : > { %v2185_v18 = vpop.permute.xlu1 %2184  ;;  %2201 = vst.msk [vmem:[#allocation6 + $0x30] sm:$0xff] %vm2194_vm10, %v2183_v40 }
 0x71b   : > { %2202 = vst.msk [vmem:[#allocation6 + $0x38] sm:$0xff] %vm2194_vm10, %v2185_v18 }
 0x71d   : > { %v2233_v42 = vpop.permute.xlu0 %2232  ;;  %v2307_v23 = vld [vmem:[#allocation6 + $0x20] sm:$0xff] }
 0x71e   : > { %v2235_v48 = vpop.permute.xlu1 %2234  ;;  %v2308_v34 = vld [vmem:[#allocation6 + $0x28] sm:$0xff]  ;;  %2251 = vst.msk [vmem:[#allocation6 + $0x30] sm:$0xff] %vm2244_vm11, %v2233_v42  ;;  %3780 = vmatprep.mubr.bf16.mxu0 %v2307_v23  ;;  %v4069_v23 = vld [vmem:[#allocation13 + $0x14] ss:$8 sps:$4 sm:$0xff]  }
 0x71f   : > { %2252 = vst.msk [vmem:[#allocation6 + $0x38] sm:$0xff] %vm2244_vm11, %v2235_v48  ;;  %3781 = vmatmul.mubr.bf16.gmra.mrb[8].mxu0 %v2308_v34  ;;  %v4068_v48 = vld [vmem:[#allocation13] ss:$8 sps:$4 sm:$0xff]  }
 0x721   : > { %v2283_v46 = vpop.permute.xlu0 %2282 }
 0x722   : > { %v2285_v30 = vpop.permute.xlu1 %2284  ;;  %2301 = vst.msk [vmem:[#allocation6 + $0x30] sm:$0xff] %vm2294_vm12, %v2283_v46 }
 0x723   : > { %2302 = vst.msk [vmem:[#allocation6 + $0x38] sm:$0xff] %vm2294_vm12, %v2285_v30 }
 0x729   : > { %v2309_v45 = vld [vmem:[#allocation6 + $0x30] sm:$0xff] }
 0x72a   : > { %v2310_v39 = vld [vmem:[#allocation6 + $0x38] sm:$0xff]  ;;  %3784 = vmatprep.mubr.bf16.mxu0 %v2309_v45 }
 0x72b   : > { %3785 = vmatmul.mubr.bf16.gmra.mrb[12].mxu0 %v2310_v39 }
 0x7da   : > { %v3774_v37 = vpop.f32.mrb[0].mxu0 }
 0x7db   : > { %v2416_v38 = vpop.f32.mrb[1].mxu0  ;;  %v2425_v47 = vadd.f32 %v3774_v37, %v3474_v63 }
 0x7dc   : > { %v2417_v21 = vadd.f32 %v3474_v63, %v2416_v38  ;;  %v3775_v61 = vpop.f32.mrb[2].mxu0 }
 0x7dd   : > { %v2419_v26 = vpop.f32.mrb[3].mxu0  ;;  %v5588_v16 = vadd.f32 %v2425_v47, %v4747_v1  ;;  %v2428_v29 = vadd.f32 %v3775_v61, %v3474_v63 }
 0x7de   : > { %v5581_v24 = vadd.f32 %v2417_v21, %v4744_v0  ;;  %v2420_v58 = vadd.f32 %v3474_v63, %v2419_v26 }
 0x7df   : > { %v5593_v22 = vadd.f32 %v2428_v29, %v4755_v3 }
 0x7e0   : > { %v5584_v56 = vadd.f32 %v2420_v58, %v4752_v2  ;;  %2497 = vadd.xlane.f32.xlu0 %v5581_v24 }
 0x7e2   : > { %2499 = vadd.xlane.f32.xlu1 %v5584_v56 }
 0x7e4   : > { %2501 = vadd.xlane.f32.xlu0 %v5588_v16 }
 0x7e6   : > { %v3778_v28 = vpop.f32.mrb[4].mxu0 }
 0x7e7   : > { %v2432_v0 = vpop.f32.mrb[5].mxu0  ;;  %v2441_v41 = vadd.f32 %v3778_v28, %v3474_v63 }
 0x7e8   : > { %v2433_v17 = vadd.f32 %v3474_v63, %v2432_v0  ;;  %v3779_v60 = vpop.f32.mrb[6].mxu0  ;;  %2503 = vadd.xlane.f32.xlu0 %v5593_v22 }
 0x7e9   : > { %v2435_v2 = vpop.f32.mrb[7].mxu0  ;;  %v5600_v35 = vadd.f32 %v2441_v41, %v4766_v6  ;;  %v2444_v36 = vadd.f32 %v3779_v60, %v3474_v63 }
 0x7ea   : > { %v5597_v33 = vadd.f32 %v2433_v17, %v4758_v4  ;;  %v2436_v1 = vadd.f32 %v3474_v63, %v2435_v2 }
 0x7eb   : > { %v5608_v3 = vadd.f32 %v2444_v36, %v4769_v7 }
 0x7ec   : > { %v5603_v32 = vadd.f32 %v2436_v1, %v4763_v5  ;;  %2505 = vadd.xlane.f32.xlu1 %v5597_v33 }
 0x7ee   : > { %2507 = vadd.xlane.f32.xlu0 %v5603_v32 }
 0x7f0   : > { %2509 = vadd.xlane.f32.xlu1 %v5600_v35 }
 0x7f2   : > { %v3782_v43 = vpop.f32.mrb[8].mxu0  ;;  %2511 = vadd.xlane.f32.xlu0 %v5608_v3 }
 0x7f3   : > { %v2448_v4 = vpop.f32.mrb[9].mxu0  ;;  %v2457_v44 = vadd.f32 %v3782_v43, %v3474_v63 }
 0x7f4   : > { %v2449_v6 = vadd.f32 %v3474_v63, %v2448_v4  ;;  %v3783_v19 = vpop.f32.mrb[10].mxu0 }
 0x7f5   : > { %v2451_v50 = vpop.f32.mrb[11].mxu0  ;;  %v2460_v51 = vadd.f32 %v3783_v19, %v3474_v63  ;;  %v5616_v52 = vadd.f32 %v2457_v44, %v4784_v10 }
 0x7f6   : > { %v5613_v5 = vadd.f32 %v2449_v6, %v4774_v8  ;;  %v2452_v25 = vadd.f32 %v3474_v63, %v2451_v50  ;;  %v4072_v50 = vld [vmem:[#allocation13 + $0x24] ss:$8 sps:$4 sm:$0xff]  }
 0x7f7   : > { %v5623_v49 = vadd.f32 %v2460_v51, %v4787_v11 }
 0x7f8   : > { %v5619_v7 = vadd.f32 %v2452_v25, %v4777_v9  ;;  %2513 = vadd.xlane.f32.xlu1 %v5613_v5 }
 0x7fa   : > { %2515 = vadd.xlane.f32.xlu0 %v5619_v7 }
 0x7fc   : > { %2517 = vadd.xlane.f32.xlu1 %v5616_v52 }
 0x7fe   : > { %v3786_v55 = vpop.f32.mrb[12].mxu0  ;;  %2519 = vadd.xlane.f32.xlu0 %v5623_v49 }
 0x7ff   : > { %v2464_v8 = vpop.f32.mrb[13].mxu0  ;;  %v2473_v53 = vadd.f32 %v3786_v55, %v3474_v63  ;;  %v4074_v55 = vld [vmem:[#allocation13 + $0x20] ss:$8 sps:$4 sm:$0xff]  }
 0x800   : > { %v2465_v54 = vadd.f32 %v3474_v63, %v2464_v8  ;;  %v3787_v10 = vpop.f32.mrb[14].mxu0 }
 0x801   : > { %v2467_v31 = vpop.f32.mrb[15].mxu0  ;;  %v2476_v27 = vadd.f32 %v3787_v10, %v3474_v63  ;;  %v5632_v11 = vadd.f32 %v2473_v53, %v4800_v14  ;;  %v4071_v14 = vld [vmem:[#allocation13 + $0x10] ss:$8 sps:$4 sm:$0xff]  }
 0x802   : > { %v5629_v9 = vadd.f32 %v2465_v54, %v4792_v12  ;;  %v2468_v40 = vadd.f32 %v3474_v63, %v2467_v31  ;;  %v4066_v12 = vld [vmem:[#allocation13 + $0x4] ss:$8 sps:$4 sm:$0xff]   ;;  %v4075_v54 = vld [vmem:[#allocation13 + $0x34] ss:$8 sps:$4 sm:$0xff]   ;;  %v4077_v31 = vld [vmem:[#allocation13 + $0x30] ss:$8 sps:$4 sm:$0xff]  }
 0x803   : > { %v5639_v42 = vadd.f32 %v2476_v27, %v4803_v15  ;;  %2833 = vmatprep.subr.bf16.mxu1 %v4066_v12 }
 0x804   : > { %v5635_v18 = vadd.f32 %v2468_v40, %v4795_v13  ;;  %2521 = vadd.xlane.f32.xlu1 %v5629_v9  ;;  %2834 = vmatpush1.bf16.msra.mxu1 %v4068_v48 }
 0x805   : > { %2835 = vmatprep.subr.bf16.mxu1 %v4069_v23  ;;  %v4078_v23 = vld [vmem:[#allocation13 + $0x44] ss:$8 sps:$4 sm:$0xff]  }
 0x806   : > { %2523 = vadd.xlane.f32.xlu0 %v5635_v18 }
 0x808   : > { %2525 = vadd.xlane.f32.xlu1 %v5632_v11  ;;  %2836 = vmatpush1.bf16.msra.mxu1 %v4071_v14 }
 0x809   : > { %2837 = vmatprep.subr.bf16.mxu1 %v4072_v50 }
 0x80a   : > { %2527 = vadd.xlane.f32.xlu0 %v5639_v42 }
 0x80c   : > { %2838 = vmatpush1.bf16.msra.mxu1 %v4074_v55  ;;  %v4089_v55 = vld [vmem:[#allocation13 + $0x70] ss:$8 sps:$4 sm:$0xff]  }
 0x80d   : > { %2839 = vmatprep.subr.bf16.mxu1 %v4075_v54 }
 0x810   : > { %2840 = vmatpush1.bf16.msra.mxu1 %v4077_v31 }
 0x811   : > { %2841 = vmatprep.subr.bf16.mxu1 %v4078_v23  ;;  %v5724_v23 = vld [vmem:[#allocation15] sm:$0xff]  }
 0x86d   : > { %v2498_v13 = vpop.xlane.xlu0 %2497 }
 0x86e   : > { %v2529_v34 = vmul.f32 0.0078125, %v2498_v13 }
 0x86f   : > { %v2500_v46 = vpop.xlane.xlu1 %2499 }
 0x870   : > { %v5645_v15 = vsub.f32 %v5581_v24, %v2529_v34  ;;  %v2530_v30 = vmul.f32 0.0078125, %v2500_v46  ;;  %v4080_v46 = vld [vmem:[#allocation13 + $0x40] ss:$8 sps:$4 sm:$0xff]  }
 0x871   : > { %v2502_v45 = vpop.xlane.xlu0 %2501  ;;  %2842 = vmatpush1.bf16.msra.mxu1 %v4080_v46  ;;  %v5732_v46 = vld [vmem:[#allocation15 + $0x50] sm:$0xff]  }
 0x872   : > { %v5648_v39 = vsub.f32 %v5584_v56, %v2530_v30  ;;  %v2531_v63 = vmul.f32 0.0078125, %v2502_v45  ;;  %v2561_v37 = vmul.f32 %v5645_v15, %v5645_v15 }
 0x874   : > { %v5653_v38 = vsub.f32 %v5588_v16, %v2531_v63  ;;  %2577 = vadd.xlane.f32.xlu1 %v2561_v37  ;;  %v2562_v21 = vmul.f32 %v5648_v39, %v5648_v39 }
 0x875   : > { %v2504_v61 = vpop.xlane.xlu0 %2503 }
 0x876   : > { %v2532_v26 = vmul.f32 0.0078125, %v2504_v61  ;;  %2579 = vadd.xlane.f32.xlu0 %v2562_v21  ;;  %v2563_v47 = vmul.f32 %v5653_v38, %v5653_v38  ;;  %v4081_v21 = vld [vmem:[#allocation13 + $0x54] ss:$8 sps:$4 sm:$0xff]  }
 0x877   : > { %2843 = vmatprep.subr.bf16.mxu1 %v4081_v21  ;;  %v5744_v21 = vld [vmem:[#allocation15 + $0x60] sm:$0xff]  }
 0x878   : > { %v5660_v58 = vsub.f32 %v5593_v22, %v2532_v26  ;;  %2581 = vadd.xlane.f32.xlu1 %v2563_v47  ;;  %v4083_v47 = vld [vmem:[#allocation13 + $0x50] ss:$8 sps:$4 sm:$0xff]  }
 0x879   : > { %v2506_v29 = vpop.xlane.xlu1 %2505  ;;  %2844 = vmatpush1.bf16.msra.mxu1 %v4083_v47  ;;  %v5750_v47 = vld [vmem:[#allocation15 + $0x68] sm:$0xff]  }
 0x87a   : > { %v2533_v28 = vmul.f32 0.0078125, %v2506_v29  ;;  %v2564_v0 = vmul.f32 %v5660_v58, %v5660_v58 }
 0x87b   : > { %v2508_v41 = vpop.xlane.xlu0 %2507 }
 0x87c   : > { %v5665_v17 = vsub.f32 %v5597_v33, %v2533_v28  ;;  %v2534_v60 = vmul.f32 0.0078125, %v2508_v41  ;;  %2583 = vadd.xlane.f32.xlu0 %v2564_v0  ;;  %v4084_v0 = vld [vmem:[#allocation13 + $0x64] ss:$8 sps:$4 sm:$0xff]  }
 0x87d   : > { %v2510_v2 = vpop.xlane.xlu1 %2509  ;;  %2845 = vmatprep.subr.bf16.mxu1 %v4084_v0 }
 0x87e   : > { %v5668_v1 = vsub.f32 %v5603_v32, %v2534_v60  ;;  %v2535_v36 = vmul.f32 0.0078125, %v2510_v2  ;;  %v2565_v43 = vmul.f32 %v5665_v17, %v5665_v17  ;;  %v4086_v60 = vld [vmem:[#allocation13 + $0x60] ss:$8 sps:$4 sm:$0xff]  }
 0x87f   : > { %v2512_v4 = vpop.xlane.xlu0 %2511  ;;  %2846 = vmatpush1.bf16.msra.mxu1 %v4086_v60 }
 0x880   : > { %v5673_v44 = vsub.f32 %v5600_v35, %v2535_v36  ;;  %v2536_v6 = vmul.f32 0.0078125, %v2512_v4  ;;  %2585 = vadd.xlane.f32.xlu1 %v2565_v43  ;;  %v2566_v19 = vmul.f32 %v5668_v1, %v5668_v1 }
 0x882   : > { %v5678_v51 = vsub.f32 %v5608_v3, %v2536_v6  ;;  %2587 = vadd.xlane.f32.xlu0 %v2566_v19  ;;  %v2567_v25 = vmul.f32 %v5673_v44, %v5673_v44  ;;  %v4087_v6 = vld [vmem:[#allocation13 + $0x74] ss:$8 sps:$4 sm:$0xff]  }
 0x883   : > { %2847 = vmatprep.subr.bf16.mxu1 %v4087_v6 }
 0x884   : > { %2589 = vadd.xlane.f32.xlu1 %v2567_v25  ;;  %v2568_v8 = vmul.f32 %v5678_v51, %v5678_v51  ;;  %2848 = vmatpush1.bf16.msra.mxu1 %v4089_v55 }
 0x885   : > { %v2514_v53 = vpop.xlane.xlu1 %2513 }
 0x886   : > { %v2537_v10 = vmul.f32 0.0078125, %v2514_v53  ;;  %2591 = vadd.xlane.f32.xlu0 %v2568_v8 }
 0x887   : > { %v2516_v27 = vpop.xlane.xlu0 %2515 }
 0x888   : > { %v5685_v40 = vsub.f32 %v5613_v5, %v2537_v10  ;;  %v2538_v12 = vmul.f32 0.0078125, %v2516_v27 }
 0x889   : > { %v2518_v48 = vpop.xlane.xlu1 %2517 }
 0x88a   : > { %v5688_v14 = vsub.f32 %v5619_v7, %v2538_v12  ;;  %v2539_v13 = vmul.f32 0.0078125, %v2518_v48  ;;  %v2569_v34 = vmul.f32 %v5685_v40, %v5685_v40  ;;  %v4090_v48 = vld [vmem:[#allocation15 + $0x40] sm:$0xff]  }
 0x88b   : > { %v2520_v30 = vpop.xlane.xlu0 %2519  ;;  %3596 = vmatprep.subr.bf16.mxu0 %v4090_v48  ;;  %3788 = vmatprep.subr.bf16.mxu1 %v4090_v48 }
 0x88c   : > { %v5693_v45 = vsub.f32 %v5616_v52, %v2539_v13  ;;  %v2540_v63 = vmul.f32 0.0078125, %v2520_v30  ;;  %2593 = vadd.xlane.f32.xlu1 %v2569_v34  ;;  %v2570_v37 = vmul.f32 %v5688_v14, %v5688_v14  ;;  %v5726_v13 = vld [vmem:[#allocation15 + $0x48] sm:$0xff]   ;;  %3597 = vmatpush3.bf16.msra.mxu0 %v5724_v23  ;;  %v5735_v30 = vld [vmem:[#allocation15 + $0x10] sm:$0xff]  }
 0x88d   : > { %v5729_v34 = vld [vmem:[#allocation15 + $0x8] sm:$0xff]   ;;  %3598 = vmatprep.subr.bf16.mxu0 %v5726_v13 }
 0x88e   : > { %v5698_v61 = vsub.f32 %v5623_v49, %v2540_v63  ;;  %2595 = vadd.xlane.f32.xlu0 %v2570_v37  ;;  %v2571_v26 = vmul.f32 %v5693_v45, %v5693_v45  ;;  %v5738_v63 = vld [vmem:[#allocation15 + $0x58] sm:$0xff]  }
 0x88f   : > { %v5741_v37 = vld [vmem:[#allocation15 + $0x18] sm:$0xff]  }
 0x890   : > { %2597 = vadd.xlane.f32.xlu1 %v2571_v26  ;;  %v2572_v29 = vmul.f32 %v5698_v61, %v5698_v61  ;;  %3599 = vmatpush3.bf16.msra.mxu0 %v5729_v34  ;;  %v5747_v26 = vld [vmem:[#allocation15 + $0x20] sm:$0xff]  }
 0x891   : > { %v2522_v28 = vpop.xlane.xlu1 %2521  ;;  %3600 = vmatprep.subr.bf16.mxu0 %v5732_v46 }
 0x892   : > { %v2541_v41 = vmul.f32 0.0078125, %v2522_v28  ;;  %2599 = vadd.xlane.f32.xlu0 %v2572_v29 }
 0x893   : > { %v2524_v2 = vpop.xlane.xlu0 %2523 }
 0x894   : > { %v5705_v36 = vsub.f32 %v5629_v9, %v2541_v41  ;;  %v2542_v43 = vmul.f32 0.0078125, %v2524_v2  ;;  %3601 = vmatpush3.bf16.msra.mxu0 %v5735_v30 }
 0x895   : > { %v2526_v4 = vpop.xlane.xlu1 %2525  ;;  %3602 = vmatprep.subr.bf16.mxu0 %v5738_v63 }
 0x896   : > { %v5708_v19 = vsub.f32 %v5635_v18, %v2542_v43  ;;  %v2543_v50 = vmul.f32 0.0078125, %v2526_v4  ;;  %v2573_v25 = vmul.f32 %v5705_v36, %v5705_v36 }
 0x897   : > { %v2528_v8 = vpop.xlane.xlu0 %2527 }
 0x898   : > { %v5713_v53 = vsub.f32 %v5632_v11, %v2543_v50  ;;  %v2544_v54 = vmul.f32 0.0078125, %v2528_v8  ;;  %2601 = vadd.xlane.f32.xlu1 %v2573_v25  ;;  %v2574_v10 = vmul.f32 %v5708_v19, %v5708_v19  ;;  %3603 = vmatpush3.bf16.msra.mxu0 %v5741_v37 }
 0x899   : > { %3604 = vmatprep.subr.bf16.mxu0 %v5744_v21 }
 0x89a   : > { %v5718_v31 = vsub.f32 %v5639_v42, %v2544_v54  ;;  %2603 = vadd.xlane.f32.xlu0 %v2574_v10  ;;  %v2575_v27 = vmul.f32 %v5713_v53, %v5713_v53 }
 0x89c   : > { %2605 = vadd.xlane.f32.xlu1 %v2575_v27  ;;  %v2576_v12 = vmul.f32 %v5718_v31, %v5718_v31  ;;  %3605 = vmatpush3.bf16.msra.mxu0 %v5747_v26 }
 0x89d   : > { %3606 = vmatprep.subr.bf16.mxu0 %v5750_v47 }
 0x89e   : > { %2607 = vadd.xlane.f32.xlu0 %v2576_v12 }
 0x901   : > { %v2578_v29 = vpop.xlane.xlu1 %2577 }
 0x902   : > { %v2609_v28 = vmul.f32 0.0078125, %v2578_v29  ;;  %v5757_v29 = vld [vmem:[%s6020_s21] ss:$0 sm:$0xff]  ;;  %s4308_s21 = scalar_lea.vmem %s5926_s19, 2048 }
 0x903   : > { %v2580_v0 = vpop.xlane.xlu0 %2579  ;;  %p4309_p7 = scmp.ne.s32.totalorder %s5926_s19, %s4308_s21 }
 0x904   : > { %v2625_v41 = vadd.f32 1e-06, %v2609_v28  ;;  %v2610_v60 = vmul.f32 0.0078125, %v2580_v0 }
 0x905   : > { %v2582_v2 = vpop.xlane.xlu1 %2581  ;;  %p4310_p1 = pnand %p4309_p7, %p6024_p10 }
 0x906   : > { %4106 = vrsqrt.f32 %v2625_v41  ;;  %v2626_v43 = vadd.f32 1e-06, %v2610_v60  ;;  %v2611_v4 = vmul.f32 0.0078125, %v2582_v2 }
 0x907   : > { %p4311_p11 = pneg %p4310_p1 }
 0x908   : > { %4108 = vrsqrt.f32 %v2626_v43  ;;  %v2627_v6 = vadd.f32 1e-06, %v2611_v4 }
 0x909   : > { %v2584_v50 = vpop.xlane.xlu0 %2583 }
 0x90a   : > { %4110 = vrsqrt.f32 %v2627_v6  ;;  %v2612_v25 = vmul.f32 0.0078125, %v2584_v50 }
 0x90c   : > { %v2628_v55 = vadd.f32 1e-06, %v2612_v25 }
 0x90d   : > { %v2586_v8 = vpop.xlane.xlu1 %2585 }
 0x90e   : > { %4112 = vrsqrt.f32 %v2628_v55  ;;  %v2613_v54 = vmul.f32 0.0078125, %v2586_v8  ;;  %v5765_v55 = vld [vmem:[%s6021_s13] ss:$0 sm:$0xff]  ;;  %s4314_s13 = scalar_lea.vmem %s4313_s20, 4096 }
 0x90f   : > { %v2588_v10 = vpop.xlane.xlu0 %2587  ;;  %p4316_p13 = scmp.lt.s32.totalorder %s4314_s13, %s4308_s21 }
 0x910   : > { %v4107_v27 = vpop.eup %4106  ;;  %v2629_v12 = vadd.f32 1e-06, %v2613_v54  ;;  %v2614_v48 = vmul.f32 0.0078125, %v2588_v10 }
 0x911   : > { %v2590_v28 = vpop.xlane.xlu1 %2589  ;;  %v2657_v0 = vmul.f32 %v4107_v27, %v5645_v15  ;;  %p4317_p8 = por %p4316_p13, %p4315_p12 }
 0x912   : > { %v4109_v41 = vpop.eup %4108  ;;  %4114 = vrsqrt.f32 %v2629_v12  ;;  %v2630_v60 = vadd.f32 1e-06, %v2614_v48  ;;  %v2615_v2 = vmul.f32 0.0078125, %v2590_v28 }
 0x913   : > { %v2592_v43 = vpop.xlane.xlu0 %2591  ;;  %v2658_v4 = vmul.f32 %v4109_v41, %v5648_v39  ;;  %v2679_v6 = vmul.f32 %v5757_v29, %v2657_v0  ;;  %p4318_p6 = pnand %p4317_p8, %p4311_p11 }
 0x914   : > { %v4111_v50 = vpop.eup %4110  ;;  %4116 = vrsqrt.f32 %v2630_v60  ;;  %v2616_v25 = vmul.f32 0.0078125, %v2592_v43  ;;  %v2631_v15 = vadd.f32 1e-06, %v2615_v2 }
 0x915   : > { %v2680_v8 = vmul.f32 %v5757_v29, %v2658_v4  ;;  %v2701_v10 = vadd.f32 %v5765_v55, %v2679_v6  ;;  %v2659_v39 = vmul.f32 %v4111_v50, %v5653_v38 }
 0x916   : > { %v2632_v54 = vadd.f32 1e-06, %v2616_v25 }
 0x917   : > { %v2702_v27 = vadd.f32 %v5765_v55, %v2680_v8  ;;  %v2681_v43 = vmul.f32 %v5757_v29, %v2659_v39 }
 0x918   : > { %v4113_v12 = vpop.eup %4112  ;;  %4118 = vrsqrt.f32 %v2632_v54 }
 0x919   : > { %v2594_v48 = vpop.xlane.xlu1 %2593  ;;  %v2717_v28 = vpack.c.bf16 %v2702_v27, %v2701_v10  ;;  %v2660_v0 = vmul.f32 %v4113_v12, %v5660_v58  ;;  %4120 = vrsqrt.f32 %v2631_v15  ;;  %v2703_v54 = vadd.f32 %v5765_v55, %v2681_v43 }
 0x91a   : > { %v2617_v41 = vmul.f32 0.0078125, %v2594_v48 }
 0x91b   : > { %2866 = vmatmul.mubr.bf16.vlgmr.msra.gmra.mrb[0].mxu1 %v2717_v28  ;;  %v2596_v60 = vpop.xlane.xlu0 %2595  ;;  %v2682_v2 = vmul.f32 %v5757_v29, %v2660_v0 }
 0x91c   : > { %v4115_v4 = vpop.eup %4114  ;;  %v2618_v6 = vmul.f32 0.0078125, %v2596_v60  ;;  %2875 = vmatprep.mubr.bf16.mxu1 %v4408_v20  ;;  %3796 = vmatpush3.bf16.msra.mxu1 %v5724_v23  ;;  %v2633_v58 = vadd.f32 1e-06, %v2617_v41 }
 0x91d   : > { %v2704_v38 = vadd.f32 %v5765_v55, %v2682_v2  ;;  %3789 = vmatprep.subr.bf16.mxu1 %v5726_v13  ;;  %v2598_v8 = vpop.xlane.xlu1 %2597  ;;  %v2661_v10 = vmul.f32 %v4115_v4, %v5665_v17 }
 0x91e   : > { %v4117_v50 = vpop.eup %4116  ;;  %v2634_v25 = vadd.f32 1e-06, %v2618_v6  ;;  %v2619_v48 = vmul.f32 0.0078125, %v2598_v8 }
 0x91f   : > { %v2600_v15 = vpop.xlane.xlu0 %2599  ;;  %v2662_v27 = vmul.f32 %v4117_v50, %v5668_v1  ;;  %v2718_v23 = vpack.c.bf16 %v2704_v38, %v2703_v54  ;;  %v2683_v28 = vmul.f32 %v5757_v29, %v2661_v10 }
 0x920   : > { %4122 = vrsqrt.f32 %v2634_v25  ;;  %v2620_v39 = vmul.f32 0.0078125, %v2600_v15  ;;  %3797 = vmatpush3.bf16.msra.mxu1 %v5729_v34  ;;  %v2635_v34 = vadd.f32 1e-06, %v2619_v48 }
 0x921   : > { %v2684_v12 = vmul.f32 %v5757_v29, %v2662_v27  ;;  %3790 = vmatprep.subr.bf16.mxu1 %v5732_v46  ;;  %4124 = vrsqrt.f32 %v2633_v58  ;;  %v2705_v43 = vadd.f32 %v5765_v55, %v2683_v28 }
 0x922   : > { %v4119_v13 = vpop.eup %4118  ;;  %v2636_v41 = vadd.f32 1e-06, %v2620_v39 }
 0x923   : > { %2876 = vmatmul.mubr.bf16.gmra.mrb[4].mxu1 %v2718_v23  ;;  %v4121_v0 = vpop.eup %4120  ;;  %v2706_v17 = vadd.f32 %v5765_v55, %v2684_v12  ;;  %v2664_v1 = vmul.f32 %v4119_v13, %v5678_v51 }
 0x924   : > { %2885 = vmatprep.mubr.bf16.mxu1 %v4408_v20  ;;  %3798 = vmatpush3.bf16.msra.mxu1 %v5735_v30  ;;  %v2663_v2 = vmul.f32 %v4121_v0, %v5673_v44  ;;  %4126 = vrsqrt.f32 %v2636_v41 }
 0x925   : > { %3791 = vmatprep.subr.bf16.mxu1 %v5738_v63  ;;  %v2602_v46 = vpop.xlane.xlu1 %2601  ;;  %v2719_v6 = vpack.c.bf16 %v2706_v17, %v2705_v43  ;;  %v2686_v30 = vmul.f32 %v5757_v29, %v2664_v1  ;;  %4128 = vrsqrt.f32 %v2635_v34 }
 0x926   : > { %v2621_v51 = vmul.f32 0.0078125, %v2602_v46  ;;  %v2685_v63 = vmul.f32 %v5757_v29, %v2663_v2 }
 0x927   : > { %v2604_v60 = vpop.xlane.xlu0 %2603 }
 0x928   : > { %v2622_v4 = vmul.f32 0.0078125, %v2604_v60  ;;  %3799 = vmatpush3.bf16.msra.mxu1 %v5741_v37  ;;  %v2708_v37 = vadd.f32 %v5765_v55, %v2686_v30  ;;  %v2707_v15 = vadd.f32 %v5765_v55, %v2685_v63 }
 0x929   : > { %3792 = vmatprep.subr.bf16.mxu1 %v5744_v21  ;;  %v2637_v21 = vadd.f32 1e-06, %v2621_v51  ;;  %v2606_v8 = vpop.xlane.xlu1 %2605 }
 0x92a   : > { %v4123_v38 = vpop.eup %4122  ;;  %v2638_v58 = vadd.f32 1e-06, %v2622_v4  ;;  %v2720_v27 = vpack.c.bf16 %v2708_v37, %v2707_v15  ;;  %v4103_v15 = vld [vmem:[#allocation15 + $0x30] sm:$0xff]  }
 0x92b   : > { %2886 = vmatmul.mubr.bf16.gmra.mrb[8].mxu1 %v2719_v6  ;;  %v4125_v50 = vpop.eup %4124  ;;  %v2608_v44 = vpop.xlane.xlu0 %2607  ;;  %v2666_v25 = vmul.f32 %v4123_v38, %v5688_v14 }
 0x92c   : > { %2895 = vmatprep.mubr.bf16.mxu1 %v4408_v20  ;;  %3800 = vmatpush3.bf16.msra.mxu1 %v5747_v26  ;;  %v2665_v54 = vmul.f32 %v4125_v50, %v5685_v40  ;;  %4130 = vrsqrt.f32 %v2638_v58  ;;  %v2624_v10 = vmul.f32 0.0078125, %v2608_v44  ;;  %v2623_v26 = vmul.f32 0.0078125, %v2606_v8  ;;  %v4101_v8 = vld [vmem:[#allocation15 + $0x28] sm:$0xff]  }
 0x92d   : > { %3793 = vmatprep.subr.bf16.mxu1 %v5750_v47  ;;  %v2688_v39 = vmul.f32 %v5757_v29, %v2666_v25  ;;  %4132 = vrsqrt.f32 %v2637_v21  ;;  %3607 = vmatpush3.bf16.msra.mxu0 %v4101_v8 }
 0x92e   : > { %v4127_v23 = vpop.eup %4126  ;;  %v2687_v12 = vmul.f32 %v5757_v29, %v2665_v54  ;;  %v2640_v13 = vadd.f32 1e-06, %v2624_v10  ;;  %v2639_v40 = vadd.f32 1e-06, %v2623_v26  ;;  %v4105_v54 = vld [vmem:[#allocation15 + $0x38] sm:$0xff]  }
 0x92f   : > { %v4129_v14 = vpop.eup %4128  ;;  %v2710_v47 = vadd.f32 %v5765_v55, %v2688_v39  ;;  %v2668_v48 = vmul.f32 %v4127_v23, %v5698_v61 }
 0x930   : > { %v2709_v28 = vadd.f32 %v5765_v55, %v2687_v12  ;;  %v2667_v0 = vmul.f32 %v4129_v14, %v5693_v45  ;;  %4134 = vrsqrt.f32 %v2640_v13  ;;  %3801 = vmatpush3.bf16.msra.mxu1 %v4101_v8 }
 0x931   : > { %v2690_v17 = vmul.f32 %v5757_v29, %v2668_v48  ;;  %4136 = vrsqrt.f32 %v2639_v40 }
 0x932   : > { %v2721_v41 = vpack.c.bf16 %v2710_v47, %v2709_v28  ;;  %v2689_v34 = vmul.f32 %v5757_v29, %v2667_v0 }
 0x933   : > { %2896 = vmatmul.mubr.bf16.gmra.mrb[12].mxu1 %v2720_v27  ;;  %v2712_v60 = vadd.f32 %v5765_v55, %v2690_v17 }
 0x934   : > { %2905 = vmatprep.mubr.bf16.mxu1 %v4408_v20  ;;  %v2711_v43 = vadd.f32 %v5765_v55, %v2689_v34 }
 0x936   : > { %v4131_v1 = vpop.eup %4130  ;;  %v2722_v2 = vpack.c.bf16 %v2712_v60, %v2711_v43 }
 0x937   : > { %v4133_v46 = vpop.eup %4132  ;;  %v2670_v61 = vmul.f32 %v4131_v1, %v5708_v19 }
 0x938   : > { %v2669_v45 = vmul.f32 %v4133_v46, %v5705_v36 }
 0x939   : > { %v2692_v4 = vmul.f32 %v5757_v29, %v2670_v61 }
 0x93a   : > { %v4135_v6 = vpop.eup %4134  ;;  %v2691_v30 = vmul.f32 %v5757_v29, %v2669_v45 }
 0x93b   : > { %2906 = vmatmul.mubr.bf16.gmra.mrb[16].mxu1 %v2721_v41  ;;  %v4137_v38 = vpop.eup %4136  ;;  %v2714_v51 = vadd.f32 %v5765_v55, %v2692_v4  ;;  %v2672_v63 = vmul.f32 %v4135_v6, %v5718_v31  ;;  %v4102_v31 = vld [vmem:[#allocation15 + $0x70] sm:$0xff]  }
 0x93c   : > { %2915 = vmatprep.mubr.bf16.mxu1 %v4408_v20  ;;  %v2713_v19 = vadd.f32 %v5765_v55, %v2691_v30  ;;  %v2671_v50 = vmul.f32 %v4137_v38, %v5713_v53  ;;  %3608 = vmatprep.subr.bf16.mxu0 %v4102_v31  ;;  %v4104_v53 = vld [vmem:[#allocation15 + $0x78] sm:$0xff]  }
 0x93d   : > { %v2694_v36 = vmul.f32 %v5757_v29, %v2672_v63  ;;  %3794 = vmatprep.subr.bf16.mxu1 %v4102_v31  ;;  %3609 = vmatpush3.bf16.msra.mxu0 %v4103_v15 }
 0x93e   : > { %v2723_v58 = vpack.c.bf16 %v2714_v51, %v2713_v19  ;;  %v2693_v44 = vmul.f32 %v5757_v29, %v2671_v50  ;;  %3802 = vmatpush3.bf16.msra.mxu1 %v4103_v15  ;;  %3610 = vmatprep.subr.bf16.mxu0 %v4104_v53 }
 0x93f   : > { %v2716_v37 = vadd.f32 %v5765_v55, %v2694_v36  ;;  %3795 = vmatprep.subr.bf16.mxu1 %v4104_v53 }
 0x940   : > { %v2715_v25 = vadd.f32 %v5765_v55, %v2693_v44 }
 0x941   : > { %3611 = vmatpush3.bf16.msra.mxu0 %v4105_v54 }
 0x942   : > { %v2724_v21 = vpack.c.bf16 %v2716_v37, %v2715_v25  ;;  %3803 = vmatpush3.bf16.msra.mxu1 %v4105_v54 }
 0x943   : > { %2916 = vmatmul.mubr.bf16.gmra.mrb[20].mxu1 %v2722_v2 }
 0x944   : > { %2925 = vmatprep.mubr.bf16.mxu1 %v4408_v20 }
 0x94b   : > { %2926 = vmatmul.mubr.bf16.gmra.mrb[24].mxu1 %v2723_v58 }
 0x94c   : > { %2935 = vmatprep.mubr.bf16.mxu1 %v4408_v20  ;;  %v2741_v20 = vld [vmem:[%s6022_s15] sm:$0x3] }
 0x94d   : > { %v5834_v29 = vrot.slane %v2741_v20, %v844_v57  ;;  %v5838_v55 = vrot.slane %v2741_v20, %v848_v59 }
 0x953   : > { %2936 = vmatmul.mubr.bf16.gmra.mrb[28].mxu1 %v2724_v21 }
 0x9ee   : > { %v2867_v10 = vpop.f32.mrb[0].mxu1 }
 0x9ef   : > { %v2868_v27 = vadd.f32 %v2867_v10, %v5834_v29  ;;  %v2869_v39 = vpop.f32.mrb[1].mxu1 }
 0x9f0   : > { %v2870_v23 = vadd.f32 %v2869_v39, %v5838_v55  ;;  %v2871_v26 = vpop.f32.mrb[2].mxu1 }
 0x9f1   : > { %v2872_v12 = vadd.f32 %v2871_v26, %v5834_v29  ;;  %v2873_v14 = vpop.f32.mrb[3].mxu1  ;;  %v2946_v47 = vmax.f32 %v2868_v27, 0.0 }
 0x9f2   : > { %v2874_v13 = vadd.f32 %v2873_v14, %v5838_v55  ;;  %v2947_v57 = vmax.f32 %v2870_v23, 0.0 }
 0x9f3   : > { %v2948_v48 = vmax.f32 %v2872_v12, 0.0 }
 0x9f4   : > { %v2949_v40 = vmax.f32 %v2874_v13, 0.0 }
 0x9f5   : > { %v2978_v28 = vpack.c.bf16 %v2948_v48, %v2946_v47 }
 0x9f6   : > { %v2979_v62 = vpack.c.bf16 %v2949_v40, %v2947_v57  ;;  %v2877_v59 = vpop.f32.mrb[4].mxu1 }
 0x9f7   : > { %v2878_v0 = vadd.f32 %v2877_v59, %v5834_v29  ;;  %v2879_v41 = vpop.f32.mrb[5].mxu1 }
 0x9f8   : > { %v2880_v17 = vadd.f32 %v2879_v41, %v5838_v55  ;;  %v2881_v1 = vpop.f32.mrb[6].mxu1  ;;  %3161 = vmatprep.mubr.bf16.mxu0 %v2979_v62 }
 0x9f9   : > { %v2882_v34 = vadd.f32 %v2881_v1, %v5834_v29  ;;  %v2883_v46 = vpop.f32.mrb[7].mxu1  ;;  %3162 = vmatmul.mubr.bf16.vlgmr.msra.gmra.mrb[16].mxu0 %v2978_v28  ;;  %v2950_v61 = vmax.f32 %v2878_v0, 0.0 }
 0x9fa   : > { %v2884_v60 = vadd.f32 %v2883_v46, %v5838_v55  ;;  %v2951_v45 = vmax.f32 %v2880_v17, 0.0 }
 0x9fb   : > { %v2952_v43 = vmax.f32 %v2882_v34, 0.0 }
 0x9fc   : > { %v2953_v2 = vmax.f32 %v2884_v60, 0.0 }
 0x9fd   : > { %v2980_v4 = vpack.c.bf16 %v2952_v43, %v2950_v61 }
 0x9fe   : > { %v2981_v6 = vpack.c.bf16 %v2953_v2, %v2951_v45  ;;  %v2887_v30 = vpop.f32.mrb[8].mxu1 }
 0x9ff   : > { %v2888_v38 = vadd.f32 %v2887_v30, %v5834_v29  ;;  %v2889_v51 = vpop.f32.mrb[9].mxu1 }
 0xa00   : > { %v2890_v63 = vadd.f32 %v2889_v51, %v5838_v55  ;;  %v2891_v19 = vpop.f32.mrb[10].mxu1  ;;  %3169 = vmatprep.mubr.bf16.mxu0 %v2981_v6 }
 0xa01   : > { %v2892_v50 = vadd.f32 %v2891_v19, %v5834_v29  ;;  %v2893_v58 = vpop.f32.mrb[11].mxu1  ;;  %3170 = vmatmul.mubr.bf16.gmra.mrb[20].mxu0 %v2980_v4  ;;  %v2954_v44 = vmax.f32 %v2888_v38, 0.0 }
 0xa02   : > { %v2894_v36 = vadd.f32 %v2893_v58, %v5838_v55  ;;  %v2955_v25 = vmax.f32 %v2890_v63, 0.0 }
 0xa03   : > { %v2956_v37 = vmax.f32 %v2892_v50, 0.0 }
 0xa04   : > { %v2957_v21 = vmax.f32 %v2894_v36, 0.0 }
 0xa05   : > { %v2982_v8 = vpack.c.bf16 %v2956_v37, %v2954_v44 }
 0xa06   : > { %v2983_v31 = vpack.c.bf16 %v2957_v21, %v2955_v25  ;;  %v2897_v15 = vpop.f32.mrb[12].mxu1 }
 0xa07   : > { %v2898_v53 = vadd.f32 %v2897_v15, %v5834_v29  ;;  %v2899_v54 = vpop.f32.mrb[13].mxu1 }
 0xa08   : > { %v2900_v20 = vadd.f32 %v2899_v54, %v5838_v55  ;;  %v2901_v10 = vpop.f32.mrb[14].mxu1  ;;  %3177 = vmatprep.mubr.bf16.mxu0 %v2983_v31 }
 0xa09   : > { %v2902_v27 = vadd.f32 %v2901_v10, %v5834_v29  ;;  %v2903_v39 = vpop.f32.mrb[15].mxu1  ;;  %3178 = vmatmul.mubr.bf16.gmra.mrb[24].mxu0 %v2982_v8  ;;  %v2958_v26 = vmax.f32 %v2898_v53, 0.0 }
 0xa0a   : > { %v2904_v23 = vadd.f32 %v2903_v39, %v5838_v55  ;;  %v2959_v14 = vmax.f32 %v2900_v20, 0.0 }
 0xa0b   : > { %v2960_v12 = vmax.f32 %v2902_v27, 0.0 }
 0xa0c   : > { %v2961_v13 = vmax.f32 %v2904_v23, 0.0 }
 0xa0d   : > { %v2984_v47 = vpack.c.bf16 %v2960_v12, %v2958_v26 }
 0xa0e   : > { %v2985_v48 = vpack.c.bf16 %v2961_v13, %v2959_v14  ;;  %v2907_v57 = vpop.f32.mrb[16].mxu1 }
 0xa0f   : > { %v2908_v40 = vadd.f32 %v2907_v57, %v5834_v29  ;;  %v2909_v28 = vpop.f32.mrb[17].mxu1 }
 0xa10   : > { %v2910_v62 = vadd.f32 %v2909_v28, %v5838_v55  ;;  %v2911_v59 = vpop.f32.mrb[18].mxu1  ;;  %3185 = vmatprep.mubr.bf16.mxu0 %v2985_v48 }
 0xa11   : > { %v2912_v0 = vadd.f32 %v2911_v59, %v5834_v29  ;;  %v2913_v41 = vpop.f32.mrb[19].mxu1  ;;  %3186 = vmatmul.mubr.bf16.gmra.mrb[28].mxu0 %v2984_v47  ;;  %v2962_v1 = vmax.f32 %v2908_v40, 0.0 }
 0xa12   : > { %v2914_v17 = vadd.f32 %v2913_v41, %v5838_v55  ;;  %v2963_v46 = vmax.f32 %v2910_v62, 0.0 }
 0xa13   : > { %v2964_v34 = vmax.f32 %v2912_v0, 0.0 }
 0xa14   : > { %v2965_v60 = vmax.f32 %v2914_v17, 0.0 }
 0xa15   : > { %v2986_v61 = vpack.c.bf16 %v2964_v34, %v2962_v1 }
 0xa16   : > { %v2987_v43 = vpack.c.bf16 %v2965_v60, %v2963_v46  ;;  %v2917_v45 = vpop.f32.mrb[20].mxu1  ;;  %v5872_v60 = vld [vmem:[#allocation16] ss:$0 sm:$0xff] }
 0xa17   : > { %v2918_v2 = vadd.f32 %v2917_v45, %v5834_v29  ;;  %v2919_v4 = vpop.f32.mrb[21].mxu1 }
 0xa18   : > { %v2920_v6 = vadd.f32 %v2919_v4, %v5838_v55  ;;  %v2921_v30 = vpop.f32.mrb[22].mxu1  ;;  %3193 = vmatprep.mubr.bf16.mxu0 %v2987_v43 }
 0xa19   : > { %v2922_v38 = vadd.f32 %v2921_v30, %v5834_v29  ;;  %v2923_v51 = vpop.f32.mrb[23].mxu1  ;;  %3194 = vmatmul.mubr.bf16.gmra.mrb[32].mxu0 %v2986_v61  ;;  %v2966_v19 = vmax.f32 %v2918_v2, 0.0 }
 0xa1a   : > { %v2924_v63 = vadd.f32 %v2923_v51, %v5838_v55  ;;  %v2967_v58 = vmax.f32 %v2920_v6, 0.0 }
 0xa1b   : > { %v2968_v50 = vmax.f32 %v2922_v38, 0.0 }
 0xa1c   : > { %v2969_v36 = vmax.f32 %v2924_v63, 0.0 }
 0xa1d   : > { %v2988_v44 = vpack.c.bf16 %v2968_v50, %v2966_v19 }
 0xa1e   : > { %v2989_v37 = vpack.c.bf16 %v2969_v36, %v2967_v58  ;;  %v2927_v25 = vpop.f32.mrb[24].mxu1 }
 0xa1f   : > { %v2928_v21 = vadd.f32 %v2927_v25, %v5834_v29  ;;  %v2929_v8 = vpop.f32.mrb[25].mxu1 }
 0xa20   : > { %v2930_v31 = vadd.f32 %v2929_v8, %v5838_v55  ;;  %v2931_v15 = vpop.f32.mrb[26].mxu1  ;;  %3201 = vmatprep.mubr.bf16.mxu0 %v2989_v37 }
 0xa21   : > { %v2932_v53 = vadd.f32 %v2931_v15, %v5834_v29  ;;  %v2933_v54 = vpop.f32.mrb[27].mxu1  ;;  %3202 = vmatmul.mubr.bf16.gmra.mrb[36].mxu0 %v2988_v44  ;;  %v2970_v10 = vmax.f32 %v2928_v21, 0.0 }
 0xa22   : > { %v2934_v20 = vadd.f32 %v2933_v54, %v5838_v55  ;;  %v2971_v39 = vmax.f32 %v2930_v31, 0.0 }
 0xa23   : > { %v2972_v27 = vmax.f32 %v2932_v53, 0.0 }
 0xa24   : > { %v2973_v23 = vmax.f32 %v2934_v20, 0.0 }
 0xa25   : > { %v2990_v26 = vpack.c.bf16 %v2972_v27, %v2970_v10 }
 0xa26   : > { %v2991_v12 = vpack.c.bf16 %v2973_v23, %v2971_v39  ;;  %v2937_v14 = vpop.f32.mrb[28].mxu1 }
 0xa27   : > { %v2938_v13 = vadd.f32 %v2937_v14, %v5834_v29  ;;  %v2939_v47 = vpop.f32.mrb[29].mxu1 }
 0xa28   : > { %v2940_v48 = vadd.f32 %v2939_v47, %v5838_v55  ;;  %v2941_v57 = vpop.f32.mrb[30].mxu1  ;;  %3209 = vmatprep.mubr.bf16.mxu1 %v2991_v12 }
 0xa29   : > { %v2942_v40 = vadd.f32 %v2941_v57, %v5834_v29  ;;  %v2943_v28 = vpop.f32.mrb[31].mxu1  ;;  %3210 = vmatmul.mubr.bf16.vlgmr.msra.gmra.mrb[32].mxu1 %v2990_v26  ;;  %v2974_v59 = vmax.f32 %v2938_v13, 0.0 }
 0xa2a   : > { %v2944_v62 = vadd.f32 %v2943_v28, %v5838_v55  ;;  %v2975_v41 = vmax.f32 %v2940_v48, 0.0 }
 0xa2b   : > { %v2976_v0 = vmax.f32 %v2942_v40, 0.0 }
 0xa2c   : > { %v2977_v17 = vmax.f32 %v2944_v62, 0.0 }
 0xa2d   : > { %v2992_v1 = vpack.c.bf16 %v2976_v0, %v2974_v59 }
 0xa2e   : > { %v2993_v34 = vpack.c.bf16 %v2977_v17, %v2975_v41 }
 0xa30   : > { %3217 = vmatprep.mubr.bf16.mxu1 %v2993_v34 }
 0xa31   : > { %3218 = vmatmul.mubr.bf16.gmra.mrb[36].mxu1 %v2992_v1 }
 0xacc   : > { %v3612_v46 = vpop.f32.mrb[16].mxu0 }
 0xacd   : > { %v3613_v61 = vpop.f32.mrb[17].mxu0 }
 0xace   : > { %v3614_v43 = vadd.f32 %v3613_v61, %v3612_v46  ;;  %v3615_v29 = vpop.f32.mrb[18].mxu0 }
 0xacf   : > { %v3616_v45 = vpop.f32.mrb[19].mxu0 }
 0xad0   : > { %v3164_v2 = vadd.f32 %v3614_v43, %v5872_v60  ;;  %v3617_v55 = vadd.f32 %v3616_v45, %v3615_v29 }
 0xad2   : > { %v3226_v4 = vadd.f32 %v3164_v2, %v5581_v24  ;;  %v3167_v6 = vadd.f32 %v3617_v55, %v5872_v60 }
 0xad4   : > { %3242 = vst [vmem:[%s5327_s16] sm:$0xff] %v3226_v4  ;;  %v3227_v30 = vadd.f32 %v3167_v6, %v5584_v56  ;;  %v3618_v38 = vpop.f32.mrb[20].mxu0 }
 0xad5   : > { %v3619_v51 = vpop.f32.mrb[21].mxu0 }
 0xad6   : > { %3243 = vst [vmem:[%s5327_s16 + $0x8] sm:$0xff] %v3227_v30  ;;  %v3620_v63 = vadd.f32 %v3619_v51, %v3618_v38  ;;  %v3621_v19 = vpop.f32.mrb[22].mxu0 }
 0xad7   : > { %v3622_v50 = vpop.f32.mrb[23].mxu0 }
 0xad8   : > { %v3172_v58 = vadd.f32 %v3620_v63, %v5872_v60  ;;  %v3623_v36 = vadd.f32 %v3622_v50, %v3621_v19 }
 0xada   : > { %v3228_v44 = vadd.f32 %v3172_v58, %v5588_v16  ;;  %v3175_v24 = vadd.f32 %v3623_v36, %v5872_v60 }
 0xadc   : > { %3244 = vst [vmem:[%s5327_s16 + $0x10] sm:$0xff] %v3228_v44  ;;  %v3229_v37 = vadd.f32 %v3175_v24, %v5593_v22  ;;  %v3624_v25 = vpop.f32.mrb[24].mxu0 }
 0xadd   : > { %v3625_v56 = vpop.f32.mrb[25].mxu0 }
 0xade   : > { %3245 = vst [vmem:[%s5327_s16 + $0x18] sm:$0xff] %v3229_v37  ;;  %v3626_v21 = vadd.f32 %v3625_v56, %v3624_v25  ;;  %v3627_v8 = vpop.f32.mrb[26].mxu0 }
 0xadf   : > { %v3628_v31 = vpop.f32.mrb[27].mxu0 }
 0xae0   : > { %v3180_v15 = vadd.f32 %v3626_v21, %v5872_v60  ;;  %v3629_v53 = vadd.f32 %v3628_v31, %v3627_v8 }
 0xae2   : > { %v3230_v54 = vadd.f32 %v3180_v15, %v5597_v33  ;;  %v3183_v16 = vadd.f32 %v3629_v53, %v5872_v60 }
 0xae4   : > { %3246 = vst [vmem:[%s5327_s16 + $0x20] sm:$0xff] %v3230_v54  ;;  %v3231_v20 = vadd.f32 %v3183_v16, %v5603_v32  ;;  %v3630_v10 = vpop.f32.mrb[28].mxu0 }
 0xae5   : > { %v3631_v22 = vpop.f32.mrb[29].mxu0 }
 0xae6   : > { %3247 = vst [vmem:[%s5327_s16 + $0x28] sm:$0xff] %v3231_v20  ;;  %v3632_v27 = vadd.f32 %v3631_v22, %v3630_v10  ;;  %v3633_v39 = vpop.f32.mrb[30].mxu0 }
 0xae7   : > { %v3634_v23 = vpop.f32.mrb[31].mxu0 }
 0xae8   : > { %v3188_v26 = vadd.f32 %v3632_v27, %v5872_v60  ;;  %v3635_v12 = vadd.f32 %v3634_v23, %v3633_v39 }
 0xaea   : > { %v3232_v14 = vadd.f32 %v3188_v26, %v5600_v35  ;;  %v3191_v33 = vadd.f32 %v3635_v12, %v5872_v60 }
 0xaec   : > { %3248 = vst [vmem:[%s5327_s16 + $0x30] sm:$0xff] %v3232_v14  ;;  %v3233_v13 = vadd.f32 %v3191_v33, %v5608_v3  ;;  %v3636_v47 = vpop.f32.mrb[32].mxu0 }
 0xaed   : > { %v3637_v32 = vpop.f32.mrb[33].mxu0 }
 0xaee   : > { %3249 = vst [vmem:[%s5327_s16 + $0x38] sm:$0xff] %v3233_v13  ;;  %v3638_v48 = vadd.f32 %v3637_v32, %v3636_v47  ;;  %v3639_v57 = vpop.f32.mrb[34].mxu0 }
 0xaef   : > { %v3640_v40 = vpop.f32.mrb[35].mxu0 }
 0xaf0   : > { %v3196_v28 = vadd.f32 %v3638_v48, %v5872_v60  ;;  %v3641_v62 = vadd.f32 %v3640_v40, %v3639_v57 }
 0xaf2   : > { %v3234_v59 = vadd.f32 %v3196_v28, %v5613_v5  ;;  %v3199_v35 = vadd.f32 %v3641_v62, %v5872_v60 }
 0xaf4   : > { %3250 = vst [vmem:[%s5327_s16 + $0x40] sm:$0xff] %v3234_v59  ;;  %v3235_v0 = vadd.f32 %v3199_v35, %v5619_v7  ;;  %v3642_v41 = vpop.f32.mrb[36].mxu0 }
 0xaf5   : > { %v3643_v3 = vpop.f32.mrb[37].mxu0 }
 0xaf6   : > { %3251 = vst [vmem:[%s5327_s16 + $0x48] sm:$0xff] %v3235_v0  ;;  %v3644_v17 = vadd.f32 %v3643_v3, %v3642_v41  ;;  %v3645_v1 = vpop.f32.mrb[38].mxu0 }
 0xaf7   : > { %v3646_v34 = vpop.f32.mrb[39].mxu0 }
 0xaf8   : > { %v3204_v46 = vadd.f32 %v3644_v17, %v5872_v60  ;;  %v3647_v61 = vadd.f32 %v3646_v34, %v3645_v1 }
 0xafa   : > { %v3236_v43 = vadd.f32 %v3204_v46, %v5616_v52  ;;  %v3207_v5 = vadd.f32 %v3647_v61, %v5872_v60 }
 0xafc   : > { %3252 = vst [vmem:[%s5327_s16 + $0x50] sm:$0xff] %v3236_v43  ;;  %v3237_v29 = vadd.f32 %v3207_v5, %v5623_v49  ;;  %v3648_v45 = vpop.f32.mrb[32].mxu1 }
 0xafd   : > { %v3649_v7 = vpop.f32.mrb[33].mxu1 }
 0xafe   : > { %3253 = vst [vmem:[%s5327_s16 + $0x58] sm:$0xff] %v3237_v29  ;;  %v3650_v2 = vadd.f32 %v3649_v7, %v3648_v45  ;;  %v3651_v55 = vpop.f32.mrb[34].mxu1 }
 0xaff   : > { %v3652_v4 = vpop.f32.mrb[35].mxu1 }
 0xb00   : > { %v3212_v6 = vadd.f32 %v3650_v2, %v5872_v60  ;;  %v3653_v30 = vadd.f32 %v3652_v4, %v3651_v55 }
 0xb02   : > { %v3238_v38 = vadd.f32 %v3212_v6, %v5629_v9  ;;  %v3215_v52 = vadd.f32 %v3653_v30, %v5872_v60 }
 0xb04   : > { %3254 = vst [vmem:[%s5327_s16 + $0x60] sm:$0xff] %v3238_v38  ;;  %v3239_v51 = vadd.f32 %v3215_v52, %v5635_v18  ;;  %v3654_v49 = vpop.f32.mrb[36].mxu1 }
 0xb05   : > { %v3655_v63 = vpop.f32.mrb[37].mxu1 }
 0xb06   : > { %3255 = vst [vmem:[%s5327_s16 + $0x68] sm:$0xff] %v3239_v51  ;;  %v3656_v19 = vadd.f32 %v3655_v63, %v3654_v49  ;;  %v3657_v50 = vpop.f32.mrb[38].mxu1 }
 0xb07   : > { %v3658_v58 = vpop.f32.mrb[39].mxu1 }
 0xb08   : > { %v3220_v36 = vadd.f32 %v3656_v19, %v5872_v60  ;;  %v3659_v44 = vadd.f32 %v3658_v58, %v3657_v50 }
 0xb0a   : > { %v3240_v9 = vadd.f32 %v3220_v36, %v5632_v11  ;;  %v3223_v24 = vadd.f32 %v3659_v44, %v5872_v60 }
 0xb0c   : > { %3256 = vst [vmem:[%s5327_s16 + $0x70] sm:$0xff] %v3240_v9  ;;  %v3241_v18 = vadd.f32 %v3223_v24, %v5639_v42 }
 0xb0e   : > { %3257 = vst [vmem:[%s5327_s16 + $0x78] sm:$0xff] %v3241_v18 }
 0xb0f   : > { %4321 = shalt.err (!%p4318_p6)
}
 0xb10   : > { %s4322_s16 = scalar_lea.hbm %s5924_s24, 2048  ;;  %s4326_s15 = scalar_lea.hbm %s6023_s1, 4096 }
 0xb11   : > { %p4323_p9 = scmp.ne.s32.totalorder %s5924_s24, %s4322_s16  ;;  %p4327_p0 = scmp.lt.u32.totalorder %s5924_s24, %s6023_s1 }
 0xb12   : > { %p4328_p5 = scmp.lt.u32.totalorder %s4326_s15, %s4322_s16  ;;  %p4330_p7 = scmp.lt.u32.totalorder %s4322_s16, %s5924_s24 }
 0xb13   : > { %p4324_p4 = pnand %p4323_p9, %p6024_p10 }
 0xb14   : > { %p4329_p2 = por %p4328_p5, %p4327_p0 }
 0xb15   : > { %p4325_p3 = pneg %p4324_p4 }
 0xb16   : > { %p4331_p1 = por %p4330_p7, %p4329_p2 }
 0xb18   : > { %p4332_p11 = pnand %p4331_p1, %p4325_p3 }
 0xb1a   : > { %4335 = shalt.err (!%p4332_p11)
}
 0xb1b   : > { %s4414_s23 = smov 128   ;;  %s4415_s21 = smov 8  }
 0xb1c   : > { %3834 = dma.vmem_to_hbm [thread:$0]  (%p6024_p10), %s5926_s19, 2048, %s5924_s24, %s3259_s14, %s4414_s23, %s4414_s23, %s4415_s21  }
 0xb1d PF: > { %s3288_s30 = sand.u32 1, %s4378_s25   ;;  %p6025_p12 = scmp.ne.s32.totalorder %s6008_s9, 0 }
 0xb1e   : > { %p6026_p13 = scmp.ge.s32.totalorder %s4390_s28, 2  ;;  %s3289_s20 = scalar_lea.sflag [#allocation9], %s3288_s30 }
 0xb20   : > { %p3857_p8 = pnand %p6026_p13, %p6025_p12 }
 0xb22   : > { %4373 = dma.done.wait (!%p3857_p8), %s3289_s20, 2048  }
 0xb23   : > { %4375 = vsyncadd (!%p3857_p8), %s3289_s20, 4294965248  ;;  %p29_p6 = scmp.ge.s32.totalorder %s4643_s18, 4   ;;  %s6027_s25 = smov %s4382_s26 }
 0xb24   : > { %s6028_s26 = smov %s4386_s27  ;;  %s6029_s27 = smov %s4655_s7 }
 0xb25   : > { %s6030_s28 = smov %s4643_s18  ;;  %31 = sbr.rel (!%p29_p6) target bundleno = 16 (0x10), region = 171 }
 0xb2c   :  { %3294 = vsyncpa [#allocation8], 1 }
 0xb2d   :  { %3296 = vsyncpa [#allocation8 + $0x1], 1 }
 0xb2e   :  { %3297 = vsyncpa [#allocation11], 1 }
 0xb2f   :  { %3298 = vsyncpa [#allocation14], 1 }
 0xb30   :  { %3299 = vsyncpa [#allocation17], 1 }
 0xb31   :  { %3300 = vsyncpa [#allocation9], 1 }
 0xb32   :  { %3302 = vsyncpa [#allocation9 + $0x1], 1 }

</bundles_post_ra>
